<compile_context>
chip_gen: v6e
topology: v6e:2x2x1
jax: 0.10.0
libtpu: 0.0.40
codegen_flags: <defaults>
</compile_context>

<pallas_src>
import functools

import jax
import jax.numpy as jnp
from jax import lax
from jax.experimental import pallas as pl
from jax.experimental.pallas import tpu as pltpu

H = W = 50              # spatial size implied by Linear(8 * 25 * 25, 2)
C_OUT = 8
PH = PW = 25            # after 2x2 max-pool
FLAT = C_OUT * PH * PW  # 5000
SPREAD = 2 * PH - 1     # 49: pooled value lives at even (2i,2j) of the shifted-max plane
BT_CAP = 64             # input block ~BT*31 KiB (x2 buffers) -> far under scoped VMEM on all gens


def fused_kernel(xs_ref, w_ref, b_ref, lw_ref, lb_ref, o_ref, *, bt):
    """Conv3x3 + bias + ReLU + maxpool2x2 + Linear(5000->2), fused, for bt images.

    xs_ref : VMEM (bt, 3, 52, 50)   padded input, pre-shifted by 0/1/2 lanes (kw axis)
    w_ref  : SMEM (72,)             conv weights flattened as [oc*9 + kh*3 + kw]
    b_ref  : SMEM (8,)              conv bias
    lw_ref : VMEM (2, 8, 49, 49)    linear weights spread to even (2i,2j) positions
    lb_ref : SMEM (2,)              linear bias
    o_ref  : VMEM (bt, 2)           logits
    """

    def per_image(b, carry):
        # Linear-layer accumulation planes (the only values that persist across channels).
        wacc0 = jnp.zeros((SPREAD, SPREAD), jnp.float32)
        wacc1 = jnp.zeros((SPREAD, SPREAD), jnp.float32)

        for oc in range(C_OUT):
            # Conv taps: every window is a sublane-offset load from the pre-shifted
            # input ref -- no lane relayouts inside the tap loop.
            acc = jnp.zeros((H, W), jnp.float32)
            for kh in range(3):
                for kw in range(3):
                    win = xs_ref[b, kw, kh:kh + H, :]           # (50, 50) pure vld
                    acc = acc + w_ref[oc * 9 + kh * 3 + kw] * win

            # Bias + ReLU, then 2x2 max-pool via shifted maxes; pooled value = cmax[2i,2j].
            a = jnp.maximum(acc + b_ref[oc], 0.0)               # (50, 50)
            rmax = jnp.maximum(a[0:H - 1, :], a[1:H, :])        # (49, 50)
            cmax = jnp.maximum(rmax[:, 0:W - 1], rmax[:, 1:W])  # (49, 49)

            # Linear MAC: spread weights are zero at odd (i,j), so the "garbage" there
            # contributes exactly 0.  Channel fully retired before the next one starts.
            wacc0 = wacc0 + cmax * lw_ref[0, oc]
            wacc1 = wacc1 + cmax * lw_ref[1, oc]

        s0 = jnp.sum(jnp.sum(wacc0, axis=1, keepdims=True), axis=0, keepdims=True)
        s1 = jnp.sum(jnp.sum(wacc1, axis=1, keepdims=True), axis=0, keepdims=True)
        # Assemble the (1, 2) logit row and store it with a single vst.
        col = lax.broadcasted_iota(jnp.int32, (1, 2), 1)
        row = jnp.where(col == 0, s0 + lb_ref[0], s1 + lb_ref[1])
        o_ref[pl.ds(b, 1), :] = row
        return carry

    lax.fori_loop(0, bt, per_image, 0)


def _pick_bt(batch, cap=BT_CAP):
    """Largest batch tile <= cap that divides the batch.

    Maximizing BT amortizes the ~0.35-0.6 us per-grid-step overhead, the dominant
    cost on single-TC v5e/v6e at these sizes.  If more than one grid step remains,
    prefer an even step count so both v7x TensorCores get balanced work."""
    bt = 1
    for d in range(1, min(batch, cap) + 1):
        if batch % d == 0:
            bt = d
    steps = batch // bt
    if steps > 1 and steps % 2 == 1:
        for d in range(bt, 0, -1):
            if batch % d == 0 and (batch // d) % 2 == 0:
                return d
    return bt


def nn_forward(x, conv_w, conv_b, lin_w, lin_b):
    """x: (B, 1, 50, 50) float32 (NCHW, like PyTorch)."""
    B = x.shape[0]
    BT = _pick_bt(B)

    # Glue (cheap, fuses under jit): pad=1 spatial padding plus the three lane-shifted
    # copies (layout plumbing, not compute), and the linear-weight spread onto even
    # (2i,2j) positions which matches nn.Flatten's C-major order exactly.
    xpad = jnp.pad(x[:, 0].astype(jnp.float32), ((0, 0), (1, 1), (1, 1)))     # (B, 52, 52)
    xs = jnp.stack([xpad[:, :, k:k + W] for k in range(3)], axis=1)           # (B, 3, 52, 50)
    w_flat = conv_w.reshape(C_OUT * 9).astype(jnp.float32)                    # (72,)
    lw_spread = jnp.zeros((2, C_OUT, SPREAD, SPREAD), jnp.float32)
    lw_spread = lw_spread.at[:, :, ::2, ::2].set(
        lin_w.reshape(2, C_OUT, PH, PW).astype(jnp.float32))

    out = pl.pallas_call(
        functools.partial(fused_kernel, bt=BT),
        out_shape=jax.ShapeDtypeStruct((B, 2), jnp.float32),
        grid=(B // BT,),
        in_specs=[
            pl.BlockSpec((BT, 3, H + 2, W), lambda i: (i, 0, 0, 0)),
            pl.BlockSpec(memory_space=pltpu.MemorySpace.SMEM),
            pl.BlockSpec(memory_space=pltpu.MemorySpace.SMEM),
            # Constant index_map: fetched once, reused on every later grid step.
            pl.BlockSpec((2, C_OUT, SPREAD, SPREAD), lambda i: (0, 0, 0, 0)),
            pl.BlockSpec(memory_space=pltpu.MemorySpace.SMEM),
        ],
        out_specs=pl.BlockSpec((BT, 2), lambda i: (i, 0)),
        compiler_params=pltpu.CompilerParams(dimension_semantics=("parallel",)),
    )(xs, w_flat, conv_b.astype(jnp.float32), lw_spread, lin_b.astype(jnp.float32))
    return out


def reference_forward(x, conv_w, conv_b, lin_w, lin_b):
    """Pure-JAX reference reproducing the PyTorch module."""
    y = jax.lax.conv_general_dilated(
        x, conv_w, window_strides=(1, 1), padding=((1, 1), (1, 1)),
        dimension_numbers=("NCHW", "OIHW", "NCHW"))
    y = jnp.maximum(y + conv_b.reshape(1, C_OUT, 1, 1), 0.0)
    y = jax.lax.reduce_window(
        y, -jnp.inf, jax.lax.max, (1, 1, 2, 2), (1, 1, 2, 2), "VALID")
    y = y.reshape(x.shape[0], -1)
    return y @ lin_w.T + lin_b


if __name__ == "__main__":
    key = jax.random.PRNGKey(0)
    k_x, k_cw, k_cb, k_lw, k_lb = jax.random.split(key, 5)

    B = 2
    x = jax.random.normal(k_x, (B, 1, H, W), dtype=jnp.float32)

    # Deterministic parameter init (shapes from the module's __init__).
    conv_w = 0.1 * jax.random.normal(k_cw, (C_OUT, 1, 3, 3), dtype=jnp.float32)
    conv_b = 0.1 * jax.random.normal(k_cb, (C_OUT,), dtype=jnp.float32)
    lin_w = 0.02 * jax.random.normal(k_lw, (2, FLAT), dtype=jnp.float32)
    lin_b = 0.02 * jax.random.normal(k_lb, (2,), dtype=jnp.float32)

    fwd = jax.jit(nn_forward)
    out = jax.block_until_ready(fwd(x, conv_w, conv_b, lin_w, lin_b))
    ref = jax.block_until_ready(reference_forward(x, conv_w, conv_b, lin_w, lin_b))

    assert out.shape == (B, 2), out.shape
    assert jnp.allclose(out, ref, atol=1e-3, rtol=1e-3), (out, ref)
    print("KERNEL_OK")
</pallas_src>

<mosaic_0001>
module attributes {stable_mosaic.version = 11 : i64} {
  func.func @fused_kernel(%arg0: i32, %arg1: memref<2x3x52x50xf32, #tpu.memory_space<vmem>>, %arg2: memref<72xf32, #tpu.memory_space<smem>>, %arg3: memref<8xf32, #tpu.memory_space<smem>>, %arg4: memref<2x8x49x49xf32, #tpu.memory_space<vmem>>, %arg5: memref<2xf32, #tpu.memory_space<smem>>, %arg6: memref<2x2xf32, #tpu.memory_space<vmem>>) attributes {dimension_semantics = [#tpu.dimension_semantics<parallel>], iteration_bounds = array<i64: 1>, scalar_prefetch = 0 : i64, scratch_operands = 0 : i64, tpu.core_type = #tpu.core_type<tc>, window_params = [{transform_indices = @transform_0, window_bounds = array<i64: 2, 3, 52, 50>}, {transform_indices = @transform_1, window_bounds = array<i64: 72>}, {transform_indices = @transform_2, window_bounds = array<i64: 8>}, {pipeline_mode = #tpu.pipeline_mode<synchronous>, transform_indices = @transform_3, window_bounds = array<i64: 2, 8, 49, 49>}, {transform_indices = @transform_4, window_bounds = array<i64: 2>}, {transform_indices = @transform_5, window_bounds = array<i64: 2, 2>}]} {
    %c0_i32 = arith.constant 0 : i32
    %c2_i32 = arith.constant 2 : i32
    %0 = arith.addi %c0_i32, %c2_i32 : i32
    %c1_i32 = arith.constant 1 : i32
    scf.for %arg7 = %c0_i32 to %0 step %c1_i32  : i32 {
      %cst = arith.constant 0.000000e+00 : f32
      %1 = vector.broadcast %cst : f32 to vector<49x49xf32>
      %cst_1 = arith.constant 0.000000e+00 : f32
      %2 = vector.broadcast %cst_1 : f32 to vector<49x49xf32>
      %cst_2 = arith.constant 0.000000e+00 : f32
      %3 = vector.broadcast %cst_2 : f32 to vector<50x50xf32>
      %4 = arith.index_cast %arg7 : i32 to index
      %c0 = arith.constant 0 : index
      %c0_3 = arith.constant 0 : index
      %c0_4 = arith.constant 0 : index
      %5 = vector.load %arg1[%4, %c0, %c0_3, %c0_4] : memref<2x3x52x50xf32, #tpu.memory_space<vmem>>, vector<1x1x50x50xf32>
      %6 = vector.shape_cast %5 : vector<1x1x50x50xf32> to vector<50x50xf32>
      %c0_5 = arith.constant 0 : index
      %7 = memref.load %arg2[%c0_5] : memref<72xf32, #tpu.memory_space<smem>>
      %8 = vector.broadcast %7 : f32 to vector<50x50xf32>
      %9 = arith.mulf %8, %6 : vector<50x50xf32>
      %10 = arith.addf %3, %9 : vector<50x50xf32>
      %11 = arith.index_cast %arg7 : i32 to index
      %c1 = arith.constant 1 : index
      %c0_6 = arith.constant 0 : index
      %c0_7 = arith.constant 0 : index
      %12 = vector.load %arg1[%11, %c1, %c0_6, %c0_7] : memref<2x3x52x50xf32, #tpu.memory_space<vmem>>, vector<1x1x50x50xf32>
      %13 = vector.shape_cast %12 : vector<1x1x50x50xf32> to vector<50x50xf32>
      %c1_8 = arith.constant 1 : index
      %14 = memref.load %arg2[%c1_8] : memref<72xf32, #tpu.memory_space<smem>>
      %15 = vector.broadcast %14 : f32 to vector<50x50xf32>
      %16 = arith.mulf %15, %13 : vector<50x50xf32>
      %17 = arith.addf %10, %16 : vector<50x50xf32>
      %18 = arith.index_cast %arg7 : i32 to index
      %c2 = arith.constant 2 : index
      %c0_9 = arith.constant 0 : index
      %c0_10 = arith.constant 0 : index
      %19 = vector.load %arg1[%18, %c2, %c0_9, %c0_10] : memref<2x3x52x50xf32, #tpu.memory_space<vmem>>, vector<1x1x50x50xf32>
      %20 = vector.shape_cast %19 : vector<1x1x50x50xf32> to vector<50x50xf32>
      %c2_11 = arith.constant 2 : index
      %21 = memref.load %arg2[%c2_11] : memref<72xf32, #tpu.memory_space<smem>>
      %22 = vector.broadcast %21 : f32 to vector<50x50xf32>
      %23 = arith.mulf %22, %20 : vector<50x50xf32>
      %24 = arith.addf %17, %23 : vector<50x50xf32>
      %25 = arith.index_cast %arg7 : i32 to index
      %c0_12 = arith.constant 0 : index
      %c1_13 = arith.constant 1 : index
      %c0_14 = arith.constant 0 : index
      %26 = vector.load %arg1[%25, %c0_12, %c1_13, %c0_14] : memref<2x3x52x50xf32, #tpu.memory_space<vmem>>, vector<1x1x50x50xf32>
      %27 = vector.shape_cast %26 : vector<1x1x50x50xf32> to vector<50x50xf32>
      %c3 = arith.constant 3 : index
      %28 = memref.load %arg2[%c3] : memref<72xf32, #tpu.memory_space<smem>>
      %29 = vector.broadcast %28 : f32 to vector<50x50xf32>
      %30 = arith.mulf %29, %27 : vector<50x50xf32>
      %31 = arith.addf %24, %30 : vector<50x50xf32>
      %32 = arith.index_cast %arg7 : i32 to index
      %c1_15 = arith.constant 1 : index
      %c1_16 = arith.constant 1 : index
      %c0_17 = arith.constant 0 : index
      %33 = vector.load %arg1[%32, %c1_15, %c1_16, %c0_17] : memref<2x3x52x50xf32, #tpu.memory_space<vmem>>, vector<1x1x50x50xf32>
      %34 = vector.shape_cast %33 : vector<1x1x50x50xf32> to vector<50x50xf32>
      %c4 = arith.constant 4 : index
      %35 = memref.load %arg2[%c4] : memref<72xf32, #tpu.memory_space<smem>>
      %36 = vector.broadcast %35 : f32 to vector<50x50xf32>
      %37 = arith.mulf %36, %34 : vector<50x50xf32>
      %38 = arith.addf %31, %37 : vector<50x50xf32>
      %39 = arith.index_cast %arg7 : i32 to index
      %c2_18 = arith.constant 2 : index
      %c1_19 = arith.constant 1 : index
      %c0_20 = arith.constant 0 : index
      %40 = vector.load %arg1[%39, %c2_18, %c1_19, %c0_20] : memref<2x3x52x50xf32, #tpu.memory_space<vmem>>, vector<1x1x50x50xf32>
      %41 = vector.shape_cast %40 : vector<1x1x50x50xf32> to vector<50x50xf32>
      %c5 = arith.constant 5 : index
      %42 = memref.load %arg2[%c5] : memref<72xf32, #tpu.memory_space<smem>>
      %43 = vector.broadcast %42 : f32 to vector<50x50xf32>
      %44 = arith.mulf %43, %41 : vector<50x50xf32>
      %45 = arith.addf %38, %44 : vector<50x50xf32>
      %46 = arith.index_cast %arg7 : i32 to index
      %c0_21 = arith.constant 0 : index
      %c2_22 = arith.constant 2 : index
      %c0_23 = arith.constant 0 : index
      %47 = vector.load %arg1[%46, %c0_21, %c2_22, %c0_23] : memref<2x3x52x50xf32, #tpu.memory_space<vmem>>, vector<1x1x50x50xf32>
      %48 = vector.shape_cast %47 : vector<1x1x50x50xf32> to vector<50x50xf32>
      %c6 = arith.constant 6 : index
      %49 = memref.load %arg2[%c6] : memref<72xf32, #tpu.memory_space<smem>>
      %50 = vector.broadcast %49 : f32 to vector<50x50xf32>
      %51 = arith.mulf %50, %48 : vector<50x50xf32>
      %52 = arith.addf %45, %51 : vector<50x50xf32>
      %53 = arith.index_cast %arg7 : i32 to index
      %c1_24 = arith.constant 1 : index
      %c2_25 = arith.constant 2 : index
      %c0_26 = arith.constant 0 : index
      %54 = vector.load %arg1[%53, %c1_24, %c2_25, %c0_26] : memref<2x3x52x50xf32, #tpu.memory_space<vmem>>, vector<1x1x50x50xf32>
      %55 = vector.shape_cast %54 : vector<1x1x50x50xf32> to vector<50x50xf32>
      %c7 = arith.constant 7 : index
      %56 = memref.load %arg2[%c7] : memref<72xf32, #tpu.memory_space<smem>>
      %57 = vector.broadcast %56 : f32 to vector<50x50xf32>
      %58 = arith.mulf %57, %55 : vector<50x50xf32>
      %59 = arith.addf %52, %58 : vector<50x50xf32>
      %60 = arith.index_cast %arg7 : i32 to index
      %c2_27 = arith.constant 2 : index
      %c2_28 = arith.constant 2 : index
      %c0_29 = arith.constant 0 : index
      %61 = vector.load %arg1[%60, %c2_27, %c2_28, %c0_29] : memref<2x3x52x50xf32, #tpu.memory_space<vmem>>, vector<1x1x50x50xf32>
      %62 = vector.shape_cast %61 : vector<1x1x50x50xf32> to vector<50x50xf32>
      %c8 = arith.constant 8 : index
      %63 = memref.load %arg2[%c8] : memref<72xf32, #tpu.memory_space<smem>>
      %64 = vector.broadcast %63 : f32 to vector<50x50xf32>
      %65 = arith.mulf %64, %62 : vector<50x50xf32>
      %66 = arith.addf %59, %65 : vector<50x50xf32>
      %c0_30 = arith.constant 0 : index
      %67 = memref.load %arg3[%c0_30] : memref<8xf32, #tpu.memory_space<smem>>
      %68 = vector.broadcast %67 : f32 to vector<50x50xf32>
      %69 = arith.addf %66, %68 : vector<50x50xf32>
      %cst_31 = arith.constant 0.000000e+00 : f32
      %70 = vector.broadcast %cst_31 : f32 to vector<50x50xf32>
      %71 = arith.maximumf %69, %70 : vector<50x50xf32>
      %72 = vector.extract_strided_slice %71 {offsets = [0, 0], sizes = [49, 50], strides = [1, 1]} : vector<50x50xf32> to vector<49x50xf32>
      %73 = vector.extract_strided_slice %71 {offsets = [1, 0], sizes = [49, 50], strides = [1, 1]} : vector<50x50xf32> to vector<49x50xf32>
      %74 = arith.maximumf %72, %73 : vector<49x50xf32>
      %75 = vector.extract_strided_slice %74 {offsets = [0, 0], sizes = [49, 49], strides = [1, 1]} : vector<49x50xf32> to vector<49x49xf32>
      %76 = vector.extract_strided_slice %74 {offsets = [0, 1], sizes = [49, 49], strides = [1, 1]} : vector<49x50xf32> to vector<49x49xf32>
      %77 = arith.maximumf %75, %76 : vector<49x49xf32>
      %c0_32 = arith.constant 0 : index
      %c0_33 = arith.constant 0 : index
      %c0_34 = arith.constant 0 : index
      %c0_35 = arith.constant 0 : index
      %78 = vector.load %arg4[%c0_32, %c0_33, %c0_34, %c0_35] : memref<2x8x49x49xf32, #tpu.memory_space<vmem>>, vector<1x1x49x49xf32>
      %79 = vector.shape_cast %78 : vector<1x1x49x49xf32> to vector<49x49xf32>
      %80 = arith.mulf %77, %79 : vector<49x49xf32>
      %81 = arith.addf %1, %80 : vector<49x49xf32>
      %c1_36 = arith.constant 1 : index
      %c0_37 = arith.constant 0 : index
      %c0_38 = arith.constant 0 : index
      %c0_39 = arith.constant 0 : index
      %82 = vector.load %arg4[%c1_36, %c0_37, %c0_38, %c0_39] : memref<2x8x49x49xf32, #tpu.memory_space<vmem>>, vector<1x1x49x49xf32>
      %83 = vector.shape_cast %82 : vector<1x1x49x49xf32> to vector<49x49xf32>
      %84 = arith.mulf %77, %83 : vector<49x49xf32>
      %85 = arith.addf %2, %84 : vector<49x49xf32>
      %cst_40 = arith.constant 0.000000e+00 : f32
      %86 = vector.broadcast %cst_40 : f32 to vector<50x50xf32>
      %87 = arith.index_cast %arg7 : i32 to index
      %c0_41 = arith.constant 0 : index
      %c0_42 = arith.constant 0 : index
      %c0_43 = arith.constant 0 : index
      %88 = vector.load %arg1[%87, %c0_41, %c0_42, %c0_43] : memref<2x3x52x50xf32, #tpu.memory_space<vmem>>, vector<1x1x50x50xf32>
      %89 = vector.shape_cast %88 : vector<1x1x50x50xf32> to vector<50x50xf32>
      %c9 = arith.constant 9 : index
      %90 = memref.load %arg2[%c9] : memref<72xf32, #tpu.memory_space<smem>>
      %91 = vector.broadcast %90 : f32 to vector<50x50xf32>
      %92 = arith.mulf %91, %89 : vector<50x50xf32>
      %93 = arith.addf %86, %92 : vector<50x50xf32>
      %94 = arith.index_cast %arg7 : i32 to index
      %c1_44 = arith.constant 1 : index
      %c0_45 = arith.constant 0 : index
      %c0_46 = arith.constant 0 : index
      %95 = vector.load %arg1[%94, %c1_44, %c0_45, %c0_46] : memref<2x3x52x50xf32, #tpu.memory_space<vmem>>, vector<1x1x50x50xf32>
      %96 = vector.shape_cast %95 : vector<1x1x50x50xf32> to vector<50x50xf32>
      %c10 = arith.constant 10 : index
      %97 = memref.load %arg2[%c10] : memref<72xf32, #tpu.memory_space<smem>>
      %98 = vector.broadcast %97 : f32 to vector<50x50xf32>
      %99 = arith.mulf %98, %96 : vector<50x50xf32>
      %100 = arith.addf %93, %99 : vector<50x50xf32>
      %101 = arith.index_cast %arg7 : i32 to index
      %c2_47 = arith.constant 2 : index
      %c0_48 = arith.constant 0 : index
      %c0_49 = arith.constant 0 : index
      %102 = vector.load %arg1[%101, %c2_47, %c0_48, %c0_49] : memref<2x3x52x50xf32, #tpu.memory_space<vmem>>, vector<1x1x50x50xf32>
      %103 = vector.shape_cast %102 : vector<1x1x50x50xf32> to vector<50x50xf32>
      %c11 = arith.constant 11 : index
      %104 = memref.load %arg2[%c11] : memref<72xf32, #tpu.memory_space<smem>>
      %105 = vector.broadcast %104 : f32 to vector<50x50xf32>
      %106 = arith.mulf %105, %103 : vector<50x50xf32>
      %107 = arith.addf %100, %106 : vector<50x50xf32>
      %108 = arith.index_cast %arg7 : i32 to index
      %c0_50 = arith.constant 0 : index
      %c1_51 = arith.constant 1 : index
      %c0_52 = arith.constant 0 : index
      %109 = vector.load %arg1[%108, %c0_50, %c1_51, %c0_52] : memref<2x3x52x50xf32, #tpu.memory_space<vmem>>, vector<1x1x50x50xf32>
      %110 = vector.shape_cast %109 : vector<1x1x50x50xf32> to vector<50x50xf32>
      %c12 = arith.constant 12 : index
      %111 = memref.load %arg2[%c12] : memref<72xf32, #tpu.memory_space<smem>>
      %112 = vector.broadcast %111 : f32 to vector<50x50xf32>
      %113 = arith.mulf %112, %110 : vector<50x50xf32>
      %114 = arith.addf %107, %113 : vector<50x50xf32>
      %115 = arith.index_cast %arg7 : i32 to index
      %c1_53 = arith.constant 1 : index
      %c1_54 = arith.constant 1 : index
      %c0_55 = arith.constant 0 : index
      %116 = vector.load %arg1[%115, %c1_53, %c1_54, %c0_55] : memref<2x3x52x50xf32, #tpu.memory_space<vmem>>, vector<1x1x50x50xf32>
      %117 = vector.shape_cast %116 : vector<1x1x50x50xf32> to vector<50x50xf32>
      %c13 = arith.constant 13 : index
      %118 = memref.load %arg2[%c13] : memref<72xf32, #tpu.memory_space<smem>>
      %119 = vector.broadcast %118 : f32 to vector<50x50xf32>
      %120 = arith.mulf %119, %117 : vector<50x50xf32>
      %121 = arith.addf %114, %120 : vector<50x50xf32>
      %122 = arith.index_cast %arg7 : i32 to index
      %c2_56 = arith.constant 2 : index
      %c1_57 = arith.constant 1 : index
      %c0_58 = arith.constant 0 : index
      %123 = vector.load %arg1[%122, %c2_56, %c1_57, %c0_58] : memref<2x3x52x50xf32, #tpu.memory_space<vmem>>, vector<1x1x50x50xf32>
      %124 = vector.shape_cast %123 : vector<1x1x50x50xf32> to vector<50x50xf32>
      %c14 = arith.constant 14 : index
      %125 = memref.load %arg2[%c14] : memref<72xf32, #tpu.memory_space<smem>>
      %126 = vector.broadcast %125 : f32 to vector<50x50xf32>
      %127 = arith.mulf %126, %124 : vector<50x50xf32>
      %128 = arith.addf %121, %127 : vector<50x50xf32>
      %129 = arith.index_cast %arg7 : i32 to index
      %c0_59 = arith.constant 0 : index
      %c2_60 = arith.constant 2 : index
      %c0_61 = arith.constant 0 : index
      %130 = vector.load %arg1[%129, %c0_59, %c2_60, %c0_61] : memref<2x3x52x50xf32, #tpu.memory_space<vmem>>, vector<1x1x50x50xf32>
      %131 = vector.shape_cast %130 : vector<1x1x50x50xf32> to vector<50x50xf32>
      %c15 = arith.constant 15 : index
      %132 = memref.load %arg2[%c15] : memref<72xf32, #tpu.memory_space<smem>>
      %133 = vector.broadcast %132 : f32 to vector<50x50xf32>
      %134 = arith.mulf %133, %131 : vector<50x50xf32>
      %135 = arith.addf %128, %134 : vector<50x50xf32>
      %136 = arith.index_cast %arg7 : i32 to index
      %c1_62 = arith.constant 1 : index
      %c2_63 = arith.constant 2 : index
      %c0_64 = arith.constant 0 : index
      %137 = vector.load %arg1[%136, %c1_62, %c2_63, %c0_64] : memref<2x3x52x50xf32, #tpu.memory_space<vmem>>, vector<1x1x50x50xf32>
      %138 = vector.shape_cast %137 : vector<1x1x50x50xf32> to vector<50x50xf32>
      %c16 = arith.constant 16 : index
      %139 = memref.load %arg2[%c16] : memref<72xf32, #tpu.memory_space<smem>>
      %140 = vector.broadcast %139 : f32 to vector<50x50xf32>
      %141 = arith.mulf %140, %138 : vector<50x50xf32>
      %142 = arith.addf %135, %141 : vector<50x50xf32>
      %143 = arith.index_cast %arg7 : i32 to index
      %c2_65 = arith.constant 2 : index
      %c2_66 = arith.constant 2 : index
      %c0_67 = arith.constant 0 : index
      %144 = vector.load %arg1[%143, %c2_65, %c2_66, %c0_67] : memref<2x3x52x50xf32, #tpu.memory_space<vmem>>, vector<1x1x50x50xf32>
      %145 = vector.shape_cast %144 : vector<1x1x50x50xf32> to vector<50x50xf32>
      %c17 = arith.constant 17 : index
      %146 = memref.load %arg2[%c17] : memref<72xf32, #tpu.memory_space<smem>>
      %147 = vector.broadcast %146 : f32 to vector<50x50xf32>
      %148 = arith.mulf %147, %145 : vector<50x50xf32>
      %149 = arith.addf %142, %148 : vector<50x50xf32>
      %c1_68 = arith.constant 1 : index
      %150 = memref.load %arg3[%c1_68] : memref<8xf32, #tpu.memory_space<smem>>
      %151 = vector.broadcast %150 : f32 to vector<50x50xf32>
      %152 = arith.addf %149, %151 : vector<50x50xf32>
      %cst_69 = arith.constant 0.000000e+00 : f32
      %153 = vector.broadcast %cst_69 : f32 to vector<50x50xf32>
      %154 = arith.maximumf %152, %153 : vector<50x50xf32>
      %155 = vector.extract_strided_slice %154 {offsets = [0, 0], sizes = [49, 50], strides = [1, 1]} : vector<50x50xf32> to vector<49x50xf32>
      %156 = vector.extract_strided_slice %154 {offsets = [1, 0], sizes = [49, 50], strides = [1, 1]} : vector<50x50xf32> to vector<49x50xf32>
      %157 = arith.maximumf %155, %156 : vector<49x50xf32>
      %158 = vector.extract_strided_slice %157 {offsets = [0, 0], sizes = [49, 49], strides = [1, 1]} : vector<49x50xf32> to vector<49x49xf32>
      %159 = vector.extract_strided_slice %157 {offsets = [0, 1], sizes = [49, 49], strides = [1, 1]} : vector<49x50xf32> to vector<49x49xf32>
      %160 = arith.maximumf %158, %159 : vector<49x49xf32>
      %c0_70 = arith.constant 0 : index
      %c1_71 = arith.constant 1 : index
      %c0_72 = arith.constant 0 : index
      %c0_73 = arith.constant 0 : index
      %161 = vector.load %arg4[%c0_70, %c1_71, %c0_72, %c0_73] : memref<2x8x49x49xf32, #tpu.memory_space<vmem>>, vector<1x1x49x49xf32>
      %162 = vector.shape_cast %161 : vector<1x1x49x49xf32> to vector<49x49xf32>
      %163 = arith.mulf %160, %162 : vector<49x49xf32>
      %164 = arith.addf %81, %163 : vector<49x49xf32>
      %c1_74 = arith.constant 1 : index
      %c1_75 = arith.constant 1 : index
      %c0_76 = arith.constant 0 : index
      %c0_77 = arith.constant 0 : index
      %165 = vector.load %arg4[%c1_74, %c1_75, %c0_76, %c0_77] : memref<2x8x49x49xf32, #tpu.memory_space<vmem>>, vector<1x1x49x49xf32>
      %166 = vector.shape_cast %165 : vector<1x1x49x49xf32> to vector<49x49xf32>
      %167 = arith.mulf %160, %166 : vector<49x49xf32>
      %168 = arith.addf %85, %167 : vector<49x49xf32>
      %cst_78 = arith.constant 0.000000e+00 : f32
      %169 = vector.broadcast %cst_78 : f32 to vector<50x50xf32>
      %170 = arith.index_cast %arg7 : i32 to index
      %c0_79 = arith.constant 0 : index
      %c0_80 = arith.constant 0 : index
      %c0_81 = arith.constant 0 : index
      %171 = vector.load %arg1[%170, %c0_79, %c0_80, %c0_81] : memref<2x3x52x50xf32, #tpu.memory_space<vmem>>, vector<1x1x50x50xf32>
      %172 = vector.shape_cast %171 : vector<1x1x50x50xf32> to vector<50x50xf32>
      %c18 = arith.constant 18 : index
      %173 = memref.load %arg2[%c18] : memref<72xf32, #tpu.memory_space<smem>>
      %174 = vector.broadcast %173 : f32 to vector<50x50xf32>
      %175 = arith.mulf %174, %172 : vector<50x50xf32>
      %176 = arith.addf %169, %175 : vector<50x50xf32>
      %177 = arith.index_cast %arg7 : i32 to index
      %c1_82 = arith.constant 1 : index
      %c0_83 = arith.constant 0 : index
      %c0_84 = arith.constant 0 : index
      %178 = vector.load %arg1[%177, %c1_82, %c0_83, %c0_84] : memref<2x3x52x50xf32, #tpu.memory_space<vmem>>, vector<1x1x50x50xf32>
      %179 = vector.shape_cast %178 : vector<1x1x50x50xf32> to vector<50x50xf32>
      %c19 = arith.constant 19 : index
      %180 = memref.load %arg2[%c19] : memref<72xf32, #tpu.memory_space<smem>>
      %181 = vector.broadcast %180 : f32 to vector<50x50xf32>
      %182 = arith.mulf %181, %179 : vector<50x50xf32>
      %183 = arith.addf %176, %182 : vector<50x50xf32>
      %184 = arith.index_cast %arg7 : i32 to index
      %c2_85 = arith.constant 2 : index
      %c0_86 = arith.constant 0 : index
      %c0_87 = arith.constant 0 : index
      %185 = vector.load %arg1[%184, %c2_85, %c0_86, %c0_87] : memref<2x3x52x50xf32, #tpu.memory_space<vmem>>, vector<1x1x50x50xf32>
      %186 = vector.shape_cast %185 : vector<1x1x50x50xf32> to vector<50x50xf32>
      %c20 = arith.constant 20 : index
      %187 = memref.load %arg2[%c20] : memref<72xf32, #tpu.memory_space<smem>>
      %188 = vector.broadcast %187 : f32 to vector<50x50xf32>
      %189 = arith.mulf %188, %186 : vector<50x50xf32>
      %190 = arith.addf %183, %189 : vector<50x50xf32>
      %191 = arith.index_cast %arg7 : i32 to index
      %c0_88 = arith.constant 0 : index
      %c1_89 = arith.constant 1 : index
      %c0_90 = arith.constant 0 : index
      %192 = vector.load %arg1[%191, %c0_88, %c1_89, %c0_90] : memref<2x3x52x50xf32, #tpu.memory_space<vmem>>, vector<1x1x50x50xf32>
      %193 = vector.shape_cast %192 : vector<1x1x50x50xf32> to vector<50x50xf32>
      %c21 = arith.constant 21 : index
      %194 = memref.load %arg2[%c21] : memref<72xf32, #tpu.memory_space<smem>>
      %195 = vector.broadcast %194 : f32 to vector<50x50xf32>
      %196 = arith.mulf %195, %193 : vector<50x50xf32>
      %197 = arith.addf %190, %196 : vector<50x50xf32>
      %198 = arith.index_cast %arg7 : i32 to index
      %c1_91 = arith.constant 1 : index
      %c1_92 = arith.constant 1 : index
      %c0_93 = arith.constant 0 : index
      %199 = vector.load %arg1[%198, %c1_91, %c1_92, %c0_93] : memref<2x3x52x50xf32, #tpu.memory_space<vmem>>, vector<1x1x50x50xf32>
      %200 = vector.shape_cast %199 : vector<1x1x50x50xf32> to vector<50x50xf32>
      %c22 = arith.constant 22 : index
      %201 = memref.load %arg2[%c22] : memref<72xf32, #tpu.memory_space<smem>>
      %202 = vector.broadcast %201 : f32 to vector<50x50xf32>
      %203 = arith.mulf %202, %200 : vector<50x50xf32>
      %204 = arith.addf %197, %203 : vector<50x50xf32>
      %205 = arith.index_cast %arg7 : i32 to index
      %c2_94 = arith.constant 2 : index
      %c1_95 = arith.constant 1 : index
      %c0_96 = arith.constant 0 : index
      %206 = vector.load %arg1[%205, %c2_94, %c1_95, %c0_96] : memref<2x3x52x50xf32, #tpu.memory_space<vmem>>, vector<1x1x50x50xf32>
      %207 = vector.shape_cast %206 : vector<1x1x50x50xf32> to vector<50x50xf32>
      %c23 = arith.constant 23 : index
      %208 = memref.load %arg2[%c23] : memref<72xf32, #tpu.memory_space<smem>>
      %209 = vector.broadcast %208 : f32 to vector<50x50xf32>
      %210 = arith.mulf %209, %207 : vector<50x50xf32>
      %211 = arith.addf %204, %210 : vector<50x50xf32>
      %212 = arith.index_cast %arg7 : i32 to index
      %c0_97 = arith.constant 0 : index
      %c2_98 = arith.constant 2 : index
      %c0_99 = arith.constant 0 : index
      %213 = vector.load %arg1[%212, %c0_97, %c2_98, %c0_99] : memref<2x3x52x50xf32, #tpu.memory_space<vmem>>, vector<1x1x50x50xf32>
      %214 = vector.shape_cast %213 : vector<1x1x50x50xf32> to vector<50x50xf32>
      %c24 = arith.constant 24 : index
      %215 = memref.load %arg2[%c24] : memref<72xf32, #tpu.memory_space<smem>>
      %216 = vector.broadcast %215 : f32 to vector<50x50xf32>
      %217 = arith.mulf %216, %214 : vector<50x50xf32>
      %218 = arith.addf %211, %217 : vector<50x50xf32>
      %219 = arith.index_cast %arg7 : i32 to index
      %c1_100 = arith.constant 1 : index
      %c2_101 = arith.constant 2 : index
      %c0_102 = arith.constant 0 : index
      %220 = vector.load %arg1[%219, %c1_100, %c2_101, %c0_102] : memref<2x3x52x50xf32, #tpu.memory_space<vmem>>, vector<1x1x50x50xf32>
      %221 = vector.shape_cast %220 : vector<1x1x50x50xf32> to vector<50x50xf32>
      %c25 = arith.constant 25 : index
      %222 = memref.load %arg2[%c25] : memref<72xf32, #tpu.memory_space<smem>>
      %223 = vector.broadcast %222 : f32 to vector<50x50xf32>
      %224 = arith.mulf %223, %221 : vector<50x50xf32>
      %225 = arith.addf %218, %224 : vector<50x50xf32>
      %226 = arith.index_cast %arg7 : i32 to index
      %c2_103 = arith.constant 2 : index
      %c2_104 = arith.constant 2 : index
      %c0_105 = arith.constant 0 : index
      %227 = vector.load %arg1[%226, %c2_103, %c2_104, %c0_105] : memref<2x3x52x50xf32, #tpu.memory_space<vmem>>, vector<1x1x50x50xf32>
      %228 = vector.shape_cast %227 : vector<1x1x50x50xf32> to vector<50x50xf32>
      %c26 = arith.constant 26 : index
      %229 = memref.load %arg2[%c26] : memref<72xf32, #tpu.memory_space<smem>>
      %230 = vector.broadcast %229 : f32 to vector<50x50xf32>
      %231 = arith.mulf %230, %228 : vector<50x50xf32>
      %232 = arith.addf %225, %231 : vector<50x50xf32>
      %c2_106 = arith.constant 2 : index
      %233 = memref.load %arg3[%c2_106] : memref<8xf32, #tpu.memory_space<smem>>
      %234 = vector.broadcast %233 : f32 to vector<50x50xf32>
      %235 = arith.addf %232, %234 : vector<50x50xf32>
      %cst_107 = arith.constant 0.000000e+00 : f32
      %236 = vector.broadcast %cst_107 : f32 to vector<50x50xf32>
      %237 = arith.maximumf %235, %236 : vector<50x50xf32>
      %238 = vector.extract_strided_slice %237 {offsets = [0, 0], sizes = [49, 50], strides = [1, 1]} : vector<50x50xf32> to vector<49x50xf32>
      %239 = vector.extract_strided_slice %237 {offsets = [1, 0], sizes = [49, 50], strides = [1, 1]} : vector<50x50xf32> to vector<49x50xf32>
      %240 = arith.maximumf %238, %239 : vector<49x50xf32>
      %241 = vector.extract_strided_slice %240 {offsets = [0, 0], sizes = [49, 49], strides = [1, 1]} : vector<49x50xf32> to vector<49x49xf32>
      %242 = vector.extract_strided_slice %240 {offsets = [0, 1], sizes = [49, 49], strides = [1, 1]} : vector<49x50xf32> to vector<49x49xf32>
      %243 = arith.maximumf %241, %242 : vector<49x49xf32>
      %c0_108 = arith.constant 0 : index
      %c2_109 = arith.constant 2 : index
      %c0_110 = arith.constant 0 : index
      %c0_111 = arith.constant 0 : index
      %244 = vector.load %arg4[%c0_108, %c2_109, %c0_110, %c0_111] : memref<2x8x49x49xf32, #tpu.memory_space<vmem>>, vector<1x1x49x49xf32>
      %245 = vector.shape_cast %244 : vector<1x1x49x49xf32> to vector<49x49xf32>
      %246 = arith.mulf %243, %245 : vector<49x49xf32>
      %247 = arith.addf %164, %246 : vector<49x49xf32>
      %c1_112 = arith.constant 1 : index
      %c2_113 = arith.constant 2 : index
      %c0_114 = arith.constant 0 : index
      %c0_115 = arith.constant 0 : index
      %248 = vector.load %arg4[%c1_112, %c2_113, %c0_114, %c0_115] : memref<2x8x49x49xf32, #tpu.memory_space<vmem>>, vector<1x1x49x49xf32>
      %249 = vector.shape_cast %248 : vector<1x1x49x49xf32> to vector<49x49xf32>
      %250 = arith.mulf %243, %249 : vector<49x49xf32>
      %251 = arith.addf %168, %250 : vector<49x49xf32>
      %cst_116 = arith.constant 0.000000e+00 : f32
      %252 = vector.broadcast %cst_116 : f32 to vector<50x50xf32>
      %253 = arith.index_cast %arg7 : i32 to index
      %c0_117 = arith.constant 0 : index
      %c0_118 = arith.constant 0 : index
      %c0_119 = arith.constant 0 : index
      %254 = vector.load %arg1[%253, %c0_117, %c0_118, %c0_119] : memref<2x3x52x50xf32, #tpu.memory_space<vmem>>, vector<1x1x50x50xf32>
      %255 = vector.shape_cast %254 : vector<1x1x50x50xf32> to vector<50x50xf32>
      %c27 = arith.constant 27 : index
      %256 = memref.load %arg2[%c27] : memref<72xf32, #tpu.memory_space<smem>>
      %257 = vector.broadcast %256 : f32 to vector<50x50xf32>
      %258 = arith.mulf %257, %255 : vector<50x50xf32>
      %259 = arith.addf %252, %258 : vector<50x50xf32>
      %260 = arith.index_cast %arg7 : i32 to index
      %c1_120 = arith.constant 1 : index
      %c0_121 = arith.constant 0 : index
      %c0_122 = arith.constant 0 : index
      %261 = vector.load %arg1[%260, %c1_120, %c0_121, %c0_122] : memref<2x3x52x50xf32, #tpu.memory_space<vmem>>, vector<1x1x50x50xf32>
      %262 = vector.shape_cast %261 : vector<1x1x50x50xf32> to vector<50x50xf32>
      %c28 = arith.constant 28 : index
      %263 = memref.load %arg2[%c28] : memref<72xf32, #tpu.memory_space<smem>>
      %264 = vector.broadcast %263 : f32 to vector<50x50xf32>
      %265 = arith.mulf %264, %262 : vector<50x50xf32>
      %266 = arith.addf %259, %265 : vector<50x50xf32>
      %267 = arith.index_cast %arg7 : i32 to index
      %c2_123 = arith.constant 2 : index
      %c0_124 = arith.constant 0 : index
      %c0_125 = arith.constant 0 : index
      %268 = vector.load %arg1[%267, %c2_123, %c0_124, %c0_125] : memref<2x3x52x50xf32, #tpu.memory_space<vmem>>, vector<1x1x50x50xf32>
      %269 = vector.shape_cast %268 : vector<1x1x50x50xf32> to vector<50x50xf32>
      %c29 = arith.constant 29 : index
      %270 = memref.load %arg2[%c29] : memref<72xf32, #tpu.memory_space<smem>>
      %271 = vector.broadcast %270 : f32 to vector<50x50xf32>
      %272 = arith.mulf %271, %269 : vector<50x50xf32>
      %273 = arith.addf %266, %272 : vector<50x50xf32>
      %274 = arith.index_cast %arg7 : i32 to index
      %c0_126 = arith.constant 0 : index
      %c1_127 = arith.constant 1 : index
      %c0_128 = arith.constant 0 : index
      %275 = vector.load %arg1[%274, %c0_126, %c1_127, %c0_128] : memref<2x3x52x50xf32, #tpu.memory_space<vmem>>, vector<1x1x50x50xf32>
      %276 = vector.shape_cast %275 : vector<1x1x50x50xf32> to vector<50x50xf32>
      %c30 = arith.constant 30 : index
      %277 = memref.load %arg2[%c30] : memref<72xf32, #tpu.memory_space<smem>>
      %278 = vector.broadcast %277 : f32 to vector<50x50xf32>
      %279 = arith.mulf %278, %276 : vector<50x50xf32>
      %280 = arith.addf %273, %279 : vector<50x50xf32>
      %281 = arith.index_cast %arg7 : i32 to index
      %c1_129 = arith.constant 1 : index
      %c1_130 = arith.constant 1 : index
      %c0_131 = arith.constant 0 : index
      %282 = vector.load %arg1[%281, %c1_129, %c1_130, %c0_131] : memref<2x3x52x50xf32, #tpu.memory_space<vmem>>, vector<1x1x50x50xf32>
      %283 = vector.shape_cast %282 : vector<1x1x50x50xf32> to vector<50x50xf32>
      %c31 = arith.constant 31 : index
      %284 = memref.load %arg2[%c31] : memref<72xf32, #tpu.memory_space<smem>>
      %285 = vector.broadcast %284 : f32 to vector<50x50xf32>
      %286 = arith.mulf %285, %283 : vector<50x50xf32>
      %287 = arith.addf %280, %286 : vector<50x50xf32>
      %288 = arith.index_cast %arg7 : i32 to index
      %c2_132 = arith.constant 2 : index
      %c1_133 = arith.constant 1 : index
      %c0_134 = arith.constant 0 : index
      %289 = vector.load %arg1[%288, %c2_132, %c1_133, %c0_134] : memref<2x3x52x50xf32, #tpu.memory_space<vmem>>, vector<1x1x50x50xf32>
      %290 = vector.shape_cast %289 : vector<1x1x50x50xf32> to vector<50x50xf32>
      %c32 = arith.constant 32 : index
      %291 = memref.load %arg2[%c32] : memref<72xf32, #tpu.memory_space<smem>>
      %292 = vector.broadcast %291 : f32 to vector<50x50xf32>
      %293 = arith.mulf %292, %290 : vector<50x50xf32>
      %294 = arith.addf %287, %293 : vector<50x50xf32>
      %295 = arith.index_cast %arg7 : i32 to index
      %c0_135 = arith.constant 0 : index
      %c2_136 = arith.constant 2 : index
      %c0_137 = arith.constant 0 : index
      %296 = vector.load %arg1[%295, %c0_135, %c2_136, %c0_137] : memref<2x3x52x50xf32, #tpu.memory_space<vmem>>, vector<1x1x50x50xf32>
      %297 = vector.shape_cast %296 : vector<1x1x50x50xf32> to vector<50x50xf32>
      %c33 = arith.constant 33 : index
      %298 = memref.load %arg2[%c33] : memref<72xf32, #tpu.memory_space<smem>>
      %299 = vector.broadcast %298 : f32 to vector<50x50xf32>
      %300 = arith.mulf %299, %297 : vector<50x50xf32>
      %301 = arith.addf %294, %300 : vector<50x50xf32>
      %302 = arith.index_cast %arg7 : i32 to index
      %c1_138 = arith.constant 1 : index
      %c2_139 = arith.constant 2 : index
      %c0_140 = arith.constant 0 : index
      %303 = vector.load %arg1[%302, %c1_138, %c2_139, %c0_140] : memref<2x3x52x50xf32, #tpu.memory_space<vmem>>, vector<1x1x50x50xf32>
      %304 = vector.shape_cast %303 : vector<1x1x50x50xf32> to vector<50x50xf32>
      %c34 = arith.constant 34 : index
      %305 = memref.load %arg2[%c34] : memref<72xf32, #tpu.memory_space<smem>>
      %306 = vector.broadcast %305 : f32 to vector<50x50xf32>
      %307 = arith.mulf %306, %304 : vector<50x50xf32>
      %308 = arith.addf %301, %307 : vector<50x50xf32>
      %309 = arith.index_cast %arg7 : i32 to index
      %c2_141 = arith.constant 2 : index
      %c2_142 = arith.constant 2 : index
      %c0_143 = arith.constant 0 : index
      %310 = vector.load %arg1[%309, %c2_141, %c2_142, %c0_143] : memref<2x3x52x50xf32, #tpu.memory_space<vmem>>, vector<1x1x50x50xf32>
      %311 = vector.shape_cast %310 : vector<1x1x50x50xf32> to vector<50x50xf32>
      %c35 = arith.constant 35 : index
      %312 = memref.load %arg2[%c35] : memref<72xf32, #tpu.memory_space<smem>>
      %313 = vector.broadcast %312 : f32 to vector<50x50xf32>
      %314 = arith.mulf %313, %311 : vector<50x50xf32>
      %315 = arith.addf %308, %314 : vector<50x50xf32>
      %c3_144 = arith.constant 3 : index
      %316 = memref.load %arg3[%c3_144] : memref<8xf32, #tpu.memory_space<smem>>
      %317 = vector.broadcast %316 : f32 to vector<50x50xf32>
      %318 = arith.addf %315, %317 : vector<50x50xf32>
      %cst_145 = arith.constant 0.000000e+00 : f32
      %319 = vector.broadcast %cst_145 : f32 to vector<50x50xf32>
      %320 = arith.maximumf %318, %319 : vector<50x50xf32>
      %321 = vector.extract_strided_slice %320 {offsets = [0, 0], sizes = [49, 50], strides = [1, 1]} : vector<50x50xf32> to vector<49x50xf32>
      %322 = vector.extract_strided_slice %320 {offsets = [1, 0], sizes = [49, 50], strides = [1, 1]} : vector<50x50xf32> to vector<49x50xf32>
      %323 = arith.maximumf %321, %322 : vector<49x50xf32>
      %324 = vector.extract_strided_slice %323 {offsets = [0, 0], sizes = [49, 49], strides = [1, 1]} : vector<49x50xf32> to vector<49x49xf32>
      %325 = vector.extract_strided_slice %323 {offsets = [0, 1], sizes = [49, 49], strides = [1, 1]} : vector<49x50xf32> to vector<49x49xf32>
      %326 = arith.maximumf %324, %325 : vector<49x49xf32>
      %c0_146 = arith.constant 0 : index
      %c3_147 = arith.constant 3 : index
      %c0_148 = arith.constant 0 : index
      %c0_149 = arith.constant 0 : index
      %327 = vector.load %arg4[%c0_146, %c3_147, %c0_148, %c0_149] : memref<2x8x49x49xf32, #tpu.memory_space<vmem>>, vector<1x1x49x49xf32>
      %328 = vector.shape_cast %327 : vector<1x1x49x49xf32> to vector<49x49xf32>
      %329 = arith.mulf %326, %328 : vector<49x49xf32>
      %330 = arith.addf %247, %329 : vector<49x49xf32>
      %c1_150 = arith.constant 1 : index
      %c3_151 = arith.constant 3 : index
      %c0_152 = arith.constant 0 : index
      %c0_153 = arith.constant 0 : index
      %331 = vector.load %arg4[%c1_150, %c3_151, %c0_152, %c0_153] : memref<2x8x49x49xf32, #tpu.memory_space<vmem>>, vector<1x1x49x49xf32>
      %332 = vector.shape_cast %331 : vector<1x1x49x49xf32> to vector<49x49xf32>
      %333 = arith.mulf %326, %332 : vector<49x49xf32>
      %334 = arith.addf %251, %333 : vector<49x49xf32>
      %cst_154 = arith.constant 0.000000e+00 : f32
      %335 = vector.broadcast %cst_154 : f32 to vector<50x50xf32>
      %336 = arith.index_cast %arg7 : i32 to index
      %c0_155 = arith.constant 0 : index
      %c0_156 = arith.constant 0 : index
      %c0_157 = arith.constant 0 : index
      %337 = vector.load %arg1[%336, %c0_155, %c0_156, %c0_157] : memref<2x3x52x50xf32, #tpu.memory_space<vmem>>, vector<1x1x50x50xf32>
      %338 = vector.shape_cast %337 : vector<1x1x50x50xf32> to vector<50x50xf32>
      %c36 = arith.constant 36 : index
      %339 = memref.load %arg2[%c36] : memref<72xf32, #tpu.memory_space<smem>>
      %340 = vector.broadcast %339 : f32 to vector<50x50xf32>
      %341 = arith.mulf %340, %338 : vector<50x50xf32>
      %342 = arith.addf %335, %341 : vector<50x50xf32>
      %343 = arith.index_cast %arg7 : i32 to index
      %c1_158 = arith.constant 1 : index
      %c0_159 = arith.constant 0 : index
      %c0_160 = arith.constant 0 : index
      %344 = vector.load %arg1[%343, %c1_158, %c0_159, %c0_160] : memref<2x3x52x50xf32, #tpu.memory_space<vmem>>, vector<1x1x50x50xf32>
      %345 = vector.shape_cast %344 : vector<1x1x50x50xf32> to vector<50x50xf32>
      %c37 = arith.constant 37 : index
      %346 = memref.load %arg2[%c37] : memref<72xf32, #tpu.memory_space<smem>>
      %347 = vector.broadcast %346 : f32 to vector<50x50xf32>
      %348 = arith.mulf %347, %345 : vector<50x50xf32>
      %349 = arith.addf %342, %348 : vector<50x50xf32>
      %350 = arith.index_cast %arg7 : i32 to index
      %c2_161 = arith.constant 2 : index
      %c0_162 = arith.constant 0 : index
      %c0_163 = arith.constant 0 : index
      %351 = vector.load %arg1[%350, %c2_161, %c0_162, %c0_163] : memref<2x3x52x50xf32, #tpu.memory_space<vmem>>, vector<1x1x50x50xf32>
      %352 = vector.shape_cast %351 : vector<1x1x50x50xf32> to vector<50x50xf32>
      %c38 = arith.constant 38 : index
      %353 = memref.load %arg2[%c38] : memref<72xf32, #tpu.memory_space<smem>>
      %354 = vector.broadcast %353 : f32 to vector<50x50xf32>
      %355 = arith.mulf %354, %352 : vector<50x50xf32>
      %356 = arith.addf %349, %355 : vector<50x50xf32>
      %357 = arith.index_cast %arg7 : i32 to index
      %c0_164 = arith.constant 0 : index
      %c1_165 = arith.constant 1 : index
      %c0_166 = arith.constant 0 : index
      %358 = vector.load %arg1[%357, %c0_164, %c1_165, %c0_166] : memref<2x3x52x50xf32, #tpu.memory_space<vmem>>, vector<1x1x50x50xf32>
      %359 = vector.shape_cast %358 : vector<1x1x50x50xf32> to vector<50x50xf32>
      %c39 = arith.constant 39 : index
      %360 = memref.load %arg2[%c39] : memref<72xf32, #tpu.memory_space<smem>>
      %361 = vector.broadcast %360 : f32 to vector<50x50xf32>
      %362 = arith.mulf %361, %359 : vector<50x50xf32>
      %363 = arith.addf %356, %362 : vector<50x50xf32>
      %364 = arith.index_cast %arg7 : i32 to index
      %c1_167 = arith.constant 1 : index
      %c1_168 = arith.constant 1 : index
      %c0_169 = arith.constant 0 : index
      %365 = vector.load %arg1[%364, %c1_167, %c1_168, %c0_169] : memref<2x3x52x50xf32, #tpu.memory_space<vmem>>, vector<1x1x50x50xf32>
      %366 = vector.shape_cast %365 : vector<1x1x50x50xf32> to vector<50x50xf32>
      %c40 = arith.constant 40 : index
      %367 = memref.load %arg2[%c40] : memref<72xf32, #tpu.memory_space<smem>>
      %368 = vector.broadcast %367 : f32 to vector<50x50xf32>
      %369 = arith.mulf %368, %366 : vector<50x50xf32>
      %370 = arith.addf %363, %369 : vector<50x50xf32>
      %371 = arith.index_cast %arg7 : i32 to index
      %c2_170 = arith.constant 2 : index
      %c1_171 = arith.constant 1 : index
      %c0_172 = arith.constant 0 : index
      %372 = vector.load %arg1[%371, %c2_170, %c1_171, %c0_172] : memref<2x3x52x50xf32, #tpu.memory_space<vmem>>, vector<1x1x50x50xf32>
      %373 = vector.shape_cast %372 : vector<1x1x50x50xf32> to vector<50x50xf32>
      %c41 = arith.constant 41 : index
      %374 = memref.load %arg2[%c41] : memref<72xf32, #tpu.memory_space<smem>>
      %375 = vector.broadcast %374 : f32 to vector<50x50xf32>
      %376 = arith.mulf %375, %373 : vector<50x50xf32>
      %377 = arith.addf %370, %376 : vector<50x50xf32>
      %378 = arith.index_cast %arg7 : i32 to index
      %c0_173 = arith.constant 0 : index
      %c2_174 = arith.constant 2 : index
      %c0_175 = arith.constant 0 : index
      %379 = vector.load %arg1[%378, %c0_173, %c2_174, %c0_175] : memref<2x3x52x50xf32, #tpu.memory_space<vmem>>, vector<1x1x50x50xf32>
      %380 = vector.shape_cast %379 : vector<1x1x50x50xf32> to vector<50x50xf32>
      %c42 = arith.constant 42 : index
      %381 = memref.load %arg2[%c42] : memref<72xf32, #tpu.memory_space<smem>>
      %382 = vector.broadcast %381 : f32 to vector<50x50xf32>
      %383 = arith.mulf %382, %380 : vector<50x50xf32>
      %384 = arith.addf %377, %383 : vector<50x50xf32>
      %385 = arith.index_cast %arg7 : i32 to index
      %c1_176 = arith.constant 1 : index
      %c2_177 = arith.constant 2 : index
      %c0_178 = arith.constant 0 : index
      %386 = vector.load %arg1[%385, %c1_176, %c2_177, %c0_178] : memref<2x3x52x50xf32, #tpu.memory_space<vmem>>, vector<1x1x50x50xf32>
      %387 = vector.shape_cast %386 : vector<1x1x50x50xf32> to vector<50x50xf32>
      %c43 = arith.constant 43 : index
      %388 = memref.load %arg2[%c43] : memref<72xf32, #tpu.memory_space<smem>>
      %389 = vector.broadcast %388 : f32 to vector<50x50xf32>
      %390 = arith.mulf %389, %387 : vector<50x50xf32>
      %391 = arith.addf %384, %390 : vector<50x50xf32>
      %392 = arith.index_cast %arg7 : i32 to index
      %c2_179 = arith.constant 2 : index
      %c2_180 = arith.constant 2 : index
      %c0_181 = arith.constant 0 : index
      %393 = vector.load %arg1[%392, %c2_179, %c2_180, %c0_181] : memref<2x3x52x50xf32, #tpu.memory_space<vmem>>, vector<1x1x50x50xf32>
      %394 = vector.shape_cast %393 : vector<1x1x50x50xf32> to vector<50x50xf32>
      %c44 = arith.constant 44 : index
      %395 = memref.load %arg2[%c44] : memref<72xf32, #tpu.memory_space<smem>>
      %396 = vector.broadcast %395 : f32 to vector<50x50xf32>
      %397 = arith.mulf %396, %394 : vector<50x50xf32>
      %398 = arith.addf %391, %397 : vector<50x50xf32>
      %c4_182 = arith.constant 4 : index
      %399 = memref.load %arg3[%c4_182] : memref<8xf32, #tpu.memory_space<smem>>
      %400 = vector.broadcast %399 : f32 to vector<50x50xf32>
      %401 = arith.addf %398, %400 : vector<50x50xf32>
      %cst_183 = arith.constant 0.000000e+00 : f32
      %402 = vector.broadcast %cst_183 : f32 to vector<50x50xf32>
      %403 = arith.maximumf %401, %402 : vector<50x50xf32>
      %404 = vector.extract_strided_slice %403 {offsets = [0, 0], sizes = [49, 50], strides = [1, 1]} : vector<50x50xf32> to vector<49x50xf32>
      %405 = vector.extract_strided_slice %403 {offsets = [1, 0], sizes = [49, 50], strides = [1, 1]} : vector<50x50xf32> to vector<49x50xf32>
      %406 = arith.maximumf %404, %405 : vector<49x50xf32>
      %407 = vector.extract_strided_slice %406 {offsets = [0, 0], sizes = [49, 49], strides = [1, 1]} : vector<49x50xf32> to vector<49x49xf32>
      %408 = vector.extract_strided_slice %406 {offsets = [0, 1], sizes = [49, 49], strides = [1, 1]} : vector<49x50xf32> to vector<49x49xf32>
      %409 = arith.maximumf %407, %408 : vector<49x49xf32>
      %c0_184 = arith.constant 0 : index
      %c4_185 = arith.constant 4 : index
      %c0_186 = arith.constant 0 : index
      %c0_187 = arith.constant 0 : index
      %410 = vector.load %arg4[%c0_184, %c4_185, %c0_186, %c0_187] : memref<2x8x49x49xf32, #tpu.memory_space<vmem>>, vector<1x1x49x49xf32>
      %411 = vector.shape_cast %410 : vector<1x1x49x49xf32> to vector<49x49xf32>
      %412 = arith.mulf %409, %411 : vector<49x49xf32>
      %413 = arith.addf %330, %412 : vector<49x49xf32>
      %c1_188 = arith.constant 1 : index
      %c4_189 = arith.constant 4 : index
      %c0_190 = arith.constant 0 : index
      %c0_191 = arith.constant 0 : index
      %414 = vector.load %arg4[%c1_188, %c4_189, %c0_190, %c0_191] : memref<2x8x49x49xf32, #tpu.memory_space<vmem>>, vector<1x1x49x49xf32>
      %415 = vector.shape_cast %414 : vector<1x1x49x49xf32> to vector<49x49xf32>
      %416 = arith.mulf %409, %415 : vector<49x49xf32>
      %417 = arith.addf %334, %416 : vector<49x49xf32>
      %cst_192 = arith.constant 0.000000e+00 : f32
      %418 = vector.broadcast %cst_192 : f32 to vector<50x50xf32>
      %419 = arith.index_cast %arg7 : i32 to index
      %c0_193 = arith.constant 0 : index
      %c0_194 = arith.constant 0 : index
      %c0_195 = arith.constant 0 : index
      %420 = vector.load %arg1[%419, %c0_193, %c0_194, %c0_195] : memref<2x3x52x50xf32, #tpu.memory_space<vmem>>, vector<1x1x50x50xf32>
      %421 = vector.shape_cast %420 : vector<1x1x50x50xf32> to vector<50x50xf32>
      %c45 = arith.constant 45 : index
      %422 = memref.load %arg2[%c45] : memref<72xf32, #tpu.memory_space<smem>>
      %423 = vector.broadcast %422 : f32 to vector<50x50xf32>
      %424 = arith.mulf %423, %421 : vector<50x50xf32>
      %425 = arith.addf %418, %424 : vector<50x50xf32>
      %426 = arith.index_cast %arg7 : i32 to index
      %c1_196 = arith.constant 1 : index
      %c0_197 = arith.constant 0 : index
      %c0_198 = arith.constant 0 : index
      %427 = vector.load %arg1[%426, %c1_196, %c0_197, %c0_198] : memref<2x3x52x50xf32, #tpu.memory_space<vmem>>, vector<1x1x50x50xf32>
      %428 = vector.shape_cast %427 : vector<1x1x50x50xf32> to vector<50x50xf32>
      %c46 = arith.constant 46 : index
      %429 = memref.load %arg2[%c46] : memref<72xf32, #tpu.memory_space<smem>>
      %430 = vector.broadcast %429 : f32 to vector<50x50xf32>
      %431 = arith.mulf %430, %428 : vector<50x50xf32>
      %432 = arith.addf %425, %431 : vector<50x50xf32>
      %433 = arith.index_cast %arg7 : i32 to index
      %c2_199 = arith.constant 2 : index
      %c0_200 = arith.constant 0 : index
      %c0_201 = arith.constant 0 : index
      %434 = vector.load %arg1[%433, %c2_199, %c0_200, %c0_201] : memref<2x3x52x50xf32, #tpu.memory_space<vmem>>, vector<1x1x50x50xf32>
      %435 = vector.shape_cast %434 : vector<1x1x50x50xf32> to vector<50x50xf32>
      %c47 = arith.constant 47 : index
      %436 = memref.load %arg2[%c47] : memref<72xf32, #tpu.memory_space<smem>>
      %437 = vector.broadcast %436 : f32 to vector<50x50xf32>
      %438 = arith.mulf %437, %435 : vector<50x50xf32>
      %439 = arith.addf %432, %438 : vector<50x50xf32>
      %440 = arith.index_cast %arg7 : i32 to index
      %c0_202 = arith.constant 0 : index
      %c1_203 = arith.constant 1 : index
      %c0_204 = arith.constant 0 : index
      %441 = vector.load %arg1[%440, %c0_202, %c1_203, %c0_204] : memref<2x3x52x50xf32, #tpu.memory_space<vmem>>, vector<1x1x50x50xf32>
      %442 = vector.shape_cast %441 : vector<1x1x50x50xf32> to vector<50x50xf32>
      %c48 = arith.constant 48 : index
      %443 = memref.load %arg2[%c48] : memref<72xf32, #tpu.memory_space<smem>>
      %444 = vector.broadcast %443 : f32 to vector<50x50xf32>
      %445 = arith.mulf %444, %442 : vector<50x50xf32>
      %446 = arith.addf %439, %445 : vector<50x50xf32>
      %447 = arith.index_cast %arg7 : i32 to index
      %c1_205 = arith.constant 1 : index
      %c1_206 = arith.constant 1 : index
      %c0_207 = arith.constant 0 : index
      %448 = vector.load %arg1[%447, %c1_205, %c1_206, %c0_207] : memref<2x3x52x50xf32, #tpu.memory_space<vmem>>, vector<1x1x50x50xf32>
      %449 = vector.shape_cast %448 : vector<1x1x50x50xf32> to vector<50x50xf32>
      %c49 = arith.constant 49 : index
      %450 = memref.load %arg2[%c49] : memref<72xf32, #tpu.memory_space<smem>>
      %451 = vector.broadcast %450 : f32 to vector<50x50xf32>
      %452 = arith.mulf %451, %449 : vector<50x50xf32>
      %453 = arith.addf %446, %452 : vector<50x50xf32>
      %454 = arith.index_cast %arg7 : i32 to index
      %c2_208 = arith.constant 2 : index
      %c1_209 = arith.constant 1 : index
      %c0_210 = arith.constant 0 : index
      %455 = vector.load %arg1[%454, %c2_208, %c1_209, %c0_210] : memref<2x3x52x50xf32, #tpu.memory_space<vmem>>, vector<1x1x50x50xf32>
      %456 = vector.shape_cast %455 : vector<1x1x50x50xf32> to vector<50x50xf32>
      %c50 = arith.constant 50 : index
      %457 = memref.load %arg2[%c50] : memref<72xf32, #tpu.memory_space<smem>>
      %458 = vector.broadcast %457 : f32 to vector<50x50xf32>
      %459 = arith.mulf %458, %456 : vector<50x50xf32>
      %460 = arith.addf %453, %459 : vector<50x50xf32>
      %461 = arith.index_cast %arg7 : i32 to index
      %c0_211 = arith.constant 0 : index
      %c2_212 = arith.constant 2 : index
      %c0_213 = arith.constant 0 : index
      %462 = vector.load %arg1[%461, %c0_211, %c2_212, %c0_213] : memref<2x3x52x50xf32, #tpu.memory_space<vmem>>, vector<1x1x50x50xf32>
      %463 = vector.shape_cast %462 : vector<1x1x50x50xf32> to vector<50x50xf32>
      %c51 = arith.constant 51 : index
      %464 = memref.load %arg2[%c51] : memref<72xf32, #tpu.memory_space<smem>>
      %465 = vector.broadcast %464 : f32 to vector<50x50xf32>
      %466 = arith.mulf %465, %463 : vector<50x50xf32>
      %467 = arith.addf %460, %466 : vector<50x50xf32>
      %468 = arith.index_cast %arg7 : i32 to index
      %c1_214 = arith.constant 1 : index
      %c2_215 = arith.constant 2 : index
      %c0_216 = arith.constant 0 : index
      %469 = vector.load %arg1[%468, %c1_214, %c2_215, %c0_216] : memref<2x3x52x50xf32, #tpu.memory_space<vmem>>, vector<1x1x50x50xf32>
      %470 = vector.shape_cast %469 : vector<1x1x50x50xf32> to vector<50x50xf32>
      %c52 = arith.constant 52 : index
      %471 = memref.load %arg2[%c52] : memref<72xf32, #tpu.memory_space<smem>>
      %472 = vector.broadcast %471 : f32 to vector<50x50xf32>
      %473 = arith.mulf %472, %470 : vector<50x50xf32>
      %474 = arith.addf %467, %473 : vector<50x50xf32>
      %475 = arith.index_cast %arg7 : i32 to index
      %c2_217 = arith.constant 2 : index
      %c2_218 = arith.constant 2 : index
      %c0_219 = arith.constant 0 : index
      %476 = vector.load %arg1[%475, %c2_217, %c2_218, %c0_219] : memref<2x3x52x50xf32, #tpu.memory_space<vmem>>, vector<1x1x50x50xf32>
      %477 = vector.shape_cast %476 : vector<1x1x50x50xf32> to vector<50x50xf32>
      %c53 = arith.constant 53 : index
      %478 = memref.load %arg2[%c53] : memref<72xf32, #tpu.memory_space<smem>>
      %479 = vector.broadcast %478 : f32 to vector<50x50xf32>
      %480 = arith.mulf %479, %477 : vector<50x50xf32>
      %481 = arith.addf %474, %480 : vector<50x50xf32>
      %c5_220 = arith.constant 5 : index
      %482 = memref.load %arg3[%c5_220] : memref<8xf32, #tpu.memory_space<smem>>
      %483 = vector.broadcast %482 : f32 to vector<50x50xf32>
      %484 = arith.addf %481, %483 : vector<50x50xf32>
      %cst_221 = arith.constant 0.000000e+00 : f32
      %485 = vector.broadcast %cst_221 : f32 to vector<50x50xf32>
      %486 = arith.maximumf %484, %485 : vector<50x50xf32>
      %487 = vector.extract_strided_slice %486 {offsets = [0, 0], sizes = [49, 50], strides = [1, 1]} : vector<50x50xf32> to vector<49x50xf32>
      %488 = vector.extract_strided_slice %486 {offsets = [1, 0], sizes = [49, 50], strides = [1, 1]} : vector<50x50xf32> to vector<49x50xf32>
      %489 = arith.maximumf %487, %488 : vector<49x50xf32>
      %490 = vector.extract_strided_slice %489 {offsets = [0, 0], sizes = [49, 49], strides = [1, 1]} : vector<49x50xf32> to vector<49x49xf32>
      %491 = vector.extract_strided_slice %489 {offsets = [0, 1], sizes = [49, 49], strides = [1, 1]} : vector<49x50xf32> to vector<49x49xf32>
      %492 = arith.maximumf %490, %491 : vector<49x49xf32>
      %c0_222 = arith.constant 0 : index
      %c5_223 = arith.constant 5 : index
      %c0_224 = arith.constant 0 : index
      %c0_225 = arith.constant 0 : index
      %493 = vector.load %arg4[%c0_222, %c5_223, %c0_224, %c0_225] : memref<2x8x49x49xf32, #tpu.memory_space<vmem>>, vector<1x1x49x49xf32>
      %494 = vector.shape_cast %493 : vector<1x1x49x49xf32> to vector<49x49xf32>
      %495 = arith.mulf %492, %494 : vector<49x49xf32>
      %496 = arith.addf %413, %495 : vector<49x49xf32>
      %c1_226 = arith.constant 1 : index
      %c5_227 = arith.constant 5 : index
      %c0_228 = arith.constant 0 : index
      %c0_229 = arith.constant 0 : index
      %497 = vector.load %arg4[%c1_226, %c5_227, %c0_228, %c0_229] : memref<2x8x49x49xf32, #tpu.memory_space<vmem>>, vector<1x1x49x49xf32>
      %498 = vector.shape_cast %497 : vector<1x1x49x49xf32> to vector<49x49xf32>
      %499 = arith.mulf %492, %498 : vector<49x49xf32>
      %500 = arith.addf %417, %499 : vector<49x49xf32>
      %cst_230 = arith.constant 0.000000e+00 : f32
      %501 = vector.broadcast %cst_230 : f32 to vector<50x50xf32>
      %502 = arith.index_cast %arg7 : i32 to index
      %c0_231 = arith.constant 0 : index
      %c0_232 = arith.constant 0 : index
      %c0_233 = arith.constant 0 : index
      %503 = vector.load %arg1[%502, %c0_231, %c0_232, %c0_233] : memref<2x3x52x50xf32, #tpu.memory_space<vmem>>, vector<1x1x50x50xf32>
      %504 = vector.shape_cast %503 : vector<1x1x50x50xf32> to vector<50x50xf32>
      %c54 = arith.constant 54 : index
      %505 = memref.load %arg2[%c54] : memref<72xf32, #tpu.memory_space<smem>>
      %506 = vector.broadcast %505 : f32 to vector<50x50xf32>
      %507 = arith.mulf %506, %504 : vector<50x50xf32>
      %508 = arith.addf %501, %507 : vector<50x50xf32>
      %509 = arith.index_cast %arg7 : i32 to index
      %c1_234 = arith.constant 1 : index
      %c0_235 = arith.constant 0 : index
      %c0_236 = arith.constant 0 : index
      %510 = vector.load %arg1[%509, %c1_234, %c0_235, %c0_236] : memref<2x3x52x50xf32, #tpu.memory_space<vmem>>, vector<1x1x50x50xf32>
      %511 = vector.shape_cast %510 : vector<1x1x50x50xf32> to vector<50x50xf32>
      %c55 = arith.constant 55 : index
      %512 = memref.load %arg2[%c55] : memref<72xf32, #tpu.memory_space<smem>>
      %513 = vector.broadcast %512 : f32 to vector<50x50xf32>
      %514 = arith.mulf %513, %511 : vector<50x50xf32>
      %515 = arith.addf %508, %514 : vector<50x50xf32>
      %516 = arith.index_cast %arg7 : i32 to index
      %c2_237 = arith.constant 2 : index
      %c0_238 = arith.constant 0 : index
      %c0_239 = arith.constant 0 : index
      %517 = vector.load %arg1[%516, %c2_237, %c0_238, %c0_239] : memref<2x3x52x50xf32, #tpu.memory_space<vmem>>, vector<1x1x50x50xf32>
      %518 = vector.shape_cast %517 : vector<1x1x50x50xf32> to vector<50x50xf32>
      %c56 = arith.constant 56 : index
      %519 = memref.load %arg2[%c56] : memref<72xf32, #tpu.memory_space<smem>>
      %520 = vector.broadcast %519 : f32 to vector<50x50xf32>
      %521 = arith.mulf %520, %518 : vector<50x50xf32>
      %522 = arith.addf %515, %521 : vector<50x50xf32>
      %523 = arith.index_cast %arg7 : i32 to index
      %c0_240 = arith.constant 0 : index
      %c1_241 = arith.constant 1 : index
      %c0_242 = arith.constant 0 : index
      %524 = vector.load %arg1[%523, %c0_240, %c1_241, %c0_242] : memref<2x3x52x50xf32, #tpu.memory_space<vmem>>, vector<1x1x50x50xf32>
      %525 = vector.shape_cast %524 : vector<1x1x50x50xf32> to vector<50x50xf32>
      %c57 = arith.constant 57 : index
      %526 = memref.load %arg2[%c57] : memref<72xf32, #tpu.memory_space<smem>>
      %527 = vector.broadcast %526 : f32 to vector<50x50xf32>
      %528 = arith.mulf %527, %525 : vector<50x50xf32>
      %529 = arith.addf %522, %528 : vector<50x50xf32>
      %530 = arith.index_cast %arg7 : i32 to index
      %c1_243 = arith.constant 1 : index
      %c1_244 = arith.constant 1 : index
      %c0_245 = arith.constant 0 : index
      %531 = vector.load %arg1[%530, %c1_243, %c1_244, %c0_245] : memref<2x3x52x50xf32, #tpu.memory_space<vmem>>, vector<1x1x50x50xf32>
      %532 = vector.shape_cast %531 : vector<1x1x50x50xf32> to vector<50x50xf32>
      %c58 = arith.constant 58 : index
      %533 = memref.load %arg2[%c58] : memref<72xf32, #tpu.memory_space<smem>>
      %534 = vector.broadcast %533 : f32 to vector<50x50xf32>
      %535 = arith.mulf %534, %532 : vector<50x50xf32>
      %536 = arith.addf %529, %535 : vector<50x50xf32>
      %537 = arith.index_cast %arg7 : i32 to index
      %c2_246 = arith.constant 2 : index
      %c1_247 = arith.constant 1 : index
      %c0_248 = arith.constant 0 : index
      %538 = vector.load %arg1[%537, %c2_246, %c1_247, %c0_248] : memref<2x3x52x50xf32, #tpu.memory_space<vmem>>, vector<1x1x50x50xf32>
      %539 = vector.shape_cast %538 : vector<1x1x50x50xf32> to vector<50x50xf32>
      %c59 = arith.constant 59 : index
      %540 = memref.load %arg2[%c59] : memref<72xf32, #tpu.memory_space<smem>>
      %541 = vector.broadcast %540 : f32 to vector<50x50xf32>
      %542 = arith.mulf %541, %539 : vector<50x50xf32>
      %543 = arith.addf %536, %542 : vector<50x50xf32>
      %544 = arith.index_cast %arg7 : i32 to index
      %c0_249 = arith.constant 0 : index
      %c2_250 = arith.constant 2 : index
      %c0_251 = arith.constant 0 : index
      %545 = vector.load %arg1[%544, %c0_249, %c2_250, %c0_251] : memref<2x3x52x50xf32, #tpu.memory_space<vmem>>, vector<1x1x50x50xf32>
      %546 = vector.shape_cast %545 : vector<1x1x50x50xf32> to vector<50x50xf32>
      %c60 = arith.constant 60 : index
      %547 = memref.load %arg2[%c60] : memref<72xf32, #tpu.memory_space<smem>>
      %548 = vector.broadcast %547 : f32 to vector<50x50xf32>
      %549 = arith.mulf %548, %546 : vector<50x50xf32>
      %550 = arith.addf %543, %549 : vector<50x50xf32>
      %551 = arith.index_cast %arg7 : i32 to index
      %c1_252 = arith.constant 1 : index
      %c2_253 = arith.constant 2 : index
      %c0_254 = arith.constant 0 : index
      %552 = vector.load %arg1[%551, %c1_252, %c2_253, %c0_254] : memref<2x3x52x50xf32, #tpu.memory_space<vmem>>, vector<1x1x50x50xf32>
      %553 = vector.shape_cast %552 : vector<1x1x50x50xf32> to vector<50x50xf32>
      %c61 = arith.constant 61 : index
      %554 = memref.load %arg2[%c61] : memref<72xf32, #tpu.memory_space<smem>>
      %555 = vector.broadcast %554 : f32 to vector<50x50xf32>
      %556 = arith.mulf %555, %553 : vector<50x50xf32>
      %557 = arith.addf %550, %556 : vector<50x50xf32>
      %558 = arith.index_cast %arg7 : i32 to index
      %c2_255 = arith.constant 2 : index
      %c2_256 = arith.constant 2 : index
      %c0_257 = arith.constant 0 : index
      %559 = vector.load %arg1[%558, %c2_255, %c2_256, %c0_257] : memref<2x3x52x50xf32, #tpu.memory_space<vmem>>, vector<1x1x50x50xf32>
      %560 = vector.shape_cast %559 : vector<1x1x50x50xf32> to vector<50x50xf32>
      %c62 = arith.constant 62 : index
      %561 = memref.load %arg2[%c62] : memref<72xf32, #tpu.memory_space<smem>>
      %562 = vector.broadcast %561 : f32 to vector<50x50xf32>
      %563 = arith.mulf %562, %560 : vector<50x50xf32>
      %564 = arith.addf %557, %563 : vector<50x50xf32>
      %c6_258 = arith.constant 6 : index
      %565 = memref.load %arg3[%c6_258] : memref<8xf32, #tpu.memory_space<smem>>
      %566 = vector.broadcast %565 : f32 to vector<50x50xf32>
      %567 = arith.addf %564, %566 : vector<50x50xf32>
      %cst_259 = arith.constant 0.000000e+00 : f32
      %568 = vector.broadcast %cst_259 : f32 to vector<50x50xf32>
      %569 = arith.maximumf %567, %568 : vector<50x50xf32>
      %570 = vector.extract_strided_slice %569 {offsets = [0, 0], sizes = [49, 50], strides = [1, 1]} : vector<50x50xf32> to vector<49x50xf32>
      %571 = vector.extract_strided_slice %569 {offsets = [1, 0], sizes = [49, 50], strides = [1, 1]} : vector<50x50xf32> to vector<49x50xf32>
      %572 = arith.maximumf %570, %571 : vector<49x50xf32>
      %573 = vector.extract_strided_slice %572 {offsets = [0, 0], sizes = [49, 49], strides = [1, 1]} : vector<49x50xf32> to vector<49x49xf32>
      %574 = vector.extract_strided_slice %572 {offsets = [0, 1], sizes = [49, 49], strides = [1, 1]} : vector<49x50xf32> to vector<49x49xf32>
      %575 = arith.maximumf %573, %574 : vector<49x49xf32>
      %c0_260 = arith.constant 0 : index
      %c6_261 = arith.constant 6 : index
      %c0_262 = arith.constant 0 : index
      %c0_263 = arith.constant 0 : index
      %576 = vector.load %arg4[%c0_260, %c6_261, %c0_262, %c0_263] : memref<2x8x49x49xf32, #tpu.memory_space<vmem>>, vector<1x1x49x49xf32>
      %577 = vector.shape_cast %576 : vector<1x1x49x49xf32> to vector<49x49xf32>
      %578 = arith.mulf %575, %577 : vector<49x49xf32>
      %579 = arith.addf %496, %578 : vector<49x49xf32>
      %c1_264 = arith.constant 1 : index
      %c6_265 = arith.constant 6 : index
      %c0_266 = arith.constant 0 : index
      %c0_267 = arith.constant 0 : index
      %580 = vector.load %arg4[%c1_264, %c6_265, %c0_266, %c0_267] : memref<2x8x49x49xf32, #tpu.memory_space<vmem>>, vector<1x1x49x49xf32>
      %581 = vector.shape_cast %580 : vector<1x1x49x49xf32> to vector<49x49xf32>
      %582 = arith.mulf %575, %581 : vector<49x49xf32>
      %583 = arith.addf %500, %582 : vector<49x49xf32>
      %cst_268 = arith.constant 0.000000e+00 : f32
      %584 = vector.broadcast %cst_268 : f32 to vector<50x50xf32>
      %585 = arith.index_cast %arg7 : i32 to index
      %c0_269 = arith.constant 0 : index
      %c0_270 = arith.constant 0 : index
      %c0_271 = arith.constant 0 : index
      %586 = vector.load %arg1[%585, %c0_269, %c0_270, %c0_271] : memref<2x3x52x50xf32, #tpu.memory_space<vmem>>, vector<1x1x50x50xf32>
      %587 = vector.shape_cast %586 : vector<1x1x50x50xf32> to vector<50x50xf32>
      %c63 = arith.constant 63 : index
      %588 = memref.load %arg2[%c63] : memref<72xf32, #tpu.memory_space<smem>>
      %589 = vector.broadcast %588 : f32 to vector<50x50xf32>
      %590 = arith.mulf %589, %587 : vector<50x50xf32>
      %591 = arith.addf %584, %590 : vector<50x50xf32>
      %592 = arith.index_cast %arg7 : i32 to index
      %c1_272 = arith.constant 1 : index
      %c0_273 = arith.constant 0 : index
      %c0_274 = arith.constant 0 : index
      %593 = vector.load %arg1[%592, %c1_272, %c0_273, %c0_274] : memref<2x3x52x50xf32, #tpu.memory_space<vmem>>, vector<1x1x50x50xf32>
      %594 = vector.shape_cast %593 : vector<1x1x50x50xf32> to vector<50x50xf32>
      %c64 = arith.constant 64 : index
      %595 = memref.load %arg2[%c64] : memref<72xf32, #tpu.memory_space<smem>>
      %596 = vector.broadcast %595 : f32 to vector<50x50xf32>
      %597 = arith.mulf %596, %594 : vector<50x50xf32>
      %598 = arith.addf %591, %597 : vector<50x50xf32>
      %599 = arith.index_cast %arg7 : i32 to index
      %c2_275 = arith.constant 2 : index
      %c0_276 = arith.constant 0 : index
      %c0_277 = arith.constant 0 : index
      %600 = vector.load %arg1[%599, %c2_275, %c0_276, %c0_277] : memref<2x3x52x50xf32, #tpu.memory_space<vmem>>, vector<1x1x50x50xf32>
      %601 = vector.shape_cast %600 : vector<1x1x50x50xf32> to vector<50x50xf32>
      %c65 = arith.constant 65 : index
      %602 = memref.load %arg2[%c65] : memref<72xf32, #tpu.memory_space<smem>>
      %603 = vector.broadcast %602 : f32 to vector<50x50xf32>
      %604 = arith.mulf %603, %601 : vector<50x50xf32>
      %605 = arith.addf %598, %604 : vector<50x50xf32>
      %606 = arith.index_cast %arg7 : i32 to index
      %c0_278 = arith.constant 0 : index
      %c1_279 = arith.constant 1 : index
      %c0_280 = arith.constant 0 : index
      %607 = vector.load %arg1[%606, %c0_278, %c1_279, %c0_280] : memref<2x3x52x50xf32, #tpu.memory_space<vmem>>, vector<1x1x50x50xf32>
      %608 = vector.shape_cast %607 : vector<1x1x50x50xf32> to vector<50x50xf32>
      %c66 = arith.constant 66 : index
      %609 = memref.load %arg2[%c66] : memref<72xf32, #tpu.memory_space<smem>>
      %610 = vector.broadcast %609 : f32 to vector<50x50xf32>
      %611 = arith.mulf %610, %608 : vector<50x50xf32>
      %612 = arith.addf %605, %611 : vector<50x50xf32>
      %613 = arith.index_cast %arg7 : i32 to index
      %c1_281 = arith.constant 1 : index
      %c1_282 = arith.constant 1 : index
      %c0_283 = arith.constant 0 : index
      %614 = vector.load %arg1[%613, %c1_281, %c1_282, %c0_283] : memref<2x3x52x50xf32, #tpu.memory_space<vmem>>, vector<1x1x50x50xf32>
      %615 = vector.shape_cast %614 : vector<1x1x50x50xf32> to vector<50x50xf32>
      %c67 = arith.constant 67 : index
      %616 = memref.load %arg2[%c67] : memref<72xf32, #tpu.memory_space<smem>>
      %617 = vector.broadcast %616 : f32 to vector<50x50xf32>
      %618 = arith.mulf %617, %615 : vector<50x50xf32>
      %619 = arith.addf %612, %618 : vector<50x50xf32>
      %620 = arith.index_cast %arg7 : i32 to index
      %c2_284 = arith.constant 2 : index
      %c1_285 = arith.constant 1 : index
      %c0_286 = arith.constant 0 : index
      %621 = vector.load %arg1[%620, %c2_284, %c1_285, %c0_286] : memref<2x3x52x50xf32, #tpu.memory_space<vmem>>, vector<1x1x50x50xf32>
      %622 = vector.shape_cast %621 : vector<1x1x50x50xf32> to vector<50x50xf32>
      %c68 = arith.constant 68 : index
      %623 = memref.load %arg2[%c68] : memref<72xf32, #tpu.memory_space<smem>>
      %624 = vector.broadcast %623 : f32 to vector<50x50xf32>
      %625 = arith.mulf %624, %622 : vector<50x50xf32>
      %626 = arith.addf %619, %625 : vector<50x50xf32>
      %627 = arith.index_cast %arg7 : i32 to index
      %c0_287 = arith.constant 0 : index
      %c2_288 = arith.constant 2 : index
      %c0_289 = arith.constant 0 : index
      %628 = vector.load %arg1[%627, %c0_287, %c2_288, %c0_289] : memref<2x3x52x50xf32, #tpu.memory_space<vmem>>, vector<1x1x50x50xf32>
      %629 = vector.shape_cast %628 : vector<1x1x50x50xf32> to vector<50x50xf32>
      %c69 = arith.constant 69 : index
      %630 = memref.load %arg2[%c69] : memref<72xf32, #tpu.memory_space<smem>>
      %631 = vector.broadcast %630 : f32 to vector<50x50xf32>
      %632 = arith.mulf %631, %629 : vector<50x50xf32>
      %633 = arith.addf %626, %632 : vector<50x50xf32>
      %634 = arith.index_cast %arg7 : i32 to index
      %c1_290 = arith.constant 1 : index
      %c2_291 = arith.constant 2 : index
      %c0_292 = arith.constant 0 : index
      %635 = vector.load %arg1[%634, %c1_290, %c2_291, %c0_292] : memref<2x3x52x50xf32, #tpu.memory_space<vmem>>, vector<1x1x50x50xf32>
      %636 = vector.shape_cast %635 : vector<1x1x50x50xf32> to vector<50x50xf32>
      %c70 = arith.constant 70 : index
      %637 = memref.load %arg2[%c70] : memref<72xf32, #tpu.memory_space<smem>>
      %638 = vector.broadcast %637 : f32 to vector<50x50xf32>
      %639 = arith.mulf %638, %636 : vector<50x50xf32>
      %640 = arith.addf %633, %639 : vector<50x50xf32>
      %641 = arith.index_cast %arg7 : i32 to index
      %c2_293 = arith.constant 2 : index
      %c2_294 = arith.constant 2 : index
      %c0_295 = arith.constant 0 : index
      %642 = vector.load %arg1[%641, %c2_293, %c2_294, %c0_295] : memref<2x3x52x50xf32, #tpu.memory_space<vmem>>, vector<1x1x50x50xf32>
      %643 = vector.shape_cast %642 : vector<1x1x50x50xf32> to vector<50x50xf32>
      %c71 = arith.constant 71 : index
      %644 = memref.load %arg2[%c71] : memref<72xf32, #tpu.memory_space<smem>>
      %645 = vector.broadcast %644 : f32 to vector<50x50xf32>
      %646 = arith.mulf %645, %643 : vector<50x50xf32>
      %647 = arith.addf %640, %646 : vector<50x50xf32>
      %c7_296 = arith.constant 7 : index
      %648 = memref.load %arg3[%c7_296] : memref<8xf32, #tpu.memory_space<smem>>
      %649 = vector.broadcast %648 : f32 to vector<50x50xf32>
      %650 = arith.addf %647, %649 : vector<50x50xf32>
      %cst_297 = arith.constant 0.000000e+00 : f32
      %651 = vector.broadcast %cst_297 : f32 to vector<50x50xf32>
      %652 = arith.maximumf %650, %651 : vector<50x50xf32>
      %653 = vector.extract_strided_slice %652 {offsets = [0, 0], sizes = [49, 50], strides = [1, 1]} : vector<50x50xf32> to vector<49x50xf32>
      %654 = vector.extract_strided_slice %652 {offsets = [1, 0], sizes = [49, 50], strides = [1, 1]} : vector<50x50xf32> to vector<49x50xf32>
      %655 = arith.maximumf %653, %654 : vector<49x50xf32>
      %656 = vector.extract_strided_slice %655 {offsets = [0, 0], sizes = [49, 49], strides = [1, 1]} : vector<49x50xf32> to vector<49x49xf32>
      %657 = vector.extract_strided_slice %655 {offsets = [0, 1], sizes = [49, 49], strides = [1, 1]} : vector<49x50xf32> to vector<49x49xf32>
      %658 = arith.maximumf %656, %657 : vector<49x49xf32>
      %c0_298 = arith.constant 0 : index
      %c7_299 = arith.constant 7 : index
      %c0_300 = arith.constant 0 : index
      %c0_301 = arith.constant 0 : index
      %659 = vector.load %arg4[%c0_298, %c7_299, %c0_300, %c0_301] : memref<2x8x49x49xf32, #tpu.memory_space<vmem>>, vector<1x1x49x49xf32>
      %660 = vector.shape_cast %659 : vector<1x1x49x49xf32> to vector<49x49xf32>
      %661 = arith.mulf %658, %660 : vector<49x49xf32>
      %662 = arith.addf %579, %661 : vector<49x49xf32>
      %c1_302 = arith.constant 1 : index
      %c7_303 = arith.constant 7 : index
      %c0_304 = arith.constant 0 : index
      %c0_305 = arith.constant 0 : index
      %663 = vector.load %arg4[%c1_302, %c7_303, %c0_304, %c0_305] : memref<2x8x49x49xf32, #tpu.memory_space<vmem>>, vector<1x1x49x49xf32>
      %664 = vector.shape_cast %663 : vector<1x1x49x49xf32> to vector<49x49xf32>
      %665 = arith.mulf %658, %664 : vector<49x49xf32>
      %666 = arith.addf %583, %665 : vector<49x49xf32>
      %cst_306 = arith.constant dense<0.000000e+00> : vector<49xf32>
      %667 = vector.multi_reduction <add>, %662, %cst_306 [1] : vector<49x49xf32> to vector<49xf32>
      %668 = vector.shape_cast %667 : vector<49xf32> to vector<49x1xf32>
      %cst_307 = arith.constant dense<0.000000e+00> : vector<1xf32>
      %669 = vector.multi_reduction <add>, %668, %cst_307 [0] : vector<49x1xf32> to vector<1xf32>
      %670 = vector.shape_cast %669 : vector<1xf32> to vector<1x1xf32>
      %cst_308 = arith.constant dense<0.000000e+00> : vector<49xf32>
      %671 = vector.multi_reduction <add>, %666, %cst_308 [1] : vector<49x49xf32> to vector<49xf32>
      %672 = vector.shape_cast %671 : vector<49xf32> to vector<49x1xf32>
      %cst_309 = arith.constant dense<0.000000e+00> : vector<1xf32>
      %673 = vector.multi_reduction <add>, %672, %cst_309 [0] : vector<49x1xf32> to vector<1xf32>
      %674 = vector.shape_cast %673 : vector<1xf32> to vector<1x1xf32>
      %675 = tpu.iota {dimensions = array<i32: 1>} : vector<1x2xi32>
      %c0_i32_310 = arith.constant 0 : i32
      %676 = vector.broadcast %c0_i32_310 : i32 to vector<1x2xi32>
      %677 = arith.cmpi eq, %675, %676 : vector<1x2xi32>
      %c0_311 = arith.constant 0 : index
      %678 = memref.load %arg5[%c0_311] : memref<2xf32, #tpu.memory_space<smem>>
      %679 = vector.broadcast %678 : f32 to vector<1x1xf32>
      %680 = arith.addf %670, %679 : vector<1x1xf32>
      %c1_312 = arith.constant 1 : index
      %681 = memref.load %arg5[%c1_312] : memref<2xf32, #tpu.memory_space<smem>>
      %682 = vector.broadcast %681 : f32 to vector<1x1xf32>
      %683 = arith.addf %674, %682 : vector<1x1xf32>
      %684 = vector.shape_cast %680 : vector<1x1xf32> to vector<1x1xf32>
      %685 = vector.broadcast %684 : vector<1x1xf32> to vector<1x2xf32>
      %686 = vector.shape_cast %683 : vector<1x1xf32> to vector<1x1xf32>
      %687 = vector.broadcast %686 : vector<1x1xf32> to vector<1x2xf32>
      %688 = arith.select %677, %685, %687 : vector<1x2xi1>, vector<1x2xf32>
      %689 = arith.index_cast %arg7 : i32 to index
      %c0_313 = arith.constant 0 : index
      %690 = vector.load %arg6[%689, %c0_313] : memref<2x2xf32, #tpu.memory_space<vmem>>, vector<1x2xf32>
      tpu.vector_store %arg6[%689, %c0_313], %688 {strides = array<i32>} : memref<2x2xf32, #tpu.memory_space<vmem>>, vector<1x2xf32>,
    }
    %c2_i32_0 = arith.constant 2 : i32
    return
  }
  func.func @transform_0(%arg0: i32) -> (i32, i32, i32, i32) {
    %c0_i32 = arith.constant 0 : i32
    %c0_i32_0 = arith.constant 0 : i32
    %c0_i32_1 = arith.constant 0 : i32
    %c0_i32_2 = arith.constant 0 : i32
    return %arg0, %c0_i32, %c0_i32_0, %c0_i32_1 : i32, i32, i32, i32
  }
  func.func @transform_1(%arg0: i32) -> i32 {
    %c0_i32 = arith.constant 0 : i32
    %c0_i32_0 = arith.constant 0 : i32
    return %c0_i32 : i32
  }
  func.func @transform_2(%arg0: i32) -> i32 {
    %c0_i32 = arith.constant 0 : i32
    %c0_i32_0 = arith.constant 0 : i32
    return %c0_i32 : i32
  }
  func.func @transform_3(%arg0: i32) -> (i32, i32, i32, i32) {
    %c0_i32 = arith.constant 0 : i32
    %c0_i32_0 = arith.constant 0 : i32
    %c0_i32_1 = arith.constant 0 : i32
    %c0_i32_2 = arith.constant 0 : i32
    %c0_i32_3 = arith.constant 0 : i32
    return %c0_i32, %c0_i32_0, %c0_i32_1, %c0_i32_2 : i32, i32, i32, i32
  }
  func.func @transform_4(%arg0: i32) -> i32 {
    %c0_i32 = arith.constant 0 : i32
    %c0_i32_0 = arith.constant 0 : i32
    return %c0_i32 : i32
  }
  func.func @transform_5(%arg0: i32) -> (i32, i32) {
    %c0_i32 = arith.constant 0 : i32
    %c0_i32_0 = arith.constant 0 : i32
    return %arg0, %c0_i32 : i32, i32
  }
}

</mosaic_0001>

<bundles_post_ra>
// kernel: nn_forward.1
= control target key start
LH: loop header
LB: loop body
LE: loop exit
PB: predicated region body
PF: predicated region fallthrough
CT: control target
= control target key end

     0   :  { %10 = vsyncpa [#allocation4], 0  ;;  %s6003_s0 = inlined_call_operand.vmem [shape: f32[2,3,52,50], index: 0, kind: input, shape index: {}]   ;;  %s6004_s1 = inlined_call_operand.vmem [shape: f32[72], index: 1, kind: input, shape index: {}]   ;;  %s6005_s2 = inlined_call_operand.vmem [shape: f32[8], index: 2, kind: input, shape index: {}]   ;;  %s6006_s3 = inlined_call_operand.vmem [shape: f32[2,8,49,49], index: 3, kind: input, shape index: {}]   ;;  %s6007_s4 = inlined_call_operand.vmem [shape: f32[2], index: 4, kind: input, shape index: {}]   ;;  %s6008_s5 = inlined_call_operand.hbm [shape: f32[2,2], index: 5, kind: output, shape index: {}]  }
   0x1   :  { %11 = vsyncpa [#allocation6], 0  ;;  %s31_s20 = sshll.u32 %s6005_s2, 4  ;;  %s32_s20 = int_to_ptr.vmem [resolvable:$true] %s31_s20 }
   0x2   :  { %12 = vsyncpa [#allocation3], 0  ;;  %s21_s23 = sshll.u32 %s6004_s1, 4  ;;  %s2768_s24 = scalar_lea.vmem %s32_s20, 16  ;;  %s22_s23 = int_to_ptr.vmem [resolvable:$true] %s21_s23 }
   0x3   :  { %p2769_p0 = scmp.ne.s32.totalorder %s32_s20, %s2768_s24  ;;  %p2773_p1 = scmp.lt.s32.totalorder %s32_s20, %s32_s20 }
   0x4   :  { %p2774_p2 = scmp.lt.s32.totalorder %s2768_s24, %s2768_s24 }
   0x6   :  { %p2775_p3 = por %p2774_p2, %p2773_p1 }
   0x8   :  { %p2776_p4 = pnand %p2775_p3, %p2769_p0 }
   0xa   :  { %2779 = shalt.err (!%p2776_p4)
}
   0xb   :  { %s2838_s25 = smov [#allocation5]   ;;  %s2780_s26 = scalar_lea.vmem %s22_s23, 16 }
   0xc   :  { %34 = dma.vmem_to_smem %s32_s20, 16, %s2838_s25, [#allocation6]  }
   0xd   :  { %p2781_p5 = scmp.ne.s32.totalorder %s22_s23, %s2780_s26  ;;  %p2785_p6 = scmp.lt.s32.totalorder %s22_s23, %s22_s23 }
   0xe   :  { %p2786_p7 = scmp.lt.s32.totalorder %s2780_s26, %s2780_s26 }
  0x10   :  { %p2787_p8 = por %p2786_p7, %p2785_p6 }
  0x12   :  { %p2788_p9 = pnand %p2787_p8, %p2781_p5 }
  0x14   :  { %2791 = shalt.err (!%p2788_p9)
}
  0x15   :  { %s2839_s2 = smov [#allocation2]   ;;  %s43_s28 = sshll.u32 %s6007_s4, 4  ;;  %s44_s28 = int_to_ptr.vmem [resolvable:$true] %s43_s28 }
  0x16   :  { %24 = dma.vmem_to_smem %s22_s23, 16, %s2839_s2, [#allocation4]  }
  0x17   :  { %s2792_s29 = scalar_lea.vmem %s44_s28, 16  ;;  %p2797_p11 = scmp.lt.s32.totalorder %s44_s28, %s44_s28 }
  0x18   :  { %p2793_p10 = scmp.ne.s32.totalorder %s44_s28, %s2792_s29  ;;  %p2798_p12 = scmp.lt.s32.totalorder %s2792_s29, %s2792_s29 }
  0x1a   :  { %p2799_p13 = por %p2798_p12, %p2797_p11 }
  0x1c   :  { %p2800_p0 = pnand %p2799_p13, %p2793_p10 }
  0x1e   :  { %2803 = shalt.err (!%p2800_p0)
}
  0x1f   :  { %s2840_s30 = smov [#allocation7]  }
  0x20   :  { %46 = dma.vmem_to_smem %s44_s28, 16, %s2840_s30, [#allocation6]  }
  0x21   :  { %2828 = dma.done.wait [#allocation4], 16  }
  0x22   :  { %2829 = vsyncadd [#allocation4], 4294967280 }
  0x23   :  { %2830 = dma.done.wait [#allocation6], 32  }
  0x24   :  { %2831 = vsyncadd [#allocation6], 4294967264 }
  0x25   :  { %56 = sfence }
  0x26   :  { %s2882_s6 = smov 0  }
  0x27 LB: > { %s2487_s4 = sld [smem:[#allocation2 + $0x9]]  ;;  %s63_s7 = smul.u32 168, %s2836_s6  ;;  %vm299_vm0 = vcmask 1046528   ;;  %vm2316_vm1 = vcmask 400384   ;;  %vm2335_vm2 = vcmask 393216   ;;  %vm2344_vm3 = vcmask 1040384   ;;  %s2836_s6 = sphi %s2882_s6, %s62_s6  }
  0x28   : > { %s2488_s8 = sld [smem:[#allocation2 + $0xa]]  ;;  %s2841_s28 = smov 127   ;;  %vm2398_vm5 = vcmask 8192  }
  0x29   : > { %s2489_s9 = sld [smem:[#allocation2 + $0xb]]  ;;  %s2891_s12 = scalar_lea.vmem %s6003_s0, %s63_s7 }
  0x2a   : > { %s2490_s13 = sld [smem:[#allocation2 + $0xc]]  ;;  %v2894_v0 = vld [vmem:[%s2891_s12] sm:$0xff]  ;;  %v2897_v1 = vld [vmem:[%s2891_s12 + $0x8] sm:$0xff]  ;;  %v2902_v2 = vld [vmem:[%s2891_s12 + $0x38] sm:$0xff] }
  0x2b   : > { %6456 = vst [vmem:[#allocation12_spill] sm:$0xff] %v2894_v0  ;;  %s2899_s14 = sld [smem:[#allocation2 + $0xd]]  ;;  %6457 = vst [vmem:[#allocation13_spill] sm:$0xff] %v2902_v2  ;;  %v2905_v3 = vld [vmem:[%s2891_s12 + $0x40] sm:$0xff]  ;;  %v2910_v4 = vld [vmem:[%s2891_s12 + $0x70] sm:$0xff] }
  0x2c   : > { %s2907_s15 = sld [smem:[#allocation2 + $0xe]]  ;;  %6458 = vst [vmem:[#allocation14_spill] sm:$0xff] %v2910_v4  ;;  %v2913_v5 = vld [vmem:[%s2891_s12 + $0x78] sm:$0xff]  ;;  %v2920_v7 = vld [vmem:[%s2891_s12 + $0x1] sm:$0xff]  ;;  %v2923_v8 = vld [vmem:[%s2891_s12 + $0x9] sm:$0xff] }
  0x2d   : > { %v2915_v6 = vstv %s2487_s4  ;;  %s2917_s16 = sld [smem:[#allocation2 + $0xf]]  ;;  %6460 = vst [vmem:[#allocation16_spill] sm:$0xff] %v2920_v7  ;;  %v2942_v15 = vld [vmem:[%s2891_s12 + $0x39] sm:$0xff]  ;;  %v2945_v16 = vld [vmem:[%s2891_s12 + $0x41] sm:$0xff]  ;;  %v2948_v17 = vld [vmem:[%s2891_s12 + $0x71] sm:$0xff] }
  0x2e   : > { %6459 = vst [vmem:[#allocation15_spill] sm:$0xff] %v2915_v6  ;;  %v407_v9 = vmul.f32 %v2915_v6, %v2894_v0  ;;  %v408_v10 = vmul.f32 %v2915_v6, %v2897_v1  ;;  %v2929_v11 = vstv %s2488_s8  ;;  %s2931_s17 = sld [smem:[#allocation2 + $0x10]]  ;;  %6463 = vst [vmem:[#allocation19_spill] sm:$0xff] %v2942_v15  ;;  %v2959_v21 = vld [vmem:[%s2891_s12 + $0x79] sm:$0xff]  ;;  %v2968_v26 = vld [vmem:[%s2891_s12 + $0x10] sm:$0xff] }
  0x2f   : > { %6461 = vst [vmem:[#allocation17_spill] sm:$0xff] %v2929_v11  ;;  %v423_v12 = vmul.f32 %v2902_v2, %v2929_v11  ;;  %v424_v13 = vmul.f32 %v2905_v3, %v2929_v11  ;;  %v2937_v14 = vstv %s2489_s9  ;;  %s2939_s18 = sld [smem:[#allocation2 + $0x11]]  ;;  %6464 = vst [vmem:[#allocation20_spill] sm:$0xff] %v2948_v17  ;;  %v2971_v27 = vld [vmem:[%s2891_s12 + $0x48] sm:$0xff]  ;;  %v409_v32 = vmul.f32 %v2915_v6, %v2968_v26  ;;  %v2992_v34 = vld [vmem:[%s2891_s12 + $0x3a] sm:$0xff] }
  0x30   : > { %6462 = vst [vmem:[#allocation18_spill] sm:$0xff] %v2937_v14  ;;  %v439_v18 = vmul.f32 %v2910_v4, %v2937_v14  ;;  %v440_v19 = vmul.f32 %v2913_v5, %v2937_v14  ;;  %v2954_v20 = vstv %s2490_s13  ;;  %s2956_s19 = sld [smem:[#allocation5 + $0x1]]  ;;  %6466 = vst [vmem:[#allocation22_spill] sm:$0xff] %v2968_v26  ;;  %v2974_v28 = vld [vmem:[%s2891_s12 + $0x2] sm:$0xff]  ;;  %v2977_v29 = vld [vmem:[%s2891_s12 + $0xa] sm:$0xff]  ;;  %v425_v33 = vmul.f32 %v2971_v27, %v2929_v11 }
  0x31   : > { %6465 = vst [vmem:[#allocation21_spill] sm:$0xff] %v2954_v20  ;;  %v430_v22 = vadd.f32 %v423_v12, %v407_v9  ;;  %v431_v23 = vadd.f32 %v424_v13, %v408_v10  ;;  %v455_v24 = vmul.f32 %v2954_v20, %v2920_v7  ;;  %v456_v25 = vmul.f32 %v2954_v20, %v2923_v8  ;;  %s2965_s20 = sld [smem:[#allocation2]]  ;;  %v2995_v35 = vld [vmem:[%s2891_s12 + $0x42] sm:$0xff]  ;;  %v3004_v40 = vld [vmem:[%s2891_s12 + $0x72] sm:$0xff]  ;;  %v3007_v41 = vld [vmem:[%s2891_s12 + $0x7a] sm:$0xff] }
  0x32   : > { %6467 = vst [vmem:[#allocation23_spill] sm:$0xff] %v2971_v27  ;;  %6468 = vst [vmem:[#allocation24_spill] sm:$0xff] %v2974_v28  ;;  %v2980_v30 = vstv %s2899_s14  ;;  %v2983_v31 = vstv %s2907_s15  ;;  %s2985_s21 = sld [smem:[#allocation2 + $0x1]]  ;;  %v3026_v50 = vld [vmem:[%s2891_s12 + $0x80] sm:$0xff]  ;;  %v432_v61 = vadd.f32 %v425_v33, %v409_v32 }
  0x33   : > { %6469 = vst [vmem:[#allocation25_spill] sm:$0xff] %v2977_v29  ;;  %6470 = vst [vmem:[#allocation26_spill] sm:$0xff] %v2980_v30  ;;  %v446_v36 = vadd.f32 %v439_v18, %v430_v22  ;;  %v447_v37 = vadd.f32 %v440_v19, %v431_v23  ;;  %v471_v38 = vmul.f32 %v2942_v15, %v2980_v30  ;;  %s3001_s22 = sld [smem:[#allocation2 + $0x2]]  ;;  %v3014_v44 = vstv %s2917_s16 }
  0x34   : > { %6471 = vst [vmem:[#allocation27_spill] sm:$0xff] %v2983_v31  ;;  %6472 = vst [vmem:[#allocation28_spill] sm:$0xff] %v2992_v34  ;;  %v472_v39 = vmul.f32 %v2945_v16, %v2980_v30  ;;  %v487_v42 = vmul.f32 %v2948_v17, %v2983_v31  ;;  %v488_v43 = vmul.f32 %v2959_v21, %v2983_v31  ;;  %v3017_v45 = vstv %s2931_s17  ;;  %s2446_s23 = sld [smem:[#allocation2 + $0x3]] }
  0x35   : > { %6473 = vst [vmem:[#allocation29_spill] sm:$0xff] %v2995_v35  ;;  %6474 = vst [vmem:[#allocation30_spill] sm:$0xff] %v3004_v40  ;;  %v462_v46 = vadd.f32 %v455_v24, %v446_v36  ;;  %v463_v47 = vadd.f32 %v456_v25, %v447_v37  ;;  %v503_v48 = vmul.f32 %v3014_v44, %v2974_v28  ;;  %s3023_s24 = sld [smem:[#allocation2 + $0x4]]  ;;  %v3033_v53 = vstv %s2939_s18 }
  0x36   : > { %6475 = vst [vmem:[#allocation31_spill] sm:$0xff] %v3007_v41  ;;  %6476 = vst [vmem:[#allocation32_spill] sm:$0xff] %v3014_v44  ;;  %v504_v49 = vmul.f32 %v3014_v44, %v2977_v29  ;;  %v519_v51 = vmul.f32 %v2992_v34, %v3017_v45  ;;  %v520_v52 = vmul.f32 %v2995_v35, %v3017_v45  ;;  %v3036_v54 = vstv %s2956_s19  ;;  %s3038_s25 = sld [smem:[#allocation2 + $0x5]] }
  0x37   : > { %6477 = vst [vmem:[#allocation33_spill] sm:$0xff] %v3017_v45  ;;  %6478 = vst [vmem:[#allocation34_spill] sm:$0xff] %v3026_v50  ;;  %v478_v55 = vadd.f32 %v471_v38, %v462_v46  ;;  %v479_v56 = vadd.f32 %v472_v39, %v463_v47  ;;  %v535_v57 = vmul.f32 %v3004_v40, %v3033_v53  ;;  %s3044_s26 = sld [smem:[#allocation2 + $0x6]]  ;;  %v3047_v59 = vstv %s2965_s20 }
  0x38   : > { %6479 = vst [vmem:[#allocation35_spill] sm:$0xff] %v3033_v53  ;;  %6480 = vst [vmem:[#allocation36_spill] sm:$0xff] %v3036_v54  ;;  %v536_v58 = vmul.f32 %v3007_v41, %v3033_v53  ;;  %v3050_v60 = vstv %s2985_s21  ;;  %s3052_s2 = sld [smem:[#allocation2 + $0x7]]  ;;  %v441_v62 = vmul.f32 %v3026_v50, %v2937_v14  ;;  %v74_v10 = vmul.f32 %v3047_v59, %v2894_v0  ;;  %v3204_v0 = vld [vmem:[%s2891_s12 + $0x89] sm:$0xff] }
  0x39   : > { %6481 = vst [vmem:[#allocation37_spill] sm:$0xff] %v3047_v59  ;;  %6482 = vst [vmem:[#allocation38_spill] sm:$0xff] %v3050_v60  ;;  %v494_v63 = vadd.f32 %v487_v42, %v478_v55  ;;  %v495_v9 = vadd.f32 %v488_v43, %v479_v56  ;;  %v75_v12 = vmul.f32 %v3047_v59, %v2897_v1  ;;  %v3065_v19 = vstv %s3001_s22  ;;  %s3069_s1 = sld [smem:[#allocation2 + $0x8]] }
  0x3a   : > { %v99_v13 = vmul.f32 %v2902_v2, %v3050_v60  ;;  %v100_v18 = vmul.f32 %v2905_v3, %v3050_v60  ;;  %6483 = vst [vmem:[#allocation39_spill] sm:$0xff] %v3065_v19  ;;  %v3067_v22 = vstv %s2446_s23  ;;  %v124_v25 = vmul.f32 %v2910_v4, %v3065_v19  ;;  %s3075_s27 = sld [smem:[#allocation5]]  ;;  %6503 = vst [vmem:[#allocation59_spill] sm:$0xff] %v3204_v0 }
  0x3b   : > { %6484 = vst [vmem:[#allocation40_spill] sm:$0xff] %v3067_v22  ;;  %v510_v23 = vadd.f32 %v503_v48, %v494_v63  ;;  %v511_v24 = vadd.f32 %v504_v49, %v495_v9  ;;  %v125_v32 = vmul.f32 %v2913_v5, %v3065_v19  ;;  %v147_v37 = vmul.f32 %v3067_v22, %v2920_v7  ;;  %s3226_s29 = sld [smem:[#allocation2 + $0x12]] }
  0x3c   : > { %v106_v33 = vadd.f32 %v99_v13, %v74_v10  ;;  %v107_v36 = vadd.f32 %v100_v18, %v75_v12  ;;  %v148_v38 = vmul.f32 %v3067_v22, %v2923_v8  ;;  %v3082_v43 = vstv %s3023_s24  ;;  %s3236_s30 = sld [smem:[#allocation2 + $0x13]] }
  0x3d   : > { %v526_v39 = vadd.f32 %v519_v51, %v510_v23  ;;  %v527_v42 = vadd.f32 %v520_v52, %v511_v24  ;;  %6485 = vst [vmem:[#allocation41_spill] sm:$0xff] %v3082_v43  ;;  %v3085_v46 = vstv %s3038_s25  ;;  %v170_v49 = vmul.f32 %v2942_v15, %v3082_v43  ;;  %s3248_s4 = sld [smem:[#allocation2 + $0x14]] }
  0x3e   : > { %6486 = vst [vmem:[#allocation42_spill] sm:$0xff] %v3085_v46  ;;  %v131_v47 = vadd.f32 %v124_v25, %v106_v33  ;;  %v132_v48 = vadd.f32 %v125_v32, %v107_v36  ;;  %v171_v55 = vmul.f32 %v2945_v16, %v3082_v43  ;;  %v193_v9 = vmul.f32 %v2948_v17, %v3085_v46  ;;  %v3114_v36 = vld [vmem:[%s2891_s12 + $0x11] sm:$0xff]  ;;  %s3261_s7 = sld [smem:[#allocation2 + $0x15]] }
  0x3f   : > { %v542_v56 = vadd.f32 %v535_v57, %v526_v39  ;;  %v543_v63 = vadd.f32 %v536_v58, %v527_v42  ;;  %v194_v51 = vmul.f32 %v2959_v21, %v3085_v46  ;;  %v3096_v12 = vstv %s3044_s26  ;;  %6489 = vst [vmem:[#allocation45_spill] sm:$0xff] %v3114_v36  ;;  %s3274_s8 = sld [smem:[#allocation2 + $0x16]] }
  0x40   : > { %v154_v52 = vadd.f32 %v147_v37, %v131_v47  ;;  %v155_v10 = vadd.f32 %v148_v38, %v132_v48  ;;  %6487 = vst [vmem:[#allocation43_spill] sm:$0xff] %v3096_v12  ;;  %v3099_v13 = vstv %s3052_s2  ;;  %v216_v18 = vmul.f32 %v3096_v12, %v2974_v28  ;;  %v3124_v47 = vld [vmem:[%s2891_s12 + $0x49] sm:$0xff]  ;;  %v3127_v48 = vld [vmem:[%s2891_s12 + $0x81] sm:$0xff]  ;;  %s3290_s9 = sld [smem:[#allocation2 + $0x17]] }
  0x41   : > { %6488 = vst [vmem:[#allocation44_spill] sm:$0xff] %v3099_v13  ;;  %v551_v57 = vadd.f32 %v3036_v54, %v542_v56  ;;  %v3103_v58 = vadd.f32 %v3036_v54, %v543_v63  ;;  %v217_v23 = vmul.f32 %v3096_v12, %v2977_v29  ;;  %v239_v32 = vmul.f32 %v2992_v34, %v3099_v13  ;;  %v3144_v28 = vld [vmem:[%s2891_s12 + $0x82] sm:$0xff]  ;;  %s3307_s10 = sld [smem:[#allocation2 + $0x18]] }
  0x42   : > { %v177_v24 = vadd.f32 %v170_v49, %v154_v52  ;;  %v178_v25 = vadd.f32 %v171_v55, %v155_v10  ;;  %v240_v33 = vmul.f32 %v2995_v35, %v3099_v13  ;;  %v3118_v39 = vstv %s3069_s1  ;;  %6492 = vst [vmem:[#allocation48_spill] sm:$0xff] %v3124_v47  ;;  %6493 = vst [vmem:[#allocation49_spill] sm:$0xff] %v3127_v48  ;;  %v3134_v52 = vld [vmem:[%s2891_s12 + $0x12] sm:$0xff]  ;;  %v3137_v10 = vld [vmem:[%s2891_s12 + $0x4a] sm:$0xff]  ;;  %s3314_s11 = sld [smem:[#allocation2 + $0x19]] }
  0x43   : > { %v558_v37 = vmax.f32 %v551_v57, 0.0  ;;  %v6021_v38 = vmax.f32 %v3103_v58, 0.0  ;;  %6490 = vst [vmem:[#allocation46_spill] sm:$0xff] %v3118_v39  ;;  %v3121_v42 = vstv %s3075_s27  ;;  %v262_v56 = vmul.f32 %v3004_v40, %v3118_v39  ;;  %6494 = vst [vmem:[#allocation50_spill] sm:$0xff] %v3134_v52  ;;  %s3326_s13 = sld [smem:[#allocation2 + $0x1a]] }
  0x44   : > { %6491 = vst [vmem:[#allocation47_spill] sm:$0xff] %v3121_v42  ;;  %v200_v49 = vadd.f32 %v193_v9, %v177_v24  ;;  %v201_v55 = vadd.f32 %v194_v51, %v178_v25  ;;  %v263_v63 = vmul.f32 %v3007_v41, %v3118_v39  ;;  %6495 = vst [vmem:[#allocation51_spill] sm:$0xff] %v3137_v10  ;;  %v3207_v41 = vld [vmem:[%s2891_s12 + $0x1a] sm:$0xff]  ;;  %s3340_s14 = sld [smem:[#allocation5 + $0x2]] }
  0x45   : > { %v572_v57 = vrot.slane %v558_v37, 1  ;;  %v3141_v34 = vrot.slane %v6021_v38, 1  ;;  %6496 = vst [vmem:[#allocation52_spill] sm:$0xff] %v3144_v28  ;;  %v448_v17 = vadd.f32 %v441_v62, %v432_v61  ;;  %v457_v9 = vmul.f32 %v2954_v20, %v3114_v36  ;;  %6504 = vst [vmem:[#allocation60_spill] sm:$0xff] %v3207_v41  ;;  %s3449_s15 = sld [smem:[#allocation2 + $0x1b]] }
  0x46   : > { %v223_v51 = vadd.f32 %v216_v18, %v200_v49  ;;  %v224_v24 = vadd.f32 %v217_v23, %v201_v55  ;;  %v473_v25 = vmul.f32 %v3124_v47, %v2980_v30  ;;  %v489_v40 = vmul.f32 %v3127_v48, %v2983_v31  ;;  %s3466_s16 = sld [smem:[#allocation2 + $0x1c]] }
  0x47   : > { %v574_v15 = vsel %vm299_vm0, %v572_v57, %v3141_v34  ;;  %v464_v7 = vadd.f32 %v457_v9, %v448_v17  ;;  %v505_v38 = vmul.f32 %v3014_v44, %v3134_v52  ;;  %v521_v61 = vmul.f32 %v3137_v10, %v3017_v45  ;;  %s3478_s17 = sld [smem:[#allocation2 + $0x1d]] }
  0x48   : > { %v3158_v62 = vmax.f32 %v558_v37, %v574_v15  ;;  %v246_v18 = vadd.f32 %v239_v32, %v223_v51  ;;  %v247_v23 = vadd.f32 %v240_v33, %v224_v24  ;;  %v537_v49 = vmul.f32 %v3144_v28, %v3033_v53  ;;  %v3175_v37 = vld [vmem:[%s2891_s12 + $0x18] sm:$0xff]  ;;  %v3178_v51 = vld [vmem:[%s2891_s12 + $0x50] sm:$0xff]  ;;  %s3483_s18 = sld [smem:[#allocation2 + $0x1e]] }
  0x49   : > { %v480_v55 = vadd.f32 %v473_v25, %v464_v7  ;;  %v76_v17 = vmul.f32 %v3047_v59, %v2968_v26  ;;  %v101_v57 = vmul.f32 %v2971_v27, %v3050_v60  ;;  %v126_v9 = vmul.f32 %v3026_v50, %v3065_v19  ;;  %6498 = vst [vmem:[#allocation54_spill] sm:$0xff] %v3175_v37  ;;  %s3505_s19 = sld [smem:[#allocation2 + $0x1f]] }
  0x4a   : > { %6497 = vst [vmem:[#allocation53_spill] sm:$0xff] %v3158_v62  ;;  %606 = vrot.lane.b32.xlu1 %v3158_v62, %s2841_s28  ;;  %v269_v15 = vadd.f32 %v262_v56, %v246_v18  ;;  %v270_v32 = vadd.f32 %v263_v63, %v247_v23  ;;  %v149_v7 = vmul.f32 %v3067_v22, %v3114_v36  ;;  %6499 = vst [vmem:[#allocation55_spill] sm:$0xff] %v3178_v51  ;;  %v3185_v63 = vld [vmem:[%s2891_s12 + $0x88] sm:$0xff]  ;;  %v3188_v18 = vld [vmem:[%s2891_s12 + $0x19] sm:$0xff]  ;;  %s3514_s20 = sld [smem:[#allocation2 + $0x20]] }
  0x4b   : > { %v172_v33 = vmul.f32 %v3124_v47, %v3082_v43  ;;  %v496_v24 = vadd.f32 %v489_v40, %v480_v55  ;;  %v108_v25 = vadd.f32 %v101_v57, %v76_v17  ;;  %v195_v62 = vmul.f32 %v3127_v48, %v3085_v46  ;;  %6500 = vst [vmem:[#allocation56_spill] sm:$0xff] %v3185_v63  ;;  %v3201_v17 = vld [vmem:[%s2891_s12 + $0x51] sm:$0xff]  ;;  %s3533_s21 = sld [smem:[#allocation2 + $0x21]] }
  0x4c   : > { %v218_v56 = vmul.f32 %v3096_v12, %v3134_v52  ;;  %6501 = vst [vmem:[#allocation57_spill] sm:$0xff] %v3188_v18  ;;  %v278_v23 = vadd.f32 %v3121_v42, %v269_v15  ;;  %v3192_v4 = vadd.f32 %v3121_v42, %v270_v32  ;;  %v241_v40 = vmul.f32 %v3137_v10, %v3099_v13  ;;  %v3215_v52 = vld [vmem:[%s2891_s12 + $0x52] sm:$0xff]  ;;  %s3544_s22 = sld [smem:[#allocation2 + $0x22]] }
  0x4d   : > { %v3198_v55 = vmul.f32 %v3144_v28, %v3118_v39  ;;  %6502 = vst [vmem:[#allocation58_spill] sm:$0xff] %v3201_v17  ;;  %v512_v57 = vadd.f32 %v505_v38, %v496_v24  ;;  %v133_v2 = vadd.f32 %v126_v9, %v108_v25  ;;  %v410_v15 = vmul.f32 %v2915_v6, %v3175_v37  ;;  %v3222_v25 = vld [vmem:[%s2891_s12 + $0x8a] sm:$0xff]  ;;  %s3557_s23 = sld [smem:[#allocation2 + $0x23]] }
  0x4e   : > { %v426_v32 = vmul.f32 %v3178_v51, %v2929_v11  ;;  %v285_v10 = vmax.f32 %v278_v23, 0.0  ;;  %v6047_v35 = vmax.f32 %v3192_v4, 0.0  ;;  %6505 = vst [vmem:[#allocation61_spill] sm:$0xff] %v3215_v52  ;;  %v442_v28 = vmul.f32 %v3185_v63, %v2937_v14  ;;  %6506 = vst [vmem:[#allocation62_spill] sm:$0xff] %v3222_v25  ;;  %s3568_s24 = sld [smem:[#allocation5 + $0x3]] }
  0x4f   : > { %v458_v38 = vmul.f32 %v2954_v20, %v3188_v18  ;;  %v528_v9 = vadd.f32 %v521_v61, %v512_v57  ;;  %v156_v24 = vadd.f32 %v149_v7, %v133_v2  ;;  %v474_v6 = vmul.f32 %v3201_v17, %v2980_v30  ;;  %s3746_s25 = sld [smem:[#allocation2 + $0x24]] }
  0x50   : > { %v433_v29 = vadd.f32 %v426_v32, %v410_v15  ;;  %v300_v23 = vrot.slane %v285_v10, 1  ;;  %v3230_v11 = vrot.slane %v6047_v35, 1  ;;  %v490_v14 = vmul.f32 %v3204_v0, %v2983_v31  ;;  %s3752_s26 = sld [smem:[#allocation2 + $0x25]] }
  0x51   : > { %v506_v61 = vmul.f32 %v3014_v44, %v3207_v41  ;;  %v544_v2 = vadd.f32 %v537_v49, %v528_v9  ;;  %v179_v7 = vadd.f32 %v172_v33, %v156_v24  ;;  %v522_v15 = vmul.f32 %v3215_v52, %v3017_v45  ;;  %s3771_s2 = sld [smem:[#allocation2 + $0x26]] }
  0x52   : > { %v449_v57 = vadd.f32 %v442_v28, %v433_v29  ;;  %v302_v32 = vsel %vm299_vm0, %v300_v23, %v3230_v11  ;;  %v538_v35 = vmul.f32 %v3222_v25, %v3033_v53  ;;  %v77_v31 = vmul.f32 %v3047_v59, %v3175_v37  ;;  %v6558_v37 = vld [vmem:[#allocation27_spill] sm:$0xff]  ;;  %s3778_s1 = sld [smem:[#allocation2 + $0x27]] }
  0x53   : > { %v102_v44 = vmul.f32 %v3178_v51, %v3050_v60  ;;  %v3250_v49 = vmax.f32 %v285_v10, %v302_v32  ;;  %v3253_v28 = vadd.f32 %v3036_v54, %v544_v2  ;;  %v202_v29 = vadd.f32 %v195_v62, %v179_v7  ;;  %s3806_s27 = sld [smem:[#allocation2 + $0x28]] }
  0x54   : > { %v465_v33 = vadd.f32 %v458_v38, %v449_v57  ;;  %v127_v24 = vmul.f32 %v3185_v63, %v3065_v19  ;;  %v150_v23 = vmul.f32 %v3067_v22, %v3188_v18  ;;  %v173_v51 = vmul.f32 %v3201_v17, %v3082_v43  ;;  %v3429_v18 = vld [vmem:[%s2891_s12 + $0x21] sm:$0xff] }
  0x55   : > { %6507 = vst [vmem:[#allocation63_spill] sm:$0xff] %v3250_v49  ;;  %v109_v9 = vadd.f32 %v102_v44, %v77_v31  ;;  %334 = vrot.lane.b32.xlu0 %v3250_v49, %s2841_s28  ;;  %v6055_v10 = vmax.f32 %v3253_v28, 0.0  ;;  %v225_v62 = vadd.f32 %v218_v56, %v202_v29  ;;  %v196_v44 = vmul.f32 %v3204_v0, %v3085_v46  ;;  %v3418_v0 = vld [vmem:[%s2891_s12 + $0x20] sm:$0xff] }
  0x56   : > { %v481_v31 = vadd.f32 %v474_v6, %v465_v33  ;;  %v219_v2 = vmul.f32 %v3096_v12, %v3207_v41  ;;  %v242_v7 = vmul.f32 %v3215_v52, %v3099_v13  ;;  %v265_v57 = vmul.f32 %v3222_v25, %v3118_v39  ;;  %v6538_v41 = vld [vmem:[#allocation19_spill] sm:$0xff]  ;;  %v6547_v63 = vld [vmem:[#allocation24_spill] sm:$0xff] }
  0x57   : > { %v134_v38 = vadd.f32 %v127_v24, %v109_v9  ;;  %v3278_v32 = vrot.slane %v6055_v10, 1  ;;  %v248_v6 = vadd.f32 %v241_v40, %v225_v62  ;;  %v3281_v29 = vstv %s3226_s29  ;;  %6543 = vst [vmem:[#allocation19_spill] sm:$0xff] %v3429_v18  ;;  %s3828_s29 = sld [smem:[#allocation2 + $0x29]] }
  0x58   : > { %v497_v56 = vadd.f32 %v490_v14, %v481_v31  ;;  %6508 = vst [vmem:[#allocation64_spill] sm:$0xff] %v3281_v29  ;;  %v681_v9 = vmul.f32 %v3281_v29, %v2897_v1  ;;  %v682_v24 = vmul.f32 %v3281_v29, %v2968_v26  ;;  %v3288_v49 = vstv %s3236_s30  ;;  %s3847_s30 = sld [smem:[#allocation2 + $0x2a]] }
  0x59   : > { %v157_v33 = vadd.f32 %v150_v23, %v134_v38  ;;  %6509 = vst [vmem:[#allocation65_spill] sm:$0xff] %v3288_v49  ;;  %v576_v10 = vsel %vm299_vm0, %v3141_v34, %v3278_v32  ;;  %v271_v40 = vadd.f32 %v3198_v55, %v248_v6  ;;  %v697_v23 = vmul.f32 %v2905_v3, %v3288_v49 }
  0x5a   : > { %v513_v14 = vadd.f32 %v506_v61, %v497_v56  ;;  %v6510_v62 = vmax.f32 %v3103_v58, 0.0  ;;  %v698_v26 = vmul.f32 %v2971_v27, %v3288_v49  ;;  %v3305_v25 = vstv %s3248_s4  ;;  %s3852_s4 = sld [smem:[#allocation2 + $0x2b]] }
  0x5b   : > { %v180_v38 = vadd.f32 %v173_v51, %v157_v33  ;;  %6512 = vst [vmem:[#allocation67_spill] sm:$0xff] %v3305_v25  ;;  %v3310_v34 = vadd.f32 %v3121_v42, %v271_v40  ;;  %v704_v61 = vadd.f32 %v697_v23, %v681_v9  ;;  %v713_v6 = vmul.f32 %v2913_v5, %v3305_v25 }
  0x5c   : > { %v3300_v31 = vmax.f32 %v6510_v62, %v576_v10  ;;  %v529_v55 = vadd.f32 %v522_v15, %v513_v14  ;;  %v705_v51 = vadd.f32 %v698_v26, %v682_v24  ;;  %v714_v10 = vmul.f32 %v3026_v50, %v3305_v25 }
  0x5d   : > { %v203_v58 = vadd.f32 %v196_v44, %v180_v38  ;;  %v3321_v56 = vstv %s3261_s7  ;;  %v6059_v33 = vmax.f32 %v3310_v34, 0.0  ;;  %v720_v9 = vadd.f32 %v713_v6, %v704_v61  ;;  %s3886_s7 = sld [smem:[#allocation2 + $0x2c]] }
  0x5e   : > { %6511 = vst [vmem:[#allocation66_spill] sm:$0xff] %v3300_v31  ;;  %608 = vrot.lane.b32.xlu1 %v3300_v31, %s2841_s28  ;;  %6513 = vst [vmem:[#allocation68_spill] sm:$0xff] %v3321_v56  ;;  %v545_v15 = vadd.f32 %v538_v35, %v529_v55  ;;  %v729_v40 = vmul.f32 %v3321_v56, %v2923_v8  ;;  %v721_v23 = vadd.f32 %v714_v10, %v705_v51 }
  0x5f   : > { %v226_v14 = vadd.f32 %v219_v2, %v203_v58  ;;  %v730_v26 = vmul.f32 %v3321_v56, %v3114_v36  ;;  %v3331_v44 = vstv %s3274_s8  ;;  %v303_v24 = vrot.slane %v6059_v33, 1  ;;  %s3902_s8 = sld [smem:[#allocation5 + $0x4]] }
  0x60   : > { %6514 = vst [vmem:[#allocation69_spill] sm:$0xff] %v3331_v44  ;;  %v3336_v62 = vadd.f32 %v3036_v54, %v545_v15  ;;  %v736_v35 = vadd.f32 %v729_v40, %v720_v9  ;;  %v745_v38 = vmul.f32 %v2945_v16, %v3331_v44  ;;  %v746_v61 = vmul.f32 %v3124_v47, %v3331_v44  ;;  %v6531_v47 = vld [vmem:[#allocation52_spill] sm:$0xff] }
  0x61   : > { %v249_v2 = vadd.f32 %v242_v7, %v226_v14  ;;  %v737_v55 = vadd.f32 %v730_v26, %v721_v23  ;;  %v3345_v6 = vstv %s3290_s9  ;;  %v304_v58 = vsel %vm299_vm0, %v3230_v11, %v303_v24  ;;  %s4237_s9 = sld [smem:[#allocation2 + $0x2d]] }
  0x62   : > { %6515 = vst [vmem:[#allocation70_spill] sm:$0xff] %v3336_v62  ;;  %6516 = vst [vmem:[#allocation71_spill] sm:$0xff] %v3345_v6  ;;  %v6060_v51 = vmax.f32 %v3336_v62, 0.0  ;;  %v752_v10 = vadd.f32 %v745_v38, %v736_v35  ;;  %v761_v15 = vmul.f32 %v2959_v21, %v3345_v6  ;;  %v6517_v9 = vmax.f32 %v3192_v4, 0.0  ;;  %v6523_v38 = vld [vmem:[#allocation25_spill] sm:$0xff] }
  0x63   : > { %v272_v7 = vadd.f32 %v265_v57, %v249_v2  ;;  %v753_v14 = vadd.f32 %v746_v61, %v737_v55  ;;  %v762_v23 = vmul.f32 %v3127_v48, %v3345_v6  ;;  %v3363_v33 = vstv %s3307_s10  ;;  %v6524_v55 = vld [vmem:[#allocation50_spill] sm:$0xff]  ;;  %s4249_s10 = sld [smem:[#allocation2 + $0x2e]] }
  0x64   : > { %v3354_v40 = vmax.f32 %v6517_v9, %v304_v58  ;;  %v3360_v26 = vrot.slane %v6060_v51, 1  ;;  %v768_v11 = vadd.f32 %v761_v15, %v752_v10  ;;  %6520 = vst [vmem:[#allocation74_spill] sm:$0xff] %v3363_v33  ;;  %v3366_v35 = vstv %s3314_s11  ;;  %v6525_v10 = vld [vmem:[#allocation29_spill] sm:$0xff]  ;;  %v6526_v9 = vld [vmem:[#allocation51_spill] sm:$0xff]  ;;  %s4258_s11 = sld [smem:[#allocation2 + $0x2f]] }
  0x65   : > { %6521 = vst [vmem:[#allocation75_spill] sm:$0xff] %v3366_v35  ;;  %v3371_v4 = vadd.f32 %v3121_v42, %v272_v7  ;;  %v769_v57 = vadd.f32 %v762_v23, %v753_v14  ;;  %v777_v2 = vmul.f32 %v3363_v33, %v6523_v38  ;;  %v778_v61 = vmul.f32 %v3363_v33, %v6524_v55 }
  0x66   : > { %6518 = vst [vmem:[#allocation72_spill] sm:$0xff] %v3354_v40  ;;  %6519 = vst [vmem:[#allocation73_spill] sm:$0xff] %v3360_v26  ;;  %336 = vrot.lane.b32.xlu0 %v3354_v40, %s2841_s28  ;;  %v578_v58 = vsel %vm299_vm0, %v3278_v32, %v3360_v26  ;;  %v793_v15 = vmul.f32 %v6525_v10, %v3366_v35  ;;  %v794_v51 = vmul.f32 %v6526_v9, %v3366_v35  ;;  %v6530_v32 = vld [vmem:[#allocation31_spill] sm:$0xff]  ;;  %v6533_v9 = vld [vmem:[#allocation12_spill] sm:$0xff] }
  0x67   : > { %6522 = vst [vmem:[#allocation76_spill] sm:$0xff] %v3371_v4  ;;  %v3385_v40 = vstv %s3326_s13  ;;  %v6528_v7 = vmax.f32 %v3253_v28, 0.0  ;;  %v6074_v23 = vmax.f32 %v3371_v4, 0.0  ;;  %v784_v31 = vadd.f32 %v777_v2, %v768_v11  ;;  %v6535_v2 = vld [vmem:[#allocation13_spill] sm:$0xff]  ;;  %v6539_v4 = vld [vmem:[#allocation20_spill] sm:$0xff]  ;;  %s4281_s13 = sld [smem:[#allocation2 + $0x30]] }
  0x68   : > { %6527 = vst [vmem:[#allocation25_spill] sm:$0xff] %v3385_v40  ;;  %v785_v55 = vadd.f32 %v778_v61, %v769_v57  ;;  %v809_v48 = vmul.f32 %v6530_v32, %v3385_v40  ;;  %v810_v36 = vmul.f32 %v6531_v47, %v3385_v40  ;;  %v3397_v50 = vstv %s3340_s14  ;;  %v6537_v47 = vld [vmem:[#allocation16_spill] sm:$0xff]  ;;  %6540 = vst [vmem:[#allocation13_spill] sm:$0xff] %v3418_v0  ;;  %s4296_s14 = sld [smem:[#allocation2 + $0x31]] }
  0x69   : > { %v3389_v14 = vmax.f32 %v6528_v7, %v578_v58  ;;  %6532 = vst [vmem:[#allocation77_spill] sm:$0xff] %v3397_v50  ;;  %v680_v27 = vmul.f32 %v3281_v29, %v6533_v9  ;;  %v3405_v28 = vrot.slane %v6074_v23, 1  ;;  %v800_v11 = vadd.f32 %v793_v15, %v784_v31  ;;  %v6536_v58 = vld [vmem:[#allocation14_spill] sm:$0xff] }
  0x6a   : > { %v801_v57 = vadd.f32 %v794_v51, %v785_v55  ;;  %v696_v61 = vmul.f32 %v6535_v2, %v3288_v49  ;;  %v712_v7 = vmul.f32 %v6536_v58, %v3305_v25  ;;  %v728_v52 = vmul.f32 %v3321_v56, %v6537_v47  ;;  %v3421_v31 = vld [vmem:[%s2891_s12 + $0x58] sm:$0xff]  ;;  %v3426_v56 = vld [vmem:[%s2891_s12 + $0x90] sm:$0xff] }
  0x6b   : > { %6529 = vst [vmem:[#allocation29_spill] sm:$0xff] %v3389_v14  ;;  %610 = vrot.lane.b32.xlu1 %v3389_v14, %s2841_s28  ;;  %6534 = vst [vmem:[#allocation12_spill] sm:$0xff] %v3405_v28  ;;  %v744_v14 = vmul.f32 %v6538_v41, %v3331_v44  ;;  %v760_v23 = vmul.f32 %v6539_v4, %v3345_v6  ;;  %v306_v51 = vsel %vm299_vm0, %v303_v24, %v3405_v28  ;;  %v3432_v44 = vld [vmem:[%s2891_s12 + $0x59] sm:$0xff]  ;;  %v6548_v24 = vld [vmem:[#allocation28_spill] sm:$0xff] }
  0x6c   : > { %6541 = vst [vmem:[#allocation14_spill] sm:$0xff] %v3421_v31  ;;  %v816_v55 = vadd.f32 %v809_v48, %v800_v11  ;;  %v817_v15 = vadd.f32 %v810_v36, %v801_v57  ;;  %v703_v17 = vadd.f32 %v696_v61, %v680_v27  ;;  %6542 = vst [vmem:[#allocation16_spill] sm:$0xff] %v3426_v56  ;;  %v6545_v6 = vmax.f32 %v3310_v34, 0.0  ;;  %v6549_v36 = vld [vmem:[#allocation30_spill] sm:$0xff]  ;;  %v3456_v61 = vld [vmem:[%s2891_s12 + $0x22] sm:$0xff] }
  0x6d   : > { %6544 = vst [vmem:[#allocation20_spill] sm:$0xff] %v3432_v44  ;;  %v776_v25 = vmul.f32 %v3363_v33, %v6547_v63  ;;  %v792_v48 = vmul.f32 %v6548_v24, %v3366_v35  ;;  %v3444_v11 = vmul.f32 %v6549_v36, %v3385_v40  ;;  %v3447_v27 = vld [vmem:[%s2891_s12 + $0x91] sm:$0xff]  ;;  %6552 = vst [vmem:[#allocation79_spill] sm:$0xff] %v3456_v61  ;;  %v6555_v35 = vld [vmem:[#allocation15_spill] sm:$0xff] }
  0x6e   : > { %v3436_v62 = vmax.f32 %v6545_v6, %v306_v51  ;;  %6550 = vst [vmem:[#allocation24_spill] sm:$0xff] %v3447_v27  ;;  %v825_v57 = vadd.f32 %v3397_v50, %v816_v55  ;;  %v3453_v34 = vadd.f32 %v3397_v50, %v817_v15  ;;  %v719_v6 = vadd.f32 %v712_v7, %v703_v17  ;;  %v3459_v51 = vld [vmem:[%s2891_s12 + $0x5a] sm:$0xff]  ;;  %v3462_v28 = vld [vmem:[%s2891_s12 + $0x92] sm:$0xff]  ;;  %v6556_v33 = vld [vmem:[#allocation17_spill] sm:$0xff] }
  0x6f   : > { %6553 = vst [vmem:[#allocation80_spill] sm:$0xff] %v3459_v51  ;;  %6554 = vst [vmem:[#allocation81_spill] sm:$0xff] %v3462_v28  ;;  %v411_v40 = vmul.f32 %v6555_v35, %v3418_v0  ;;  %v427_v55 = vmul.f32 %v3421_v31, %v6556_v33  ;;  %v6557_v15 = vld [vmem:[#allocation18_spill] sm:$0xff]  ;;  %v459_v7 = vmul.f32 %v2954_v20, %v3429_v18 }
  0x70   : > { %6546 = vst [vmem:[#allocation78_spill] sm:$0xff] %v3436_v62  ;;  %6551 = vst [vmem:[#allocation28_spill] sm:$0xff] %v3453_v34  ;;  %338 = vrot.lane.b32.xlu0 %v3436_v62, %s2841_s28  ;;  %v443_v17 = vmul.f32 %v3426_v56, %v6557_v15  ;;  %v475_v26 = vmul.f32 %v3432_v44, %v2980_v30  ;;  %v832_v35 = vmax.f32 %v825_v57, 0.0  ;;  %v6115_v49 = vmax.f32 %v3453_v34, 0.0  ;;  %v6559_v15 = vld [vmem:[#allocation32_spill] sm:$0xff] }
  0x71   : > { %v735_v29 = vadd.f32 %v728_v52, %v719_v6  ;;  %v491_v62 = vmul.f32 %v3447_v27, %v6558_v37  ;;  %v434_v33 = vadd.f32 %v427_v55, %v411_v40  ;;  %v507_v32 = vmul.f32 %v6559_v15, %v3456_v61 }
  0x72   : > { %v523_v20 = vmul.f32 %v3459_v51, %v3017_v45  ;;  %v539_v30 = vmul.f32 %v3462_v28, %v3033_v53  ;;  %v3491_v36 = vrot.slane %v832_v35, 1  ;;  %v3495_v52 = vrot.slane %v6115_v49, 1 }
  0x73   : > { %v751_v57 = vadd.f32 %v744_v14, %v735_v29  ;;  %v78_v6 = vmul.f32 %v3047_v59, %v3418_v0  ;;  %v450_v40 = vadd.f32 %v443_v17, %v434_v33  ;;  %v103_v55 = vmul.f32 %v3421_v31, %v3050_v60 }
  0x74   : > { %6560 = vst [vmem:[#allocation82_spill] sm:$0xff] %v3495_v52  ;;  %v128_v45 = vmul.f32 %v3426_v56, %v3065_v19  ;;  %v151_v53 = vmul.f32 %v3067_v22, %v3429_v18  ;;  %v849_v29 = vsel %vm299_vm0, %v3491_v36, %v3495_v52  ;;  %v174_v33 = vmul.f32 %v3432_v44, %v3082_v43 }
  0x75   : > { %v767_v14 = vadd.f32 %v760_v23, %v751_v57  ;;  %v197_v17 = vmul.f32 %v3447_v27, %v3085_v46  ;;  %v3516_v49 = vmax.f32 %v832_v35, %v849_v29  ;;  %v466_v34 = vadd.f32 %v459_v7, %v450_v40 }
  0x76   : > { %v110_v15 = vadd.f32 %v103_v55, %v78_v6  ;;  %v220_v37 = vmul.f32 %v3096_v12, %v3456_v61  ;;  %v243_v23 = vmul.f32 %v3459_v51, %v3099_v13  ;;  %v266_v57 = vmul.f32 %v3462_v28, %v3118_v39 }
  0x77   : > { %6561 = vst [vmem:[#allocation83_spill] sm:$0xff] %v3516_v49  ;;  %v783_v52 = vadd.f32 %v776_v25, %v767_v14  ;;  %v3525_v27 = vstv %s3449_s15  ;;  %881 = vrot.lane.b32.xlu1 %v3516_v49, %s2841_s28  ;;  %v482_v35 = vadd.f32 %v475_v26, %v466_v34  ;;  %v3536_v40 = vstv %s3466_s16  ;;  %s4316_s15 = sld [smem:[#allocation2 + $0x32]] }
  0x78   : > { %6562 = vst [vmem:[#allocation84_spill] sm:$0xff] %v3525_v27  ;;  %v135_v29 = vadd.f32 %v128_v45, %v110_v15  ;;  %v953_v7 = vmul.f32 %v3525_v27, %v6533_v9  ;;  %v954_v6 = vmul.f32 %v3525_v27, %v2897_v1  ;;  %6563 = vst [vmem:[#allocation85_spill] sm:$0xff] %v3536_v40  ;;  %v3539_v55 = vstv %s3478_s17  ;;  %s4329_s16 = sld [smem:[#allocation2 + $0x33]] }
  0x79   : > { %v799_v25 = vadd.f32 %v792_v48, %v783_v52  ;;  %6564 = vst [vmem:[#allocation86_spill] sm:$0xff] %v3539_v55  ;;  %v3542_v14 = vstv %s3483_s18  ;;  %v498_v26 = vadd.f32 %v491_v62, %v482_v35  ;;  %v969_v9 = vmul.f32 %v6535_v2, %v3536_v40  ;;  %s4336_s17 = sld [smem:[#allocation2 + $0x34]] }
  0x7a   : > { %6565 = vst [vmem:[#allocation87_spill] sm:$0xff] %v3542_v14  ;;  %v158_v45 = vadd.f32 %v151_v53, %v135_v29  ;;  %v970_v1 = vmul.f32 %v2905_v3, %v3536_v40  ;;  %v985_v34 = vmul.f32 %v6536_v58, %v3539_v55  ;;  %v986_v15 = vmul.f32 %v2913_v5, %v3539_v55  ;;  %s4358_s18 = sld [smem:[#allocation2 + $0x35]] }
  0x7b   : > { %v815_v48 = vadd.f32 %v3444_v11, %v799_v25  ;;  %v1001_v52 = vmul.f32 %v3542_v14, %v6537_v47  ;;  %v514_v62 = vadd.f32 %v507_v32, %v498_v26  ;;  %v976_v53 = vadd.f32 %v969_v9, %v953_v7 }
  0x7c   : > { %v181_v35 = vadd.f32 %v174_v33, %v158_v45  ;;  %v977_v29 = vadd.f32 %v970_v1, %v954_v6  ;;  %v1002_v3 = vmul.f32 %v3542_v14, %v2923_v8  ;;  %v3563_v11 = vstv %s3505_s19  ;;  %s4364_s19 = sld [smem:[#allocation5 + $0x5]] }
  0x7d   : > { %v824_v2 = vadd.f32 %v3397_v50, %v815_v48  ;;  %6566 = vst [vmem:[#allocation88_spill] sm:$0xff] %v3563_v11  ;;  %v3566_v58 = vstv %s3514_s20  ;;  %v530_v5 = vadd.f32 %v523_v20, %v514_v62  ;;  %v992_v32 = vadd.f32 %v985_v34, %v976_v53  ;;  %s4534_s20 = sld [smem:[#allocation2 + $0x36]] }
  0x7e   : > { %6567 = vst [vmem:[#allocation89_spill] sm:$0xff] %v3566_v58  ;;  %v204_v47 = vadd.f32 %v197_v17, %v181_v35  ;;  %v993_v33 = vadd.f32 %v986_v15, %v977_v29  ;;  %v1017_v6 = vmul.f32 %v6538_v41, %v3563_v11  ;;  %v1018_v25 = vmul.f32 %v2945_v16, %v3563_v11 }
  0x7f   : > { %v831_v7 = vmax.f32 %v824_v2, 0.0  ;;  %v1033_v8 = vmul.f32 %v6539_v4, %v3566_v58  ;;  %v546_v26 = vadd.f32 %v539_v30, %v530_v5  ;;  %v1008_v9 = vadd.f32 %v1001_v52, %v992_v32 }
  0x80   : > { %v227_v45 = vadd.f32 %v220_v37, %v204_v47  ;;  %v1009_v1 = vadd.f32 %v1002_v3, %v993_v33  ;;  %v1034_v20 = vmul.f32 %v2959_v21, %v3566_v58  ;;  %v3579_v17 = vstv %s3533_s21  ;;  %v6577_v47 = vld [vmem:[#allocation31_spill] sm:$0xff]  ;;  %v6578_v33 = vld [vmem:[#allocation54_spill] sm:$0xff]  ;;  %s4540_s21 = sld [smem:[#allocation2 + $0x37]] }
  0x81   : > { %v845_v48 = vrot.slane %v831_v7, 1  ;;  %6568 = vst [vmem:[#allocation90_spill] sm:$0xff] %v3579_v17  ;;  %v3582_v34 = vstv %s3544_s22  ;;  %v3585_v41 = vadd.f32 %v3036_v54, %v546_v26  ;;  %v1024_v15 = vadd.f32 %v1017_v6, %v1008_v9  ;;  %s4568_s22 = sld [smem:[#allocation2 + $0x38]] }
  0x82   : > { %6569 = vst [vmem:[#allocation91_spill] sm:$0xff] %v3582_v34  ;;  %v250_v16 = vadd.f32 %v243_v23, %v227_v45  ;;  %v1025_v4 = vadd.f32 %v1018_v25, %v1009_v1  ;;  %v1049_v37 = vmul.f32 %v3579_v17, %v6547_v63  ;;  %v1050_v21 = vmul.f32 %v3579_v17, %v6523_v38  ;;  %v6580_v25 = vld [vmem:[#allocation65_spill] sm:$0xff] }
  0x83   : > { %6570 = vst [vmem:[#allocation92_spill] sm:$0xff] %v3585_v41  ;;  %v847_v30 = vsel %vm299_vm0, %v845_v48, %v3491_v36  ;;  %v1065_v52 = vmul.f32 %v6548_v24, %v3582_v34  ;;  %v6120_v35 = vmax.f32 %v3585_v41, 0.0  ;;  %v1040_v23 = vadd.f32 %v1033_v8, %v1024_v15  ;;  %v6581_v8 = vld [vmem:[#allocation55_spill] sm:$0xff]  ;;  %v6582_v45 = vld [vmem:[#allocation73_spill] sm:$0xff] }
  0x84   : > { %v3595_v62 = vmax.f32 %v831_v7, %v847_v30  ;;  %v273_v53 = vadd.f32 %v266_v57, %v250_v16  ;;  %v1041_v29 = vadd.f32 %v1034_v20, %v1025_v4  ;;  %v1066_v2 = vmul.f32 %v6525_v10, %v3582_v34  ;;  %v6576_v57 = vld [vmem:[#allocation30_spill] sm:$0xff]  ;;  %v6579_v7 = vld [vmem:[#allocation64_spill] sm:$0xff]  ;;  %v6583_v20 = vld [vmem:[#allocation67_spill] sm:$0xff] }
  0x85   : > { %v3601_v36 = vstv %s3557_s23  ;;  %v3604_v3 = vstv %s3568_s24  ;;  %v3610_v63 = vrot.slane %v6120_v35, 1  ;;  %v1056_v24 = vadd.f32 %v1049_v37, %v1040_v23  ;;  %v6584_v16 = vld [vmem:[#allocation56_spill] sm:$0xff]  ;;  %v6585_v4 = vld [vmem:[#allocation70_spill] sm:$0xff]  ;;  %v6588_v23 = vld [vmem:[#allocation57_spill] sm:$0xff]  ;;  %s4580_s23 = sld [smem:[#allocation2 + $0x39]] }
  0x86   : > { %6571 = vst [vmem:[#allocation93_spill] sm:$0xff] %v3595_v62  ;;  %6572 = vst [vmem:[#allocation94_spill] sm:$0xff] %v3601_v36  ;;  %879 = vrot.lane.b32.xlu0 %v3595_v62, %s2841_s28  ;;  %v3613_v38 = vadd.f32 %v3121_v42, %v273_v53  ;;  %v1081_v5 = vmul.f32 %v6576_v57, %v3601_v36  ;;  %v1057_v10 = vadd.f32 %v1050_v21, %v1041_v29  ;;  %v6589_v29 = vld [vmem:[#allocation68_spill] sm:$0xff]  ;;  %v6593_v35 = vld [vmem:[#allocation58_spill] sm:$0xff]  ;;  %s4613_s24 = sld [smem:[#allocation2 + $0x3a]] }
  0x87   : > { %6573 = vst [vmem:[#allocation95_spill] sm:$0xff] %v3604_v3  ;;  %6574 = vst [vmem:[#allocation96_spill] sm:$0xff] %v3610_v63  ;;  %v1082_v32 = vmul.f32 %v6577_v47, %v3601_v36  ;;  %v683_v6 = vmul.f32 %v6579_v7, %v6578_v33  ;;  %v699_v26 = vmul.f32 %v6581_v8, %v6580_v25  ;;  %v6586_v30 = vmax.f32 %v6585_v4, 0.0  ;;  %v3636_v47 = vld [vmem:[%s2891_s12 + $0x28] sm:$0xff]  ;;  %v6597_v62 = vld [vmem:[#allocation74_spill] sm:$0xff] }
  0x88   : > { %6575 = vst [vmem:[#allocation97_spill] sm:$0xff] %v3613_v38  ;;  %v580_v9 = vsel %vm299_vm0, %v6582_v45, %v3610_v63  ;;  %v6123_v1 = vmax.f32 %v3613_v38, 0.0  ;;  %v1072_v48 = vadd.f32 %v1065_v52, %v1056_v24  ;;  %v715_v15 = vmul.f32 %v6584_v16, %v6583_v20  ;;  %6590 = vst [vmem:[#allocation31_spill] sm:$0xff] %v3636_v47  ;;  %v6592_v45 = vld [vmem:[#allocation69_spill] sm:$0xff]  ;;  %v6600_v16 = vld [vmem:[#allocation12_spill] sm:$0xff] }
  0x89   : > { %v3631_v37 = vmax.f32 %v6586_v30, %v580_v9  ;;  %v1073_v21 = vadd.f32 %v1066_v2, %v1057_v10  ;;  %v706_v53 = vadd.f32 %v699_v26, %v683_v6  ;;  %v731_v57 = vmul.f32 %v6589_v29, %v6588_v23  ;;  %v6594_v9 = vld [vmem:[#allocation71_spill] sm:$0xff]  ;;  %v6596_v26 = vld [vmem:[#allocation60_spill] sm:$0xff] }
  0x8a   : > { %v3640_v52 = vrot.slane %v6123_v1, 1  ;;  %v1088_v24 = vadd.f32 %v1081_v5, %v1072_v48  ;;  %v747_v4 = vmul.f32 %v6593_v35, %v6592_v45  ;;  %v6595_v30 = vld [vmem:[#allocation59_spill] sm:$0xff]  ;;  %v779_v1 = vmul.f32 %v6597_v62, %v6596_v26  ;;  %v6599_v48 = vld [vmem:[#allocation61_spill] sm:$0xff] }
  0x8b   : > { %6587 = vst [vmem:[#allocation30_spill] sm:$0xff] %v3631_v37  ;;  %v763_v49 = vmul.f32 %v6595_v30, %v6594_v9  ;;  %v3647_v2 = vld [vmem:[%s2891_s12 + $0x60] sm:$0xff]  ;;  %612 = vrot.lane.b32.xlu1 %v3631_v37, %s2841_s28  ;;  %v1089_v10 = vadd.f32 %v1082_v32, %v1073_v21  ;;  %v722_v6 = vadd.f32 %v715_v15, %v706_v53  ;;  %v3656_v35 = vld [vmem:[%s2891_s12 + $0x98] sm:$0xff]  ;;  %v3659_v23 = vld [vmem:[%s2891_s12 + $0x29] sm:$0xff] }
  0x8c   : > { %6591 = vst [vmem:[#allocation65_spill] sm:$0xff] %v3640_v52  ;;  %v6598_v5 = vld [vmem:[#allocation75_spill] sm:$0xff]  ;;  %v308_v32 = vsel %vm299_vm0, %v6600_v16, %v3640_v52  ;;  %v1097_v15 = vadd.f32 %v3604_v3, %v1088_v24  ;;  %v6601_v21 = vld [vmem:[#allocation25_spill] sm:$0xff]  ;;  %v6602_v53 = vld [vmem:[#allocation62_spill] sm:$0xff]  ;;  %v79_v26 = vmul.f32 %v3047_v59, %v3636_v47  ;;  %v104_v16 = vmul.f32 %v3647_v2, %v3050_v60 }
  0x8d   : > { %v795_v41 = vmul.f32 %v6599_v48, %v6598_v5  ;;  %v3662_v30 = vld [vmem:[%s2891_s12 + $0x61] sm:$0xff]  ;;  %v811_v37 = vmul.f32 %v6602_v53, %v6601_v21  ;;  %v3673_v63 = vld [vmem:[%s2891_s12 + $0x99] sm:$0xff]  ;;  %v3680_v54 = vadd.f32 %v3604_v3, %v1089_v10  ;;  %v738_v38 = vadd.f32 %v731_v57, %v722_v6  ;;  %v3685_v24 = vld [vmem:[%s2891_s12 + $0x2a] sm:$0xff] }
  0x8e   : > { %v6603_v48 = vld [vmem:[#allocation76_spill] sm:$0xff]  ;;  %6606 = vst [vmem:[#allocation67_spill] sm:$0xff] %v3685_v24  ;;  %v3691_v53 = vld [vmem:[%s2891_s12 + $0x9a] sm:$0xff]  ;;  %v1104_v59 = vmax.f32 %v1097_v15, 0.0  ;;  %v129_v42 = vmul.f32 %v3656_v35, %v3065_v19  ;;  %v175_v10 = vmul.f32 %v3662_v30, %v3082_v43  ;;  %v221_v19 = vmul.f32 %v3096_v12, %v3685_v24  ;;  %v6610_v12 = vld [vmem:[#allocation34_spill] sm:$0xff] }
  0x8f   : > { %v6604_v8 = vmax.f32 %v6603_v48, 0.0  ;;  %v3688_v52 = vld [vmem:[%s2891_s12 + $0x62] sm:$0xff]  ;;  %6607 = vst [vmem:[#allocation70_spill] sm:$0xff] %v3691_v53  ;;  %v6149_v57 = vmax.f32 %v3680_v54, 0.0  ;;  %v754_v6 = vadd.f32 %v747_v4, %v738_v38  ;;  %v111_v48 = vadd.f32 %v104_v16, %v79_v26  ;;  %v6608_v4 = vld [vmem:[#allocation22_spill] sm:$0xff]  ;;  %v6609_v16 = vld [vmem:[#allocation23_spill] sm:$0xff] }
  0x90   : > { %v1118_v15 = vrot.slane %v1104_v59, 1  ;;  %v267_v43 = vmul.f32 %v3691_v53, %v3118_v39  ;;  %v955_v26 = vmul.f32 %v3525_v27, %v6608_v4  ;;  %v987_v3 = vmul.f32 %v6610_v12, %v3539_v55  ;;  %v6611_v24 = vld [vmem:[#allocation45_spill] sm:$0xff]  ;;  %v6612_v39 = vld [vmem:[#allocation48_spill] sm:$0xff]  ;;  %v6616_v55 = vld [vmem:[#allocation51_spill] sm:$0xff] }
  0x91   : > { %v3677_v33 = vmax.f32 %v6604_v8, %v308_v32  ;;  %v152_v8 = vmul.f32 %v3067_v22, %v3659_v23  ;;  %v198_v32 = vmul.f32 %v3673_v63, %v3085_v46  ;;  %v244_v22 = vmul.f32 %v3688_v52, %v3099_v13 }
  0x92   : > { %v770_v60 = vadd.f32 %v763_v49, %v754_v6  ;;  %v136_v38 = vadd.f32 %v129_v42, %v111_v48  ;;  %v971_v46 = vmul.f32 %v6609_v16, %v3536_v40  ;;  %v1003_v13 = vmul.f32 %v3542_v14, %v6611_v24  ;;  %v6613_v6 = vld [vmem:[#allocation49_spill] sm:$0xff]  ;;  %v6615_v40 = vld [vmem:[#allocation50_spill] sm:$0xff] }
  0x93   : > { %6605 = vst [vmem:[#allocation73_spill] sm:$0xff] %v3677_v33  ;;  %340 = vrot.lane.b32.xlu0 %v3677_v33, %s2841_s28  ;;  %v3712_v33 = vrot.slane %v6149_v57, 1  ;;  %v1019_v53 = vmul.f32 %v6612_v39, %v3563_v11  ;;  %v1035_v48 = vmul.f32 %v6613_v6, %v3566_v58  ;;  %v1051_v12 = vmul.f32 %v3579_v17, %v6615_v40  ;;  %v6617_v39 = vld [vmem:[#allocation52_spill] sm:$0xff]  ;;  %v6620_v6 = vld [vmem:[#allocation17_spill] sm:$0xff] }
  0x94   : > { %v786_v49 = vadd.f32 %v779_v1, %v770_v60  ;;  %v159_v42 = vadd.f32 %v152_v8, %v136_v38  ;;  %v978_v16 = vadd.f32 %v971_v46, %v955_v26  ;;  %v1067_v24 = vmul.f32 %v6616_v55, %v3582_v34 }
  0x95   : > { %v1120_v57 = vsel %vm299_vm0, %v1118_v15, %v3712_v33  ;;  %v1083_v11 = vmul.f32 %v6617_v39, %v3601_v36  ;;  %v684_v60 = vmul.f32 %v6579_v7, %v3418_v0  ;;  %v700_v46 = vmul.f32 %v3421_v31, %v6580_v25  ;;  %v6621_v39 = vld [vmem:[#allocation18_spill] sm:$0xff] }
  0x96   : > { %v3728_v4 = vmax.f32 %v1104_v59, %v1120_v57  ;;  %v802_v14 = vadd.f32 %v795_v41, %v786_v49  ;;  %v182_v27 = vadd.f32 %v175_v10, %v159_v42  ;;  %v994_v59 = vadd.f32 %v987_v3, %v978_v16  ;;  %v6618_v10 = vld [vmem:[#allocation24_spill] sm:$0xff] }
  0x97   : > { %v716_v40 = vmul.f32 %v3426_v56, %v6583_v20  ;;  %v732_v55 = vmul.f32 %v6589_v29, %v3429_v18  ;;  %v748_v8 = vmul.f32 %v3432_v44, %v6592_v45  ;;  %v764_v57 = vmul.f32 %v6618_v10, %v6594_v9  ;;  %v6627_v44 = vld [vmem:[#allocation33_spill] sm:$0xff] }
  0x98   : > { %6614 = vst [vmem:[#allocation12_spill] sm:$0xff] %v3728_v4  ;;  %1152 = vrot.lane.b32.xlu1 %v3728_v4, %s2841_s28  ;;  %v818_v41 = vadd.f32 %v811_v37, %v802_v14  ;;  %v205_v1 = vadd.f32 %v198_v32, %v182_v27  ;;  %v1010_v3 = vadd.f32 %v1003_v13, %v994_v59  ;;  %v6619_v37 = vld [vmem:[#allocation15_spill] sm:$0xff]  ;;  %v3801_v31 = vstv %s3746_s25  ;;  %s4618_s25 = sld [smem:[#allocation2 + $0x3b]] }
  0x99   : > { %v707_v15 = vadd.f32 %v700_v46, %v684_v60  ;;  %v780_v38 = vmul.f32 %v6597_v62, %v3456_v61  ;;  %v796_v26 = vmul.f32 %v3459_v51, %v6598_v5  ;;  %v3763_v14 = vmul.f32 %v3462_v28, %v6601_v21  ;;  %v6622_v46 = vld [vmem:[#allocation21_spill] sm:$0xff]  ;;  %v6626_v61 = vld [vmem:[#allocation32_spill] sm:$0xff]  ;;  %6633 = vst [vmem:[#allocation22_spill] sm:$0xff] %v3801_v31 }
  0x9a   : > { %v3759_v49 = vadd.f32 %v3397_v50, %v818_v41  ;;  %v228_v27 = vadd.f32 %v221_v19, %v205_v1  ;;  %v412_v32 = vmul.f32 %v6619_v37, %v3636_v47  ;;  %v1026_v42 = vadd.f32 %v1019_v53, %v1010_v3  ;;  %v6623_v1 = vld [vmem:[#allocation26_spill] sm:$0xff] }
  0x9b   : > { %v723_v13 = vadd.f32 %v716_v40, %v707_v15  ;;  %v428_v16 = vmul.f32 %v3647_v2, %v6620_v6  ;;  %v444_v60 = vmul.f32 %v3656_v35, %v6621_v39  ;;  %v460_v41 = vmul.f32 %v6622_v46, %v3659_v23  ;;  %v6624_v15 = vld [vmem:[#allocation27_spill] sm:$0xff] }
  0x9c   : > { %v6167_v59 = vmax.f32 %v3759_v49, 0.0  ;;  %v251_v19 = vadd.f32 %v244_v22, %v228_v27  ;;  %v476_v4 = vmul.f32 %v3662_v30, %v6623_v1  ;;  %v1042_v53 = vadd.f32 %v1035_v48, %v1026_v42  ;;  %v6625_v27 = vld [vmem:[#allocation67_spill] sm:$0xff]  ;;  %v6629_v42 = vld [vmem:[#allocation70_spill] sm:$0xff] }
  0x9d   : > { %v739_v40 = vadd.f32 %v732_v55, %v723_v13  ;;  %v435_v3 = vadd.f32 %v428_v16, %v412_v32  ;;  %v492_v28 = vmul.f32 %v3673_v63, %v6624_v15  ;;  %v508_v10 = vmul.f32 %v6626_v61, %v6625_v27  ;;  %v6628_v32 = vld [vmem:[#allocation35_spill] sm:$0xff]  ;;  %v6630_v16 = vld [vmem:[#allocation82_spill] sm:$0xff] }
  0x9e   : > { %v3784_v51 = vrot.slane %v6167_v59, 1  ;;  %v274_v22 = vadd.f32 %v267_v43, %v251_v19  ;;  %v524_v18 = vmul.f32 %v3688_v52, %v6627_v44  ;;  %v1058_v56 = vadd.f32 %v1051_v12, %v1042_v53  ;;  %v6631_v19 = vld [vmem:[#allocation47_spill] sm:$0xff]  ;;  %v6635_v12 = vld [vmem:[#allocation28_spill] sm:$0xff]  ;;  %v6712_v15 = vld [vmem:[#allocation42_spill] sm:$0xff] }
  0x9f   : > { %v755_v48 = vadd.f32 %v748_v8, %v739_v40  ;;  %v451_v55 = vadd.f32 %v444_v60, %v435_v3  ;;  %v3792_v13 = vmul.f32 %v6629_v42, %v6628_v32  ;;  %v3804_v0 = vstv %s3752_s26  ;;  %v6713_v46 = vld [vmem:[#allocation43_spill] sm:$0xff]  ;;  %s4626_s26 = sld [smem:[#allocation2 + $0x3c]] }
  0xa0   : > { %v851_v43 = vsel %vm299_vm0, %v6630_v16, %v3784_v51  ;;  %v3798_v59 = vadd.f32 %v6631_v19, %v274_v22  ;;  %6634 = vst [vmem:[#allocation23_spill] sm:$0xff] %v3804_v0  ;;  %v6636_v8 = vmax.f32 %v6635_v12, 0.0  ;;  %v1074_v53 = vadd.f32 %v1067_v24, %v1058_v56  ;;  %v3814_v16 = vld [vmem:[%s2891_s12] sm:$0xff]  ;;  %v3819_v19 = vld [vmem:[%s2891_s12 + $0x8] sm:$0xff] }
  0xa1   : > { %v771_v40 = vadd.f32 %v764_v57, %v755_v48  ;;  %v467_v3 = vadd.f32 %v460_v41, %v451_v55  ;;  %6638 = vst [vmem:[#allocation45_spill] sm:$0xff] %v3814_v16  ;;  %v1226_v22 = vmul.f32 %v3814_v16, %v3801_v31  ;;  %6639 = vst [vmem:[#allocation48_spill] sm:$0xff] %v3819_v19  ;;  %v3833_v48 = vld [vmem:[%s2891_s12 + $0x40] sm:$0xff]  ;;  %v3842_v16 = vstv %s3771_s2  ;;  %s4639_s2 = sld [smem:[#allocation2 + $0x3d]] }
  0xa2   : > { %6632 = vst [vmem:[#allocation76_spill] sm:$0xff] %v3798_v59  ;;  %v3810_v60 = vmax.f32 %v6636_v8, %v851_v43  ;;  %v6176_v32 = vmax.f32 %v3798_v59, 0.0  ;;  %v1227_v12 = vmul.f32 %v3819_v19, %v3801_v31  ;;  %v3824_v43 = vld [vmem:[%s2891_s12 + $0x38] sm:$0xff]  ;;  %v1090_v24 = vadd.f32 %v1083_v11, %v1074_v53  ;;  %6641 = vst [vmem:[#allocation50_spill] sm:$0xff] %v3833_v48 }
  0xa3   : > { %6640 = vst [vmem:[#allocation49_spill] sm:$0xff] %v3824_v43  ;;  %v1242_v56 = vmul.f32 %v3824_v43, %v3804_v0  ;;  %v787_v57 = vadd.f32 %v780_v38, %v771_v40  ;;  %v483_v41 = vadd.f32 %v476_v4, %v467_v3  ;;  %v1243_v55 = vmul.f32 %v3833_v48, %v3804_v0  ;;  %v6645_v11 = vld [vmem:[#allocation95_spill] sm:$0xff]  ;;  %v6647_v3 = vld [vmem:[#allocation65_spill] sm:$0xff] }
  0xa4   : > { %6637 = vst [vmem:[#allocation34_spill] sm:$0xff] %v3810_v60  ;;  %883 = vrot.lane.b32.xlu0 %v3810_v60, %s2841_s28  ;;  %v3839_v8 = vrot.slane %v6176_v32, 1  ;;  %6643 = vst [vmem:[#allocation52_spill] sm:$0xff] %v3842_v16  ;;  %v3845_v19 = vstv %s3778_s1  ;;  %v3850_v4 = vadd.f32 %v6645_v11, %v1090_v24  ;;  %v3863_v60 = vld [vmem:[%s2891_s12 + $0x78] sm:$0xff]  ;;  %v6651_v24 = vld [vmem:[#allocation97_spill] sm:$0xff]  ;;  %v3884_v44 = vstv %s3806_s27  ;;  %s4670_s1 = sld [smem:[#allocation2 + $0x3e]] }
  0xa5   : > { %v1249_v43 = vadd.f32 %v1242_v56, %v1226_v22  ;;  %6644 = vst [vmem:[#allocation15_spill] sm:$0xff] %v3845_v19  ;;  %v803_v38 = vadd.f32 %v796_v26, %v787_v57  ;;  %v499_v53 = vadd.f32 %v492_v28, %v483_v41  ;;  %v1250_v40 = vadd.f32 %v1243_v55, %v1227_v12  ;;  %v3858_v56 = vld [vmem:[%s2891_s12 + $0x70] sm:$0xff]  ;;  %v3868_v28 = vld [vmem:[%s2891_s12 + $0x1] sm:$0xff]  ;;  %s4680_s27 = sld [smem:[#allocation5 + $0x6]] }
  0xa6   : > { %6642 = vst [vmem:[#allocation51_spill] sm:$0xff] %v3839_v8  ;;  %6646 = vst [vmem:[#allocation17_spill] sm:$0xff] %v3850_v4  ;;  %v310_v22 = vsel %vm299_vm0, %v6647_v3, %v3839_v8  ;;  %v1258_v32 = vmul.f32 %v3858_v56, %v3842_v16  ;;  %v1259_v26 = vmul.f32 %v3863_v60, %v3842_v16  ;;  %v6652_v57 = vmax.f32 %v6651_v24, 0.0 }
  0xa7   : > { %6648 = vst [vmem:[#allocation18_spill] sm:$0xff] %v3858_v56  ;;  %6649 = vst [vmem:[#allocation67_spill] sm:$0xff] %v3863_v60  ;;  %v1274_v12 = vmul.f32 %v3868_v28, %v3845_v19  ;;  %v6186_v55 = vmax.f32 %v3850_v4, 0.0  ;;  %v819_v3 = vadd.f32 %v3763_v14, %v803_v38  ;;  %v515_v56 = vadd.f32 %v508_v10, %v499_v53  ;;  %v3879_v60 = vld [vmem:[%s2891_s12 + $0x9] sm:$0xff]  ;;  %v6689_v4 = vld [vmem:[#allocation87_spill] sm:$0xff] }
  0xa8   : > { %6650 = vst [vmem:[#allocation70_spill] sm:$0xff] %v3868_v28  ;;  %v3874_v41 = vmax.f32 %v6652_v57, %v310_v22  ;;  %v1265_v48 = vadd.f32 %v1258_v32, %v1249_v43  ;;  %v1266_v59 = vadd.f32 %v1259_v26, %v1250_v40  ;;  %6654 = vst [vmem:[#allocation28_spill] sm:$0xff] %v3879_v60  ;;  %v3898_v43 = vld [vmem:[%s2891_s12 + $0x39] sm:$0xff]  ;;  %v3905_v22 = vld [vmem:[%s2891_s12 + $0x41] sm:$0xff]  ;;  %v3910_v24 = vstv %s3828_s29  ;;  %s4811_s29 = sld [smem:[#allocation2 + $0x3f]] }
  0xa9   : > { %v1275_v8 = vmul.f32 %v3879_v60, %v3845_v19  ;;  %6655 = vst [vmem:[#allocation65_spill] sm:$0xff] %v3884_v44  ;;  %v3892_v10 = vrot.slane %v6186_v55, 1  ;;  %v3895_v14 = vadd.f32 %v3397_v50, %v819_v3  ;;  %v531_v32 = vadd.f32 %v524_v18, %v515_v56  ;;  %6658 = vst [vmem:[#allocation99_spill] sm:$0xff] %v3898_v43  ;;  %v6685_v60 = vld [vmem:[#allocation96_spill] sm:$0xff]  ;;  %v6688_v50 = vld [vmem:[#allocation57_spill] sm:$0xff] }
  0xaa   : > { %6653 = vst [vmem:[#allocation82_spill] sm:$0xff] %v3874_v41  ;;  %342 = vrot.lane.b32.xlu1 %v3874_v41, %s2841_s28  ;;  %v1290_v38 = vmul.f32 %v3898_v43, %v3884_v44  ;;  %v1281_v53 = vadd.f32 %v1274_v12, %v1265_v48  ;;  %6659 = vst [vmem:[#allocation100_spill] sm:$0xff] %v3905_v22  ;;  %v1291_v26 = vmul.f32 %v3905_v22, %v3884_v44  ;;  %v3918_v48 = vld [vmem:[%s2891_s12 + $0x71] sm:$0xff]  ;;  %v3927_v41 = vld [vmem:[%s2891_s12 + $0x79] sm:$0xff] }
  0xab   : > { %6656 = vst [vmem:[#allocation97_spill] sm:$0xff] %v3892_v10  ;;  %6657 = vst [vmem:[#allocation98_spill] sm:$0xff] %v3895_v14  ;;  %v1282_v40 = vadd.f32 %v1275_v8, %v1266_v59  ;;  %v1122_v18 = vsel %vm299_vm0, %v3712_v33, %v3892_v10  ;;  %v6192_v56 = vmax.f32 %v3895_v14, 0.0  ;;  %v547_v57 = vadd.f32 %v3792_v13, %v531_v32  ;;  %v6666_v32 = vld [vmem:[#allocation36_spill] sm:$0xff]  ;;  %v6686_v14 = vld [vmem:[#allocation86_spill] sm:$0xff] }
  0xac   : > { %6660 = vst [vmem:[#allocation101_spill] sm:$0xff] %v3910_v24  ;;  %6661 = vst [vmem:[#allocation102_spill] sm:$0xff] %v3918_v48  ;;  %v1306_v59 = vmul.f32 %v3918_v48, %v3910_v24  ;;  %v6662_v8 = vmax.f32 %v3680_v54, 0.0  ;;  %v1297_v3 = vadd.f32 %v1290_v38, %v1281_v53  ;;  %v1307_v33 = vmul.f32 %v3927_v41, %v3910_v24 }
  0xad   : > { %v1298_v55 = vadd.f32 %v1291_v26, %v1282_v40  ;;  %6664 = vst [vmem:[#allocation104_spill] sm:$0xff] %v3927_v41  ;;  %v3933_v13 = vrot.slane %v6192_v56, 1  ;;  %v3936_v43 = vadd.f32 %v6666_v32, %v547_v57  ;;  %v3939_v48 = vstv %s3847_s30  ;;  %v3947_v40 = vld [vmem:[%s2891_s12 + $0x2] sm:$0xff]  ;;  %s4821_s30 = sld [smem:[#allocation2 + $0x40]] }
  0xae   : > { %v3924_v12 = vmax.f32 %v6662_v8, %v1122_v18  ;;  %6668 = vst [vmem:[#allocation107_spill] sm:$0xff] %v3939_v48  ;;  %v3942_v54 = vstv %s3852_s4  ;;  %v1313_v38 = vadd.f32 %v1306_v59, %v1297_v3  ;;  %6670 = vst [vmem:[#allocation109_spill] sm:$0xff] %v3947_v40  ;;  %v1322_v26 = vmul.f32 %v3947_v40, %v3939_v48  ;;  %v3952_v18 = vld [vmem:[%s2891_s12 + $0xa] sm:$0xff]  ;;  %s4834_s4 = sld [smem:[#allocation2 + $0x41]] }
  0xaf   : > { %6665 = vst [vmem:[#allocation105_spill] sm:$0xff] %v3933_v13  ;;  %6667 = vst [vmem:[#allocation106_spill] sm:$0xff] %v3936_v43  ;;  %v1314_v53 = vadd.f32 %v1307_v33, %v1298_v55  ;;  %v1323_v57 = vmul.f32 %v3952_v18, %v3939_v48  ;;  %v853_v8 = vsel %vm299_vm0, %v3784_v51, %v3933_v13  ;;  %v6208_v59 = vmax.f32 %v3936_v43, 0.0  ;;  %v3961_v55 = vld [vmem:[%s2891_s12 + $0x3a] sm:$0xff]  ;;  %v3966_v33 = vld [vmem:[%s2891_s12 + $0x42] sm:$0xff] }
  0xb0   : > { %6663 = vst [vmem:[#allocation103_spill] sm:$0xff] %v3924_v12  ;;  %6669 = vst [vmem:[#allocation108_spill] sm:$0xff] %v3942_v54  ;;  %1154 = vrot.lane.b32.xlu0 %v3924_v12, %s2841_s28  ;;  %v1338_v3 = vmul.f32 %v3961_v55, %v3942_v54  ;;  %v1339_v56 = vmul.f32 %v3966_v33, %v3942_v54  ;;  %v6674_v12 = vmax.f32 %v3759_v49, 0.0  ;;  %v3975_v41 = vstv %s3886_s7  ;;  %v6687_v13 = vld [vmem:[#allocation56_spill] sm:$0xff]  ;;  %s4842_s7 = sld [smem:[#allocation2 + $0x42]] }
  0xb1   : > { %6671 = vst [vmem:[#allocation110_spill] sm:$0xff] %v3952_v18  ;;  %6672 = vst [vmem:[#allocation111_spill] sm:$0xff] %v3961_v55  ;;  %v1329_v28 = vadd.f32 %v1322_v26, %v1313_v38  ;;  %v1330_v18 = vadd.f32 %v1323_v57, %v1314_v53  ;;  %v3979_v51 = vrot.slane %v6208_v59, 1  ;;  %v3982_v55 = vld [vmem:[%s2891_s12 + $0x72] sm:$0xff]  ;;  %v6682_v57 = vld [vmem:[#allocation84_spill] sm:$0xff]  ;;  %v988_v32 = vmul.f32 %v6687_v13, %v6686_v14 }
  0xb2   : > { %6673 = vst [vmem:[#allocation112_spill] sm:$0xff] %v3966_v33  ;;  %v3972_v40 = vmax.f32 %v6674_v12, %v853_v8  ;;  %6676 = vst [vmem:[#allocation114_spill] sm:$0xff] %v3975_v41  ;;  %v1354_v22 = vmul.f32 %v3982_v55, %v3975_v41  ;;  %v3987_v33 = vld [vmem:[%s2891_s12 + $0x7a] sm:$0xff]  ;;  %v3992_v12 = vstv %s3902_s8  ;;  %v6681_v26 = vld [vmem:[#allocation54_spill] sm:$0xff]  ;;  %s4893_s8 = sld [smem:[#allocation2 + $0x43]] }
  0xb3   : > { %6677 = vst [vmem:[#allocation115_spill] sm:$0xff] %v3979_v51  ;;  %6678 = vst [vmem:[#allocation116_spill] sm:$0xff] %v3982_v55  ;;  %v1355_v49 = vmul.f32 %v3987_v33, %v3975_v41  ;;  %v1345_v38 = vadd.f32 %v1338_v3, %v1329_v28  ;;  %v1346_v53 = vadd.f32 %v1339_v56, %v1330_v18  ;;  %v6683_v59 = vld [vmem:[#allocation85_spill] sm:$0xff]  ;;  %v6684_v55 = vld [vmem:[#allocation55_spill] sm:$0xff] }
  0xb4   : > { %6675 = vst [vmem:[#allocation113_spill] sm:$0xff] %v3972_v40  ;;  %6679 = vst [vmem:[#allocation117_spill] sm:$0xff] %v3987_v33  ;;  %885 = vrot.lane.b32.xlu1 %v3972_v40, %s2841_s28  ;;  %v956_v8 = vmul.f32 %v6682_v57, %v6681_v26  ;;  %v972_v43 = vmul.f32 %v6684_v55, %v6683_v59  ;;  %v582_v33 = vsel %vm299_vm0, %v6685_v60, %v3979_v51  ;;  %v6690_v28 = vld [vmem:[#allocation88_spill] sm:$0xff]  ;;  %v6691_v3 = vld [vmem:[#allocation58_spill] sm:$0xff] }
  0xb5   : > { %6680 = vst [vmem:[#allocation118_spill] sm:$0xff] %v3992_v12  ;;  %v1004_v40 = vmul.f32 %v6689_v4, %v6688_v50  ;;  %v1020_v56 = vmul.f32 %v6691_v3, %v6690_v28  ;;  %v4010_v18 = vld [vmem:[%s2891_s12 + $0x30] sm:$0x3]  ;;  %v4013_v26 = vld [vmem:[%s2891_s12 + $0x68] sm:$0x3]  ;;  %v1361_v10 = vadd.f32 %v1354_v22, %v1345_v38  ;;  %v1362_v60 = vadd.f32 %v1355_v49, %v1346_v53  ;;  %v6698_v3 = vld [vmem:[#allocation59_spill] sm:$0xff] }
  0xb6   : > { %v6692_v57 = vld [vmem:[#allocation92_spill] sm:$0xff]  ;;  %v979_v13 = vadd.f32 %v972_v43, %v956_v8  ;;  %v4020_v51 = vld [vmem:[%s2891_s12 + $0xa0] sm:$0x3]  ;;  %v4023_v50 = vld [vmem:[%s2891_s12 + $0x31] sm:$0x3]  ;;  %v1036_v28 = vmul.f32 %v6698_v3, %v3566_v58 }
  0xb7   : > { %v6693_v55 = vmax.f32 %v6692_v57, 0.0  ;;  %6695 = vst [vmem:[#allocation55_spill] sm:$0xff] %v4020_v51  ;;  %6696 = vst [vmem:[#allocation96_spill] sm:$0xff] %v4023_v50  ;;  %v4026_v4 = vld [vmem:[%s2891_s12 + $0x69] sm:$0x3]  ;;  %v6701_v49 = vld [vmem:[#allocation62_spill] sm:$0xff]  ;;  %v1370_v53 = vadd.f32 %v3992_v12, %v1361_v10  ;;  %v4045_v8 = vadd.f32 %v3992_v12, %v1362_v60 }
  0xb8   : > { %6697 = vst [vmem:[#allocation56_spill] sm:$0xff] %v4026_v4  ;;  %v6699_v14 = vld [vmem:[#allocation60_spill] sm:$0xff]  ;;  %v4036_v38 = vmul.f32 %v6701_v49, %v3601_v36  ;;  %v6708_v36 = vld [vmem:[#allocation38_spill] sm:$0xff] }
  0xb9   : > { %v4017_v59 = vmax.f32 %v6693_v55, %v582_v33  ;;  %v1052_v57 = vmul.f32 %v3579_v17, %v6699_v14  ;;  %v6700_v33 = vld [vmem:[#allocation61_spill] sm:$0xff]  ;;  %v4039_v43 = vld [vmem:[%s2891_s12 + $0xa1] sm:$0x3]  ;;  %6703 = vst [vmem:[#allocation58_spill] sm:$0xff] %v4045_v8  ;;  %v995_v55 = vadd.f32 %v988_v32, %v979_v13  ;;  %v4050_v17 = vld [vmem:[%s2891_s12 + $0x32] sm:$0x3] }
  0xba   : > { %v1068_v22 = vmul.f32 %v6700_v33, %v3582_v34  ;;  %6702 = vst [vmem:[#allocation57_spill] sm:$0xff] %v4039_v43  ;;  %v6704_v14 = vld [vmem:[#allocation37_spill] sm:$0xff]  ;;  %6705 = vst [vmem:[#allocation92_spill] sm:$0xff] %v4050_v17  ;;  %v4056_v49 = vld [vmem:[%s2891_s12 + $0xa2] sm:$0x3]  ;;  %v105_v34 = vmul.f32 %v4013_v26, %v6708_v36  ;;  %v6239_v12 = vmax.f32 %v4045_v8, 0.0  ;;  %v199_v1 = vmul.f32 %v4039_v43, %v6712_v15 }
  0xbb   : > { %6694 = vst [vmem:[#allocation54_spill] sm:$0xff] %v4017_v59  ;;  %614 = vrot.lane.b32.xlu0 %v4017_v59, %s2841_s28  ;;  %v80_v3 = vmul.f32 %v6704_v14, %v4010_v18  ;;  %v4053_v33 = vld [vmem:[%s2891_s12 + $0x6a] sm:$0x3]  ;;  %6707 = vst [vmem:[#allocation60_spill] sm:$0xff] %v4056_v49  ;;  %v6709_v59 = vld [vmem:[#allocation39_spill] sm:$0xff]  ;;  %v1377_v14 = vmax.f32 %v1370_v53, 0.0  ;;  %v1011_v61 = vadd.f32 %v1004_v40, %v995_v55 }
  0xbc   : > { %6706 = vst [vmem:[#allocation59_spill] sm:$0xff] %v4053_v33  ;;  %v130_v10 = vmul.f32 %v4020_v51, %v6709_v59  ;;  %v6710_v60 = vld [vmem:[#allocation40_spill] sm:$0xff]  ;;  %v6711_v32 = vld [vmem:[#allocation41_spill] sm:$0xff]  ;;  %v222_v59 = vmul.f32 %v6713_v46, %v4050_v17  ;;  %v4079_v40 = vrot.slane %v6239_v12, 1 }
  0xbd   : > { %v153_v58 = vmul.f32 %v6710_v60, %v4023_v50  ;;  %v176_v13 = vmul.f32 %v4026_v4, %v6711_v32  ;;  %v112_v36 = vadd.f32 %v105_v34, %v80_v3  ;;  %v6714_v51 = vld [vmem:[#allocation44_spill] sm:$0xff]  ;;  %v6715_v50 = vld [vmem:[#allocation46_spill] sm:$0xff]  ;;  %v1391_v53 = vrot.slane %v1377_v14, 1 }
  0xbe   : > { %v245_v60 = vmul.f32 %v4053_v33, %v6714_v51  ;;  %v4075_v32 = vmul.f32 %v4056_v49, %v6715_v50  ;;  %v1027_v55 = vadd.f32 %v1020_v56, %v1011_v61  ;;  %v4082_v15 = vld [vmem:[%s2891_s12 + $0x10] sm:$0xff]  ;;  %v4087_v51 = vld [vmem:[%s2891_s12 + $0x48] sm:$0xff]  ;;  %v4092_v3 = vld [vmem:[%s2891_s12 + $0x80] sm:$0xff] }
  0xbf   : > { %6716 = vst [vmem:[#allocation61_spill] sm:$0xff] %v4082_v15  ;;  %v1228_v34 = vmul.f32 %v4082_v15, %v3801_v31  ;;  %v137_v46 = vadd.f32 %v130_v10, %v112_v36  ;;  %6717 = vst [vmem:[#allocation62_spill] sm:$0xff] %v4087_v51  ;;  %v1244_v50 = vmul.f32 %v4087_v51, %v3804_v0  ;;  %v4097_v8 = vld [vmem:[%s2891_s12 + $0x11] sm:$0xff]  ;;  %v4104_v36 = vld [vmem:[%s2891_s12 + $0x49] sm:$0xff] }
  0xc0   : > { %6718 = vst [vmem:[#allocation37_spill] sm:$0xff] %v4092_v3  ;;  %v1260_v12 = vmul.f32 %v4092_v3, %v3842_v16  ;;  %6719 = vst [vmem:[#allocation38_spill] sm:$0xff] %v4097_v8  ;;  %v1276_v61 = vmul.f32 %v4097_v8, %v3845_v19  ;;  %v1393_v56 = vsel %vm299_vm0, %v1391_v53, %v4079_v40  ;;  %v4109_v15 = vld [vmem:[%s2891_s12 + $0x81] sm:$0xff]  ;;  %v4116_v49 = vld [vmem:[%s2891_s12 + $0x12] sm:$0xff] }
  0xc1   : > { %v1043_v10 = vadd.f32 %v1036_v28, %v1027_v55  ;;  %6720 = vst [vmem:[#allocation39_spill] sm:$0xff] %v4104_v36  ;;  %v1292_v51 = vmul.f32 %v4104_v36, %v3884_v44  ;;  %6721 = vst [vmem:[#allocation40_spill] sm:$0xff] %v4109_v15  ;;  %v1308_v3 = vmul.f32 %v4109_v15, %v3910_v24  ;;  %v4121_v55 = vld [vmem:[%s2891_s12 + $0x4a] sm:$0xff]  ;;  %v4126_v8 = vld [vmem:[%s2891_s12 + $0x82] sm:$0xff] }
  0xc2   : > { %v4113_v16 = vmax.f32 %v1377_v14, %v1393_v56  ;;  %v160_v0 = vadd.f32 %v153_v58, %v137_v46  ;;  %v1251_v31 = vadd.f32 %v1244_v50, %v1228_v34  ;;  %6723 = vst [vmem:[#allocation42_spill] sm:$0xff] %v4116_v49  ;;  %v1324_v53 = vmul.f32 %v4116_v49, %v3939_v48 }
  0xc3   : > { %v1059_v28 = vadd.f32 %v1052_v57, %v1043_v10  ;;  %6724 = vst [vmem:[#allocation43_spill] sm:$0xff] %v4121_v55  ;;  %v1340_v36 = vmul.f32 %v4121_v55, %v3942_v54  ;;  %6725 = vst [vmem:[#allocation44_spill] sm:$0xff] %v4126_v8  ;;  %v1356_v15 = vmul.f32 %v4126_v8, %v3975_v41 }
  0xc4   : > { %6722 = vst [vmem:[#allocation41_spill] sm:$0xff] %v4113_v16  ;;  %v685_v58 = vmul.f32 %v6579_v7, %v3636_v47  ;;  %1425 = vrot.lane.b32.xlu1 %v4113_v16, %s2841_s28  ;;  %v183_v14 = vadd.f32 %v176_v13, %v160_v0  ;;  %v1267_v34 = vadd.f32 %v1260_v12, %v1251_v31 }
  0xc5   : > { %v701_v57 = vmul.f32 %v3647_v2, %v6580_v25  ;;  %v717_v46 = vmul.f32 %v3656_v35, %v6583_v20  ;;  %v1075_v50 = vadd.f32 %v1068_v22, %v1059_v28  ;;  %v733_v56 = vmul.f32 %v6589_v29, %v3659_v23 }
  0xc6   : > { %v749_v10 = vmul.f32 %v3662_v30, %v6592_v45  ;;  %v765_v7 = vmul.f32 %v3673_v63, %v6594_v9  ;;  %v206_v47 = vadd.f32 %v199_v1, %v183_v14  ;;  %v1283_v16 = vadd.f32 %v1276_v61, %v1267_v34  ;;  %v6727_v34 = vld [vmem:[#allocation96_spill] sm:$0xff] }
  0xc7   : > { %v708_v0 = vadd.f32 %v701_v57, %v685_v58  ;;  %v781_v31 = vmul.f32 %v6597_v62, %v6625_v27  ;;  %v1091_v12 = vadd.f32 %v4036_v38, %v1075_v50  ;;  %v797_v22 = vmul.f32 %v3688_v52, %v6598_v5  ;;  %v6726_v38 = vld [vmem:[#allocation55_spill] sm:$0xff]  ;;  %v6728_v57 = vld [vmem:[#allocation21_spill] sm:$0xff] }
  0xc8   : > { %v4151_v13 = vmul.f32 %v6629_v42, %v6601_v21  ;;  %v413_v28 = vmul.f32 %v6619_v37, %v4010_v18  ;;  %v229_v45 = vadd.f32 %v222_v59, %v206_v47  ;;  %v1299_v9 = vadd.f32 %v1292_v51, %v1283_v16  ;;  %v6729_v21 = vld [vmem:[#allocation26_spill] sm:$0xff]  ;;  %v6730_v51 = vld [vmem:[#allocation27_spill] sm:$0xff] }
  0xc9   : > { %v724_v1 = vadd.f32 %v717_v46, %v708_v0  ;;  %v429_v61 = vmul.f32 %v4013_v26, %v6620_v6  ;;  %v4158_v58 = vadd.f32 %v6645_v11, %v1091_v12  ;;  %v445_v14 = vmul.f32 %v6726_v38, %v6621_v39  ;;  %v6731_v0 = vld [vmem:[#allocation32_spill] sm:$0xff]  ;;  %v6732_v12 = vld [vmem:[#allocation33_spill] sm:$0xff] }
  0xca   : > { %v461_v50 = vmul.f32 %v6728_v57, %v6727_v34  ;;  %v477_v5 = vmul.f32 %v4026_v4, %v6729_v21  ;;  %v252_v37 = vadd.f32 %v245_v60, %v229_v45  ;;  %v1315_v47 = vadd.f32 %v1308_v3, %v1299_v9  ;;  %v6733_v3 = vld [vmem:[#allocation35_spill] sm:$0xff] }
  0xcb   : > { %v740_v16 = vadd.f32 %v733_v56, %v724_v1  ;;  %v436_v59 = vadd.f32 %v429_v61, %v413_v28  ;;  %v6269_v6 = vmax.f32 %v4158_v58, 0.0  ;;  %v493_v46 = vmul.f32 %v4039_v43, %v6730_v51  ;;  %v6734_v56 = vld [vmem:[#allocation60_spill] sm:$0xff]  ;;  %v4183_v1 = vld [vmem:[%s2891_s12 + $0x18] sm:$0xff]  ;;  %v6791_v43 = vld [vmem:[#allocation37_spill] sm:$0xff] }
  0xcc   : > { %v509_v39 = vmul.f32 %v6731_v0, %v4050_v17  ;;  %v525_v57 = vmul.f32 %v4053_v33, %v6732_v12  ;;  %v275_v62 = vadd.f32 %v4075_v32, %v252_v37  ;;  %v1331_v21 = vadd.f32 %v1324_v53, %v1315_v47  ;;  %6735 = vst [vmem:[#allocation46_spill] sm:$0xff] %v4183_v1  ;;  %v6736_v61 = vld [vmem:[#allocation22_spill] sm:$0xff]  ;;  %v6738_v32 = vld [vmem:[#allocation23_spill] sm:$0xff] }
  0xcd   : > { %v756_v45 = vadd.f32 %v749_v10, %v740_v16  ;;  %v452_v9 = vadd.f32 %v445_v14, %v436_v59  ;;  %v4176_v60 = vrot.slane %v6269_v6, 1  ;;  %v4180_v28 = vmul.f32 %v6734_v56, %v6733_v3  ;;  %v4188_v0 = vld [vmem:[%s2891_s12 + $0x50] sm:$0xff]  ;;  %v6739_v10 = vld [vmem:[#allocation47_spill] sm:$0xff]  ;;  %v4199_v6 = vld [vmem:[%s2891_s12 + $0x88] sm:$0xff] }
  0xce   : > { %v1229_v51 = vmul.f32 %v4183_v1, %v6736_v61  ;;  %6737 = vst [vmem:[#allocation55_spill] sm:$0xff] %v4188_v0  ;;  %v1245_v53 = vmul.f32 %v4188_v0, %v6738_v32  ;;  %v4193_v14 = vadd.f32 %v6739_v10, %v275_v62  ;;  %v1347_v37 = vadd.f32 %v1340_v36, %v1331_v21  ;;  %v6740_v59 = vld [vmem:[#allocation97_spill] sm:$0xff]  ;;  %v6742_v61 = vld [vmem:[#allocation52_spill] sm:$0xff]  ;;  %v4204_v56 = vld [vmem:[%s2891_s12 + $0x19] sm:$0xff] }
  0xcf   : > { %v772_v47 = vadd.f32 %v765_v7, %v756_v45  ;;  %v468_v16 = vadd.f32 %v461_v50, %v452_v9  ;;  %v1124_v12 = vsel %vm299_vm0, %v6740_v59, %v4176_v60  ;;  %6741 = vst [vmem:[#allocation96_spill] sm:$0xff] %v4199_v6  ;;  %v1261_v1 = vmul.f32 %v4199_v6, %v6742_v61  ;;  %v6744_v36 = vld [vmem:[#allocation17_spill] sm:$0xff]  ;;  %v6760_v32 = vld [vmem:[#allocation14_spill] sm:$0xff]  ;;  %v6790_v33 = vld [vmem:[#allocation67_spill] sm:$0xff] }
  0xd0   : > { %v1252_v3 = vadd.f32 %v1245_v53, %v1229_v51  ;;  %6743 = vst [vmem:[#allocation21_spill] sm:$0xff] %v4204_v56  ;;  %v1277_v62 = vmul.f32 %v4204_v56, %v3845_v19  ;;  %v6745_v7 = vmax.f32 %v6744_v36, 0.0  ;;  %v6272_v50 = vmax.f32 %v4193_v14, 0.0  ;;  %v4214_v10 = vld [vmem:[%s2891_s12 + $0x51] sm:$0xff]  ;;  %v4219_v61 = vld [vmem:[%s2891_s12 + $0x89] sm:$0xff] }
  0xd1   : > { %v1363_v45 = vadd.f32 %v1356_v15, %v1347_v37  ;;  %v788_v9 = vadd.f32 %v781_v31, %v772_v47  ;;  %v484_v51 = vadd.f32 %v477_v5, %v468_v16  ;;  %6747 = vst [vmem:[#allocation27_spill] sm:$0xff] %v4214_v10  ;;  %v1293_v59 = vmul.f32 %v4214_v10, %v3884_v44  ;;  %v6749_v5 = vld [vmem:[#allocation118_spill] sm:$0xff]  ;;  %v4233_v37 = vld [vmem:[%s2891_s12 + $0x1a] sm:$0xff]  ;;  %v6759_v19 = vld [vmem:[#allocation85_spill] sm:$0xff] }
  0xd2   : > { %v4210_v21 = vmax.f32 %v6745_v7, %v1124_v12  ;;  %v1268_v53 = vadd.f32 %v1261_v1, %v1252_v3  ;;  %6748 = vst [vmem:[#allocation32_spill] sm:$0xff] %v4219_v61  ;;  %v1309_v36 = vmul.f32 %v4219_v61, %v3910_v24  ;;  %v4227_v15 = vrot.slane %v6272_v50, 1  ;;  %6750 = vst [vmem:[#allocation33_spill] sm:$0xff] %v4233_v37  ;;  %v4240_v3 = vld [vmem:[%s2891_s12 + $0x52] sm:$0xff]  ;;  %v4245_v50 = vld [vmem:[%s2891_s12 + $0x8a] sm:$0xff] }
  0xd3   : > { %v4230_v31 = vadd.f32 %v6749_v5, %v1363_v45  ;;  %v804_v1 = vadd.f32 %v797_v22, %v788_v9  ;;  %v1325_v47 = vmul.f32 %v4233_v37, %v3939_v48  ;;  %v500_v16 = vadd.f32 %v493_v46, %v484_v51  ;;  %6751 = vst [vmem:[#allocation35_spill] sm:$0xff] %v4240_v3  ;;  %v6753_v22 = vld [vmem:[#allocation51_spill] sm:$0xff]  ;;  %v6755_v51 = vld [vmem:[#allocation84_spill] sm:$0xff]  ;;  %v6780_v0 = vld [vmem:[#allocation81_spill] sm:$0xff] }
  0xd4   : > { %6746 = vst [vmem:[#allocation26_spill] sm:$0xff] %v4210_v21  ;;  %1156 = vrot.lane.b32.xlu0 %v4210_v21, %s2841_s28  ;;  %v1284_v12 = vadd.f32 %v1277_v62, %v1268_v53  ;;  %v1341_v7 = vmul.f32 %v4240_v3, %v3942_v54  ;;  %6752 = vst [vmem:[#allocation47_spill] sm:$0xff] %v4245_v50  ;;  %v1357_v45 = vmul.f32 %v4245_v50, %v3975_v41  ;;  %v6754_v62 = vld [vmem:[#allocation13_spill] sm:$0xff]  ;;  %v6756_v54 = vld [vmem:[#allocation76_spill] sm:$0xff] }
  0xd5   : > { %v312_v9 = vsel %vm299_vm0, %v6753_v22, %v4227_v15  ;;  %v6296_v21 = vmax.f32 %v4230_v31, 0.0  ;;  %v820_v46 = vadd.f32 %v4151_v13, %v804_v1  ;;  %v957_v53 = vmul.f32 %v6755_v51, %v6754_v62  ;;  %v6761_v3 = vld [vmem:[#allocation77_spill] sm:$0xff]  ;;  %v6763_v1 = vld [vmem:[#allocation86_spill] sm:$0xff]  ;;  %v6764_v62 = vld [vmem:[#allocation16_spill] sm:$0xff] }
  0xd6   : > { %v6757_v48 = vmax.f32 %v6756_v54, 0.0  ;;  %v516_v41 = vadd.f32 %v509_v39, %v500_v16  ;;  %v1300_v44 = vadd.f32 %v1293_v59, %v1284_v12  ;;  %v973_v50 = vmul.f32 %v6760_v32, %v6759_v19  ;;  %v6765_v61 = vld [vmem:[#allocation19_spill] sm:$0xff]  ;;  %v6767_v59 = vld [vmem:[#allocation88_spill] sm:$0xff] }
  0xd7   : > { %v4268_v22 = vrot.slane %v6296_v21, 1  ;;  %v4271_v13 = vadd.f32 %v6761_v3, %v820_v46  ;;  %v989_v37 = vmul.f32 %v6764_v62, %v6763_v1  ;;  %v6766_v10 = vld [vmem:[#allocation87_spill] sm:$0xff]  ;;  %v6768_v16 = vld [vmem:[#allocation20_spill] sm:$0xff]  ;;  %v6769_v62 = vld [vmem:[#allocation89_spill] sm:$0xff]  ;;  %v4386_v29 = vstv %s4316_s15 }
  0xd8   : > { %v4262_v24 = vmax.f32 %v6757_v48, %v312_v9  ;;  %v1005_v54 = vmul.f32 %v6766_v10, %v6765_v61  ;;  %v532_v48 = vadd.f32 %v525_v57, %v516_v41  ;;  %v1316_v39 = vadd.f32 %v1309_v36, %v1300_v44  ;;  %v6770_v61 = vld [vmem:[#allocation24_spill] sm:$0xff]  ;;  %v6771_v3 = vld [vmem:[#allocation79_spill] sm:$0xff]  ;;  %v6773_v44 = vld [vmem:[#allocation58_spill] sm:$0xff]  ;;  %6802 = vst [vmem:[#allocation86_spill] sm:$0xff] %v4386_v29 }
  0xd9   : > { %6762 = vst [vmem:[#allocation17_spill] sm:$0xff] %v4271_v13  ;;  %v980_v32 = vadd.f32 %v973_v50, %v957_v53  ;;  %v1021_v12 = vmul.f32 %v6768_v16, %v6767_v59  ;;  %v1395_v9 = vsel %vm299_vm0, %v4079_v40, %v4268_v22  ;;  %v6304_v46 = vmax.f32 %v4271_v13, 0.0  ;;  %v6778_v56 = vld [vmem:[#allocation80_spill] sm:$0xff] }
  0xda   : > { %6758 = vst [vmem:[#allocation97_spill] sm:$0xff] %v4262_v24  ;;  %344 = vrot.lane.b32.xlu1 %v4262_v24, %s2841_s28  ;;  %v1037_v21 = vmul.f32 %v6770_v61, %v6769_v62  ;;  %v6772_v24 = vld [vmem:[#allocation90_spill] sm:$0xff]  ;;  %v6774_v57 = vmax.f32 %v6773_v44, 0.0  ;;  %v548_v36 = vadd.f32 %v4180_v28, %v532_v48  ;;  %v1332_v53 = vadd.f32 %v1325_v47, %v1316_v39  ;;  %v6777_v61 = vld [vmem:[#allocation91_spill] sm:$0xff]  ;;  %v6781_v28 = vld [vmem:[#allocation36_spill] sm:$0xff] }
  0xdb   : > { %v1053_v41 = vmul.f32 %v6772_v24, %v6771_v3  ;;  %v996_v16 = vadd.f32 %v989_v37, %v980_v32  ;;  %v4300_v40 = vrot.slane %v6304_v46, 1  ;;  %v1069_v6 = vmul.f32 %v6778_v56, %v6777_v61  ;;  %v6779_v3 = vld [vmem:[#allocation94_spill] sm:$0xff]  ;;  %v6782_v39 = vld [vmem:[#allocation48_spill] sm:$0xff]  ;;  %v6783_v56 = vld [vmem:[#allocation105_spill] sm:$0xff] }
  0xdc   : > { %v4293_v50 = vmax.f32 %v6774_v57, %v1395_v9  ;;  %v1085_v44 = vmul.f32 %v6780_v0, %v6779_v3  ;;  %v4307_v9 = vstv %s4237_s9  ;;  %v4312_v47 = vadd.f32 %v6781_v28, %v548_v36  ;;  %v6784_v0 = vld [vmem:[#allocation61_spill] sm:$0xff]  ;;  %s4902_s9 = sld [smem:[#allocation2 + $0x44]] }
  0xdd   : > { %6776 = vst [vmem:[#allocation13_spill] sm:$0xff] %v4300_v40  ;;  %v1348_v37 = vadd.f32 %v1341_v7, %v1332_v53  ;;  %v1012_v48 = vadd.f32 %v1005_v54, %v996_v16  ;;  %v1500_v32 = vmul.f32 %v6782_v39, %v4307_v9  ;;  %v855_v57 = vsel %vm299_vm0, %v6783_v56, %v4300_v40  ;;  %v6785_v7 = vld [vmem:[#allocation98_spill] sm:$0xff] }
  0xde   : > { %6775 = vst [vmem:[#allocation51_spill] sm:$0xff] %v4293_v50  ;;  %1427 = vrot.lane.b32.xlu0 %v4293_v50, %s2841_s28  ;;  %v1501_v46 = vmul.f32 %v6784_v0, %v4307_v9  ;;  %v4324_v13 = vstv %s4249_s10  ;;  %v4327_v50 = vstv %s4258_s11  ;;  %v6786_v54 = vmax.f32 %v6785_v7, 0.0  ;;  %v6788_v56 = vld [vmem:[#allocation50_spill] sm:$0xff]  ;;  %s4919_s10 = sld [smem:[#allocation2 + $0x45]] }
  0xdf   : > { %v6315_v53 = vmax.f32 %v4312_v47, 0.0  ;;  %v1364_v16 = vadd.f32 %v1357_v45, %v1348_v37  ;;  %v1028_v28 = vadd.f32 %v1021_v12, %v1012_v48  ;;  %v1516_v40 = vmul.f32 %v6788_v56, %v4324_v13  ;;  %v6789_v0 = vld [vmem:[#allocation62_spill] sm:$0xff]  ;;  %s4928_s11 = sld [smem:[#allocation2 + $0x46]] }
  0xe0   : > { %v4333_v36 = vmax.f32 %v6786_v54, %v855_v57  ;;  %v1517_v39 = vmul.f32 %v6789_v0, %v4324_v13  ;;  %v1532_v17 = vmul.f32 %v6790_v33, %v4327_v50  ;;  %v1533_v57 = vmul.f32 %v6791_v43, %v4327_v50  ;;  %v6793_v43 = vld [vmem:[#allocation28_spill] sm:$0xff] }
  0xe1   : > { %v4350_v45 = vrot.slane %v6315_v53, 1  ;;  %v4353_v12 = vadd.f32 %v6749_v5, %v1364_v16  ;;  %v1044_v37 = vadd.f32 %v1037_v21, %v1028_v28  ;;  %v4356_v48 = vstv %s4281_s13  ;;  %v6795_v53 = vld [vmem:[#allocation115_spill] sm:$0xff]  ;;  %s4936_s13 = sld [smem:[#allocation2 + $0x47]] }
  0xe2   : > { %6787 = vst [vmem:[#allocation84_spill] sm:$0xff] %v4333_v36  ;;  %887 = vrot.lane.b32.xlu1 %v4333_v36, %s2841_s28  ;;  %v1523_v7 = vadd.f32 %v1516_v40, %v1500_v32  ;;  %v1524_v54 = vadd.f32 %v1517_v39, %v1501_v46  ;;  %v1548_v33 = vmul.f32 %v6793_v43, %v4356_v48  ;;  %v6794_v36 = vld [vmem:[#allocation38_spill] sm:$0xff]  ;;  %v4371_v5 = vstv %s4296_s14  ;;  %s4959_s14 = sld [smem:[#allocation5 + $0x7]] }
  0xe3   : > { %6792 = vst [vmem:[#allocation76_spill] sm:$0xff] %v4353_v12  ;;  %v1549_v0 = vmul.f32 %v6794_v36, %v4356_v48  ;;  %v584_v16 = vsel %vm299_vm0, %v6795_v53, %v4350_v45  ;;  %v6320_v21 = vmax.f32 %v4353_v12, 0.0  ;;  %v1060_v28 = vadd.f32 %v1053_v41, %v1044_v37  ;;  %v6796_v40 = vld [vmem:[#allocation106_spill] sm:$0xff]  ;;  %v6799_v36 = vld [vmem:[#allocation100_spill] sm:$0xff]  ;;  %v6801_v41 = vld [vmem:[#allocation39_spill] sm:$0xff] }
  0xe4   : > { %v6797_v32 = vmax.f32 %v6796_v40, 0.0  ;;  %v1539_v39 = vadd.f32 %v1532_v17, %v1523_v7  ;;  %v1540_v43 = vadd.f32 %v1533_v57, %v1524_v54  ;;  %v1564_v56 = vmul.f32 %v6799_v36, %v4371_v5  ;;  %v6803_v17 = vld [vmem:[#allocation104_spill] sm:$0xff] }
  0xe5   : > { %v4381_v4 = vrot.slane %v6320_v21, 1  ;;  %v1076_v53 = vadd.f32 %v1069_v6, %v1060_v28  ;;  %v1565_v37 = vmul.f32 %v6801_v41, %v4371_v5  ;;  %v1580_v57 = vmul.f32 %v6803_v17, %v4386_v29  ;;  %v6804_v7 = vld [vmem:[#allocation40_spill] sm:$0xff] }
  0xe6   : > { %v4375_v46 = vmax.f32 %v6797_v32, %v584_v16  ;;  %v1555_v16 = vadd.f32 %v1548_v33, %v1539_v39  ;;  %v1556_v40 = vadd.f32 %v1549_v0, %v1540_v43  ;;  %v1581_v54 = vmul.f32 %v6804_v7, %v4386_v29 }
  0xe7   : > { %6800 = vst [vmem:[#allocation14_spill] sm:$0xff] %v4381_v4  ;;  %v1397_v6 = vsel %vm299_vm0, %v4268_v22, %v4381_v4  ;;  %v1092_v28 = vadd.f32 %v1085_v44, %v1076_v53  ;;  %v4398_v32 = vstv %s4329_s16  ;;  %v4401_v21 = vstv %s4336_s17  ;;  %v6811_v44 = vld [vmem:[#allocation112_spill] sm:$0xff] }
  0xe8   : > { %6798 = vst [vmem:[#allocation85_spill] sm:$0xff] %v4375_v46  ;;  %616 = vrot.lane.b32.xlu0 %v4375_v46, %s2841_s28  ;;  %6805 = vst [vmem:[#allocation16_spill] sm:$0xff] %v4398_v32  ;;  %v6807_v33 = vmax.f32 %v4230_v31, 0.0  ;;  %v1571_v0 = vadd.f32 %v1564_v56, %v1555_v16  ;;  %v1572_v39 = vadd.f32 %v1565_v37, %v1556_v40  ;;  %v6809_v46 = vld [vmem:[#allocation110_spill] sm:$0xff]  ;;  %v4421_v37 = vstv %s4358_s18 }
  0xe9   : > { %6806 = vst [vmem:[#allocation19_spill] sm:$0xff] %v4401_v21  ;;  %v1596_v12 = vmul.f32 %v6809_v46, %v4398_v32  ;;  %v4410_v7 = vadd.f32 %v6645_v11, %v1092_v28  ;;  %v1597_v22 = vmul.f32 %v4116_v49, %v4398_v32  ;;  %v1612_v53 = vmul.f32 %v6811_v44, %v4401_v21  ;;  %v6815_v44 = vld [vmem:[#allocation45_spill] sm:$0xff] }
  0xea   : > { %v4405_v43 = vmax.f32 %v6807_v33, %v1397_v6  ;;  %v1613_v4 = vmul.f32 %v4121_v55, %v4401_v21  ;;  %v1587_v31 = vadd.f32 %v1580_v57, %v1571_v0  ;;  %v1588_v56 = vadd.f32 %v1581_v54, %v1572_v39  ;;  %6812 = vst [vmem:[#allocation20_spill] sm:$0xff] %v4421_v37  ;;  %v6814_v6 = vld [vmem:[#allocation117_spill] sm:$0xff]  ;;  %v6817_v0 = vld [vmem:[#allocation18_spill] sm:$0xff] }
  0xeb   : > { %6810 = vst [vmem:[#allocation88_spill] sm:$0xff] %v4410_v7  ;;  %v4424_v16 = vstv %s4364_s19  ;;  %v6328_v40 = vmax.f32 %v4410_v7, 0.0  ;;  %v1628_v28 = vmul.f32 %v6814_v6, %v4421_v37  ;;  %v1629_v33 = vmul.f32 %v4126_v8, %v4421_v37  ;;  %v6816_v57 = vld [vmem:[#allocation49_spill] sm:$0xff]  ;;  %v6818_v6 = vld [vmem:[#allocation70_spill] sm:$0xff]  ;;  %v6819_v8 = vld [vmem:[#allocation99_spill] sm:$0xff] }
  0xec   : > { %6808 = vst [vmem:[#allocation87_spill] sm:$0xff] %v4405_v43  ;;  %1429 = vrot.lane.b32.xlu1 %v4405_v43, %s2841_s28  ;;  %6813 = vst [vmem:[#allocation89_spill] sm:$0xff] %v4424_v16  ;;  %v1499_v55 = vmul.f32 %v6815_v44, %v4307_v9  ;;  %v1603_v49 = vadd.f32 %v1596_v12, %v1587_v31  ;;  %v1604_v46 = vadd.f32 %v1597_v22, %v1588_v56  ;;  %v6820_v44 = vld [vmem:[#allocation102_spill] sm:$0xff] }
  0xed   : > { %v1515_v54 = vmul.f32 %v6816_v57, %v4324_v13  ;;  %v1531_v39 = vmul.f32 %v6817_v0, %v4327_v50  ;;  %v4439_v43 = vrot.slane %v6328_v40, 1  ;;  %v1547_v17 = vmul.f32 %v6818_v6, %v4356_v48  ;;  %v6821_v57 = vld [vmem:[#allocation109_spill] sm:$0xff]  ;;  %v6822_v0 = vld [vmem:[#allocation111_spill] sm:$0xff]  ;;  %v6823_v6 = vld [vmem:[#allocation116_spill] sm:$0xff] }
  0xee   : > { %v1563_v41 = vmul.f32 %v6819_v8, %v4371_v5  ;;  %v1579_v12 = vmul.f32 %v6820_v44, %v4386_v29  ;;  %v1619_v22 = vadd.f32 %v1612_v53, %v1603_v49  ;;  %v1620_v31 = vadd.f32 %v1613_v4, %v1604_v46 }
  0xef   : > { %v1522_v56 = vadd.f32 %v1515_v54, %v1499_v55  ;;  %v1595_v36 = vmul.f32 %v6821_v57, %v4398_v32  ;;  %v1126_v40 = vsel %vm299_vm0, %v4176_v60, %v4439_v43  ;;  %v1611_v7 = vmul.f32 %v6822_v0, %v4401_v21  ;;  %v6830_v0 = vld [vmem:[#allocation31_spill] sm:$0xff] }
  0xf0   : > { %v1627_v11 = vmul.f32 %v6823_v6, %v4421_v37  ;;  %v6824_v8 = vmax.f32 %v4312_v47, 0.0  ;;  %v6826_v4 = vmax.f32 %v4158_v58, 0.0  ;;  %v1635_v55 = vadd.f32 %v1628_v28, %v1619_v22 }
  0xf1   : > { %v1636_v46 = vadd.f32 %v1629_v33, %v1620_v31  ;;  %v1538_v53 = vadd.f32 %v1531_v39, %v1522_v56  ;;  %v6828_v60 = vmax.f32 %v4193_v14, 0.0  ;;  %v958_v6 = vmul.f32 %v6755_v51, %v6830_v0 }
  0xf2   : > { %v4459_v44 = vmax.f32 %v6824_v8, %v4350_v45  ;;  %v4463_v49 = vmax.f32 %v6826_v4, %v1126_v40  ;;  %v974_v47 = vmul.f32 %v3647_v2, %v6759_v19  ;;  %v990_v8 = vmul.f32 %v3656_v35, %v6763_v1 }
  0xf3   : > { %v4468_v54 = vmax.f32 %v6828_v60, %v4227_v15  ;;  %v1644_v58 = vadd.f32 %v4424_v16, %v1635_v55  ;;  %v4480_v45 = vadd.f32 %v4424_v16, %v1636_v46  ;;  %v1554_v14 = vadd.f32 %v1547_v17, %v1538_v53  ;;  %v6833_v46 = vld [vmem:[#allocation69_spill] sm:$0xff]  ;;  %v6834_v53 = vld [vmem:[#allocation56_spill] sm:$0xff] }
  0xf4   : > { %6825 = vst [vmem:[#allocation24_spill] sm:$0xff] %v4459_v44  ;;  %6827 = vst [vmem:[#allocation79_spill] sm:$0xff] %v4463_v49  ;;  %1158 = vrot.lane.b32.xlu0 %v4463_v49, %s2841_s28  ;;  %v1006_v15 = vmul.f32 %v6766_v10, %v3659_v23  ;;  %v981_v40 = vadd.f32 %v974_v47, %v958_v6  ;;  %v1022_v28 = vmul.f32 %v3662_v30, %v6767_v59  ;;  %v6831_v6 = vld [vmem:[#allocation64_spill] sm:$0xff] }
  0xf5   : > { %6829 = vst [vmem:[#allocation90_spill] sm:$0xff] %v4468_v54  ;;  %v1038_v2 = vmul.f32 %v3673_v63, %v6769_v62  ;;  %v1054_v35 = vmul.f32 %v6772_v24, %v6625_v27  ;;  %v1651_v33 = vmax.f32 %v1644_v58, 0.0  ;;  %v6331_v0 = vmax.f32 %v4480_v45, 0.0  ;;  %v6836_v58 = vld [vmem:[#allocation57_spill] sm:$0xff] }
  0xf6   : > { %v1570_v39 = vadd.f32 %v1563_v41, %v1554_v14  ;;  %v1070_v17 = vmul.f32 %v3688_v52, %v6777_v61  ;;  %v997_v22 = vadd.f32 %v990_v8, %v981_v40  ;;  %v1086_v23 = vmul.f32 %v6629_v42, %v6779_v3  ;;  %v6832_v42 = vld [vmem:[#allocation68_spill] sm:$0xff]  ;;  %v6835_v8 = vld [vmem:[#allocation71_spill] sm:$0xff]  ;;  %v6838_v40 = vld [vmem:[#allocation74_spill] sm:$0xff] }
  0xf7   : > { %v686_v30 = vmul.f32 %v6831_v6, %v4010_v18  ;;  %v702_v63 = vmul.f32 %v4013_v26, %v6580_v25  ;;  %v4499_v31 = vrot.slane %v1651_v33, 1  ;;  %v4503_v27 = vrot.slane %v6331_v0, 1  ;;  %v6840_v6 = vld [vmem:[#allocation75_spill] sm:$0xff]  ;;  %v6843_v0 = vld [vmem:[#allocation60_spill] sm:$0xff]  ;;  %v6844_v3 = vld [vmem:[#allocation46_spill] sm:$0xff] }
  0xf8   : > { %v1586_v41 = vadd.f32 %v1579_v12, %v1570_v39  ;;  %v718_v52 = vmul.f32 %v6726_v38, %v6583_v20  ;;  %v1013_v56 = vadd.f32 %v1006_v15, %v997_v22  ;;  %v734_v55 = vmul.f32 %v6832_v42, %v6727_v34  ;;  %v6837_v12 = vld [vmem:[#allocation92_spill] sm:$0xff] }
  0xf9   : > { %v709_v4 = vadd.f32 %v702_v63, %v686_v30  ;;  %v750_v60 = vmul.f32 %v6834_v53, %v6833_v46  ;;  %v1668_v25 = vsel %vm299_vm0, %v4499_v31, %v4503_v27  ;;  %v766_v14 = vmul.f32 %v6836_v58, %v6835_v8  ;;  %v6841_v30 = vld [vmem:[#allocation59_spill] sm:$0xff]  ;;  %v6842_v46 = vld [vmem:[#allocation25_spill] sm:$0xff] }
  0xfa   : > { %v1602_v47 = vadd.f32 %v1595_v36, %v1586_v41  ;;  %v782_v39 = vmul.f32 %v6838_v40, %v6837_v12  ;;  %v4518_v20 = vmax.f32 %v1651_v33, %v1668_v25  ;;  %v1029_v15 = vadd.f32 %v1022_v28, %v1013_v56  ;;  %v6845_v41 = vld [vmem:[#allocation55_spill] sm:$0xff]  ;;  %v6846_v28 = vld [vmem:[#allocation96_spill] sm:$0xff] }
  0xfb   : > { %v725_v22 = vadd.f32 %v718_v52, %v709_v4  ;;  %v798_v63 = vmul.f32 %v6841_v30, %v6840_v6  ;;  %v814_v49 = vmul.f32 %v6843_v0, %v6842_v46  ;;  %v1502_v36 = vmul.f32 %v6844_v3, %v4307_v9  ;;  %v6848_v40 = vld [vmem:[#allocation27_spill] sm:$0xff]  ;;  %v6849_v46 = vld [vmem:[#allocation32_spill] sm:$0xff] }
  0xfc   : > { %6839 = vst [vmem:[#allocation58_spill] sm:$0xff] %v4518_v20  ;;  %v1618_v42 = vadd.f32 %v1611_v7, %v1602_v47  ;;  %v1518_v8 = vmul.f32 %v6845_v41, %v4324_v13  ;;  %1700 = vrot.lane.b32.xlu1 %v4518_v20, %s2841_s28  ;;  %v1045_v33 = vadd.f32 %v1038_v2, %v1029_v15  ;;  %v6847_v7 = vld [vmem:[#allocation21_spill] sm:$0xff] }
  0xfd   : > { %v741_v25 = vadd.f32 %v734_v55, %v725_v22  ;;  %v1534_v52 = vmul.f32 %v6846_v28, %v4327_v50  ;;  %v1550_v56 = vmul.f32 %v6847_v7, %v4356_v48  ;;  %v1566_v6 = vmul.f32 %v6848_v40, %v4371_v5  ;;  %v6850_v15 = vld [vmem:[#allocation33_spill] sm:$0xff]  ;;  %v6851_v7 = vld [vmem:[#allocation35_spill] sm:$0xff]  ;;  %v6854_v40 = vld [vmem:[#allocation22_spill] sm:$0xff] }
  0xfe   : > { %v1634_v4 = vadd.f32 %v1627_v11, %v1618_v42  ;;  %v1525_v47 = vadd.f32 %v1518_v8, %v1502_v36  ;;  %v1582_v20 = vmul.f32 %v6849_v46, %v4386_v29  ;;  %v1061_v2 = vadd.f32 %v1054_v35, %v1045_v33  ;;  %v6852_v36 = vld [vmem:[#allocation47_spill] sm:$0xff] }
  0xff   : > { %v757_v55 = vadd.f32 %v750_v60, %v741_v25  ;;  %v1598_v22 = vmul.f32 %v6850_v15, %v4398_v32  ;;  %v1614_v28 = vmul.f32 %v6851_v7, %v4401_v21  ;;  %v4549_v8 = vmul.f32 %v6852_v36, %v4421_v37  ;;  %v4552_v46 = vld [vmem:[%s2891_s12 + $0x20] sm:$0xff]  ;;  %v4559_v25 = vld [vmem:[%s2891_s12 + $0x58] sm:$0xff] }
 0x100   : > { %v1643_v11 = vadd.f32 %v4424_v16, %v1634_v4  ;;  %v1541_v42 = vadd.f32 %v1534_v52, %v1525_v47  ;;  %6853 = vst [vmem:[#allocation91_spill] sm:$0xff] %v4552_v46  ;;  %v1230_v35 = vmul.f32 %v4552_v46, %v6854_v40  ;;  %618 = vrot.lane.b32.xlu1 %v4459_v44, %s2841_s28  ;;  %6855 = vst [vmem:[#allocation80_spill] sm:$0xff] %v4559_v25  ;;  %v6856_v4 = vld [vmem:[#allocation23_spill] sm:$0xff]  ;;  %v4564_v47 = vld [vmem:[%s2891_s12 + $0x90] sm:$0xff] }
 0x101   : > { %v1077_v60 = vadd.f32 %v1070_v17, %v1061_v2  ;;  %v773_v33 = vadd.f32 %v766_v14, %v757_v55  ;;  %v1246_v52 = vmul.f32 %v4559_v25, %v6856_v4  ;;  %6857 = vst [vmem:[#allocation81_spill] sm:$0xff] %v4564_v47  ;;  %v6858_v36 = vld [vmem:[#allocation52_spill] sm:$0xff]  ;;  %v6860_v17 = vld [vmem:[#allocation15_spill] sm:$0xff]  ;;  %v6862_v55 = vld [vmem:[#allocation65_spill] sm:$0xff] }
 0x102   : > { %v1262_v7 = vmul.f32 %v4564_v47, %v6858_v36  ;;  %v1650_v15 = vmax.f32 %v1643_v11, 0.0  ;;  %v1557_v41 = vadd.f32 %v1550_v56, %v1541_v42  ;;  %v4571_v44 = vld [vmem:[%s2891_s12 + $0x21] sm:$0xff]  ;;  %v4576_v2 = vld [vmem:[%s2891_s12 + $0x59] sm:$0xff]  ;;  %v4583_v11 = vld [vmem:[%s2891_s12 + $0x91] sm:$0xff] }
 0x103   : > { %6859 = vst [vmem:[#allocation36_spill] sm:$0xff] %v4571_v44  ;;  %v1278_v14 = vmul.f32 %v4571_v44, %v6860_v17  ;;  %6861 = vst [vmem:[#allocation105_spill] sm:$0xff] %v4576_v2  ;;  %v1294_v3 = vmul.f32 %v4576_v2, %v6862_v55  ;;  %v1093_v36 = vadd.f32 %v1086_v23, %v1077_v60  ;;  %v6864_v56 = vld [vmem:[#allocation101_spill] sm:$0xff]  ;;  %v4588_v21 = vld [vmem:[%s2891_s12 + $0x22] sm:$0xff] }
 0x104   : > { %v789_v4 = vadd.f32 %v782_v39, %v773_v33  ;;  %v1253_v40 = vadd.f32 %v1246_v52, %v1230_v35  ;;  %6863 = vst [vmem:[#allocation98_spill] sm:$0xff] %v4583_v11  ;;  %v1310_v42 = vmul.f32 %v4583_v11, %v6864_v56  ;;  %v1664_v37 = vrot.slane %v1650_v15, 1  ;;  %6865 = vst [vmem:[#allocation115_spill] sm:$0xff] %v4588_v21  ;;  %v6866_v32 = vld [vmem:[#allocation107_spill] sm:$0xff]  ;;  %v6868_v2 = vld [vmem:[#allocation108_spill] sm:$0xff] }
 0x105   : > { %v1573_v17 = vadd.f32 %v1566_v6, %v1557_v41  ;;  %v1326_v55 = vmul.f32 %v4588_v21, %v6866_v32  ;;  %v4593_v29 = vld [vmem:[%s2891_s12 + $0x5a] sm:$0xff]  ;;  %v4601_v52 = vld [vmem:[%s2891_s12 + $0x92] sm:$0xff]  ;;  %v4608_v32 = vstv %s4534_s20  ;;  %v4611_v21 = vstv %s4540_s21  ;;  %s2390_s21 = sld [smem:[#allocation7]] }
 0x106   : > { %6867 = vst [vmem:[#allocation106_spill] sm:$0xff] %v4593_v29  ;;  %v1342_v23 = vmul.f32 %v4593_v29, %v6868_v2  ;;  %v6869_v39 = vld [vmem:[#allocation95_spill] sm:$0xff]  ;;  %v805_v60 = vadd.f32 %v798_v63, %v789_v4  ;;  %v1269_v33 = vadd.f32 %v1262_v7, %v1253_v40  ;;  %6871 = vst [vmem:[#allocation31_spill] sm:$0xff] %v4601_v52  ;;  %v6872_v56 = vld [vmem:[#allocation114_spill] sm:$0xff] }
 0x107   : > { %v4598_v35 = vadd.f32 %v6869_v39, %v1093_v36  ;;  %v1358_v41 = vmul.f32 %v4601_v52, %v6872_v56  ;;  %v1666_v6 = vsel %vm299_vm0, %v1664_v37, %v4499_v31  ;;  %v1589_v11 = vadd.f32 %v1582_v20, %v1573_v17  ;;  %6873 = vst [vmem:[#allocation64_spill] sm:$0xff] %v4608_v32  ;;  %v6876_v37 = vld [vmem:[#allocation48_spill] sm:$0xff]  ;;  %v6877_v20 = vld [vmem:[#allocation61_spill] sm:$0xff]  ;;  %v6878_v17 = vld [vmem:[#allocation50_spill] sm:$0xff] }
 0x108   : > { %6874 = vst [vmem:[#allocation68_spill] sm:$0xff] %v4611_v21  ;;  %v4615_v2 = vmax.f32 %v1650_v15, %v1666_v6  ;;  %v821_v7 = vadd.f32 %v814_v49, %v805_v60  ;;  %v1285_v40 = vadd.f32 %v1278_v14, %v1269_v33  ;;  %v1773_v31 = vmul.f32 %v6876_v37, %v4608_v32  ;;  %v6880_v15 = vld [vmem:[#allocation77_spill] sm:$0xff] }
 0x109   : > { %6870 = vst [vmem:[#allocation109_spill] sm:$0xff] %v4598_v35  ;;  %v6350_v63 = vmax.f32 %v4598_v35, 0.0  ;;  %v1605_v36 = vadd.f32 %v1598_v22, %v1589_v11  ;;  %v1774_v4 = vmul.f32 %v6877_v20, %v4608_v32  ;;  %v1789_v39 = vmul.f32 %v6878_v17, %v4611_v21  ;;  %v6881_v11 = vld [vmem:[#allocation62_spill] sm:$0xff] }
 0x10a   : > { %6875 = vst [vmem:[#allocation69_spill] sm:$0xff] %v4615_v2  ;;  %1698 = vrot.lane.b32.xlu0 %v4615_v2, %s2841_s28  ;;  %v4635_v22 = vadd.f32 %v6880_v15, %v821_v7  ;;  %v1301_v14 = vadd.f32 %v1294_v3, %v1285_v40  ;;  %v1790_v60 = vmul.f32 %v6881_v11, %v4611_v21  ;;  %v4642_v37 = vstv %s4568_s22  ;;  %v6884_v40 = vld [vmem:[#allocation88_spill] sm:$0xff]  ;;  %s2655_s22 = sld [smem:[#allocation7 + $0x1]] }
 0x10b   : > { %v4632_v49 = vrot.slane %v6350_v63, 1  ;;  %v1621_v33 = vadd.f32 %v1614_v28, %v1605_v36  ;;  %v1796_v6 = vadd.f32 %v1789_v39, %v1773_v31  ;;  %6882 = vst [vmem:[#allocation71_spill] sm:$0xff] %v4642_v37  ;;  %v4645_v20 = vstv %s4580_s23  ;;  %v6887_v39 = vld [vmem:[#allocation67_spill] sm:$0xff]  ;;  %v6888_v31 = vld [vmem:[#allocation37_spill] sm:$0xff]  ;;  %s2397_s23 = scalar_lea.vmem [#allocation8], %s2836_s6  ;;  %s62_s6 = sadd.s32 1, %s2836_s6  }
 0x10c   : > { %6883 = vst [vmem:[#allocation57_spill] sm:$0xff] %v4645_v20  ;;  %v6352_v63 = vmax.f32 %v4635_v22, 0.0  ;;  %v1317_v7 = vadd.f32 %v1310_v42, %v1301_v14  ;;  %v1797_v3 = vadd.f32 %v1790_v60, %v1774_v4  ;;  %v6885_v15 = vmax.f32 %v6884_v40, 0.0  ;;  %v6889_v4 = vld [vmem:[#allocation28_spill] sm:$0xff]  ;;  %v6890_v60 = vld [vmem:[#allocation38_spill] sm:$0xff]  ;;  %p59_p1 = scmp.ge.s32.totalorder %s62_s6, 2  }
 0x10d   : > { %6879 = vst [vmem:[#allocation56_spill] sm:$0xff] %v4632_v49  ;;  %v1128_v17 = vsel %vm299_vm0, %v4439_v43, %v4632_v49  ;;  %v1637_v28 = vadd.f32 %v4549_v8, %v1621_v33  ;;  %v1805_v36 = vmul.f32 %v6887_v39, %v4642_v37  ;;  %v1806_v2 = vmul.f32 %v6888_v31, %v4642_v37  ;;  %v6894_v31 = vld [vmem:[#allocation100_spill] sm:$0xff] }
 0x10e   : > { %v4653_v11 = vmax.f32 %v6885_v15, %v1128_v17  ;;  %346 = vrot.lane.b32.xlu0 %v4468_v54, %s2841_s28  ;;  %v4664_v43 = vrot.slane %v6352_v63, 1  ;;  %v1333_v42 = vadd.f32 %v1326_v55, %v1317_v7  ;;  %v1821_v14 = vmul.f32 %v6889_v4, %v4645_v20  ;;  %v6893_v7 = vld [vmem:[#allocation13_spill] sm:$0xff] }
 0x10f   : > { %v1822_v8 = vmul.f32 %v6890_v60, %v4645_v20  ;;  %v4675_v33 = vadd.f32 %v4424_v16, %v1637_v28  ;;  %v1812_v17 = vadd.f32 %v1805_v36, %v1796_v6  ;;  %v1813_v40 = vadd.f32 %v1806_v2, %v1797_v3  ;;  %v6895_v60 = vld [vmem:[#allocation39_spill] sm:$0xff]  ;;  %v6896_v28 = vld [vmem:[#allocation17_spill] sm:$0xff] }
 0x110   : > { %6886 = vst [vmem:[#allocation92_spill] sm:$0xff] %v4653_v11  ;;  %1160 = vrot.lane.b32.xlu1 %v4653_v11, %s2841_s28  ;;  %v4678_v55 = vstv %s4613_s24  ;;  %v857_v15 = vsel %vm299_vm0, %v6893_v7, %v4664_v43  ;;  %v1349_v39 = vadd.f32 %v1342_v23, %v1333_v42  ;;  %v6897_v11 = vmax.f32 %v6896_v28, 0.0  ;;  %s2842_s24 = smov (%p59_p1), [#allocation8]  }
 0x111   : > { %6891 = vst [vmem:[#allocation74_spill] sm:$0xff] %v4675_v33  ;;  %6892 = vst [vmem:[#allocation75_spill] sm:$0xff] %v4678_v55  ;;  %v1837_v4 = vmul.f32 %v6894_v31, %v4678_v55  ;;  %v1838_v63 = vmul.f32 %v6895_v60, %v4678_v55  ;;  %v6357_v2 = vmax.f32 %v4675_v33, 0.0  ;;  %v1828_v6 = vadd.f32 %v1821_v14, %v1812_v17  ;;  %v6901_v14 = vld [vmem:[#allocation104_spill] sm:$0xff]  ;;  %v6906_v60 = vld [vmem:[#allocation42_spill] sm:$0xff] }
 0x112   : > { %v4691_v54 = vmax.f32 %v6897_v11, %v857_v15  ;;  %v1829_v3 = vadd.f32 %v1822_v8, %v1813_v40  ;;  %v1365_v36 = vadd.f32 %v1358_v41, %v1349_v39  ;;  %v4695_v35 = vstv %s4618_s25  ;;  %v6902_v41 = vld [vmem:[#allocation118_spill] sm:$0xff]  ;;  %v6904_v40 = vld [vmem:[#allocation40_spill] sm:$0xff]  ;;  %s2406_s25 = sshll.u32 (%p59_p1), %s2842_s24, 4  ;;  %s2407_s25 = int_to_ptr.vmem [resolvable:$true] %s2406_s25 }
 0x113   : > { %v4698_v49 = vstv %s4626_s26  ;;  %v4701_v23 = vstv %s4639_s2  ;;  %v4707_v42 = vrot.slane %v6357_v2, 1  ;;  %v1844_v11 = vadd.f32 %v1837_v4, %v1828_v6  ;;  %v6905_v39 = vld [vmem:[#allocation110_spill] sm:$0xff]  ;;  %v6907_v6 = vld [vmem:[#allocation112_spill] sm:$0xff]  ;;  %s2804_s26 = scalar_lea.vmem (%p59_p1), %s2407_s25, 32  ;;  %p2809_p3 = scmp.lt.s32.totalorder (%p59_p1), %s2407_s25, %s2407_s25 }
 0x114   : > { %6898 = vst [vmem:[#allocation59_spill] sm:$0xff] %v4691_v54  ;;  %6899 = vst [vmem:[#allocation25_spill] sm:$0xff] %v4701_v23  ;;  %889 = vrot.lane.b32.xlu0 %v4691_v54, %s2841_s28  ;;  %v1845_v7 = vadd.f32 %v1838_v63, %v1829_v3  ;;  %v1853_v8 = vmul.f32 %v6901_v14, %v4695_v35  ;;  %v4712_v17 = vadd.f32 %v6902_v41, %v1365_v36  ;;  %v6908_v36 = vld [vmem:[#allocation43_spill] sm:$0xff]  ;;  %v6912_v41 = vld [vmem:[#allocation117_spill] sm:$0xff]  ;;  %p2805_p2 = scmp.ne.s32.totalorder (%p59_p1), %s2407_s25, %s2804_s26  ;;  %p2810_p4 = scmp.lt.s32.totalorder (%p59_p1), %s2804_s26, %s2804_s26 }
 0x115   : > { %6900 = vst [vmem:[#allocation60_spill] sm:$0xff] %v4707_v42  ;;  %v1854_v15 = vmul.f32 %v6904_v40, %v4695_v35  ;;  %v1869_v31 = vmul.f32 %v6905_v39, %v4698_v49  ;;  %v1870_v28 = vmul.f32 %v6906_v60, %v4698_v49  ;;  %v1670_v63 = vsel %vm299_vm0, %v4503_v27, %v4707_v42 }
 0x116   : > { %6903 = vst [vmem:[#allocation48_spill] sm:$0xff] %v4712_v17  ;;  %v1860_v4 = vadd.f32 %v1853_v8, %v1844_v11  ;;  %v1885_v3 = vmul.f32 %v6907_v6, %v4701_v23  ;;  %v1886_v14 = vmul.f32 %v6908_v36, %v4701_v23  ;;  %v6909_v2 = vmax.f32 %v4480_v45, 0.0  ;;  %v6913_v11 = vld [vmem:[#allocation44_spill] sm:$0xff]  ;;  %p2811_p5 = por (%p59_p1), %p2810_p4, %p2809_p3 }
 0x117   : > { %v6364_v39 = vmax.f32 %v4712_v17, 0.0  ;;  %v1861_v54 = vadd.f32 %v1854_v15, %v1845_v7  ;;  %v4733_v33 = vstv %s4670_s1  ;;  %v4740_v6 = vstv %s4680_s27  ;;  %v6915_v7 = vld [vmem:[#allocation45_spill] sm:$0xff] }
 0x118   : > { %v4729_v40 = vmax.f32 %v6909_v2, %v1670_v63  ;;  %6911 = vst [vmem:[#allocation50_spill] sm:$0xff] %v4733_v33  ;;  %v1876_v60 = vadd.f32 %v1869_v31, %v1860_v4  ;;  %v1901_v27 = vmul.f32 %v6912_v41, %v4733_v33  ;;  %v1902_v8 = vmul.f32 %v6913_v11, %v4733_v33  ;;  %v6916_v31 = vld [vmem:[#allocation49_spill] sm:$0xff]  ;;  %v6917_v4 = vld [vmem:[#allocation18_spill] sm:$0xff]  ;;  %p2812_p6 = pnand (%p59_p1), %p2811_p5, %p2805_p2 }
 0x119   : > { %6914 = vst [vmem:[#allocation77_spill] sm:$0xff] %v4740_v6  ;;  %v4746_v45 = vrot.slane %v6364_v39, 1  ;;  %v1877_v2 = vadd.f32 %v1870_v28, %v1861_v54  ;;  %v1772_v15 = vmul.f32 %v6915_v7, %v4608_v32  ;;  %v1788_v63 = vmul.f32 %v6916_v31, %v4611_v21  ;;  %v6918_v11 = vld [vmem:[#allocation70_spill] sm:$0xff]  ;;  %v6922_v31 = vld [vmem:[#allocation76_spill] sm:$0xff] }
 0x11a   : > { %6910 = vst [vmem:[#allocation61_spill] sm:$0xff] %v4729_v40  ;;  %1702 = vrot.lane.b32.xlu1 %v4729_v40, %s2841_s28  ;;  %v1892_v41 = vadd.f32 %v1885_v3, %v1876_v60  ;;  %v1804_v36 = vmul.f32 %v6917_v4, %v4642_v37  ;;  %v1820_v42 = vmul.f32 %v6918_v11, %v4645_v20  ;;  %v6919_v40 = vld [vmem:[#allocation99_spill] sm:$0xff]  ;;  %v6920_v39 = vld [vmem:[#allocation14_spill] sm:$0xff]  ;;  %v6923_v3 = vmax.f32 %v6922_v31, 0.0 }
 0x11b   : > { %v1836_v16 = vmul.f32 %v6919_v40, %v4678_v55  ;;  %v1399_v54 = vsel %vm299_vm0, %v6920_v39, %v4746_v45  ;;  %v1893_v28 = vadd.f32 %v1886_v14, %v1877_v2  ;;  %v1795_v17 = vadd.f32 %v1788_v63, %v1772_v15  ;;  %v6921_v7 = vld [vmem:[#allocation102_spill] sm:$0xff]  ;;  %v6925_v20 = vld [vmem:[#allocation111_spill] sm:$0xff]  ;;  %v6926_v39 = vld [vmem:[#allocation116_spill] sm:$0xff] }
 0x11c   : > { %v1852_v32 = vmul.f32 %v6921_v7, %v4695_v35  ;;  %v4765_v60 = vmax.f32 %v6923_v3, %v1399_v54  ;;  %v1908_v4 = vadd.f32 %v1901_v27, %v1892_v41  ;;  %v1868_v11 = vmul.f32 %v6821_v57, %v4698_v49  ;;  %v6935_v7 = vld [vmem:[#allocation16_spill] sm:$0xff]  ;;  %v6936_v31 = vld [vmem:[#allocation115_spill] sm:$0xff] }
 0x11d   : > { %v1884_v40 = vmul.f32 %v6925_v20, %v4701_v23  ;;  %v1909_v55 = vadd.f32 %v1902_v8, %v1893_v28  ;;  %v1811_v37 = vadd.f32 %v1804_v36, %v1795_v17  ;;  %v1900_v14 = vmul.f32 %v6926_v39, %v4733_v33  ;;  %v6934_v36 = vld [vmem:[#allocation98_spill] sm:$0xff] }
 0x11e   : > { %6924 = vst [vmem:[#allocation62_spill] sm:$0xff] %v4765_v60  ;;  %v959_v2 = vmul.f32 %v6755_v51, %v4010_v18  ;;  %1431 = vrot.lane.b32.xlu0 %v4765_v60, %s2841_s28  ;;  %v1917_v15 = vadd.f32 %v4740_v6, %v1908_v4  ;;  %v975_v27 = vmul.f32 %v4013_v26, %v6759_v19  ;;  %v6937_v4 = vld [vmem:[#allocation19_spill] sm:$0xff] }
 0x11f   : > { %v991_v57 = vmul.f32 %v6726_v38, %v6763_v1  ;;  %v1007_v20 = vmul.f32 %v6766_v10, %v6727_v34  ;;  %v4785_v17 = vadd.f32 %v4740_v6, %v1909_v55  ;;  %v1827_v8 = vadd.f32 %v1820_v42, %v1811_v37  ;;  %v6928_v10 = vld [vmem:[#allocation94_spill] sm:$0xff] }
 0x120   : > { %v1023_v18 = vmul.f32 %v6834_v53, %v6767_v59  ;;  %v1039_v51 = vmul.f32 %v6836_v58, %v6769_v62  ;;  %v1924_v63 = vmax.f32 %v1917_v15, 0.0  ;;  %v982_v41 = vadd.f32 %v975_v27, %v959_v2  ;;  %v6933_v42 = vld [vmem:[#allocation86_spill] sm:$0xff] }
 0x121   : > { %6927 = vst [vmem:[#allocation88_spill] sm:$0xff] %v4785_v17  ;;  %v1055_v19 = vmul.f32 %v6772_v24, %v6837_v12  ;;  %v1071_v26 = vmul.f32 %v6841_v30, %v6777_v61  ;;  %v6374_v38 = vmax.f32 %v4785_v17, 0.0  ;;  %v1843_v34 = vadd.f32 %v1836_v16, %v1827_v8  ;;  %v4845_v8 = vld [vmem:[%s2891_s12 + $0x28] sm:$0xff] }
 0x122   : > { %v4798_v1 = vmul.f32 %v6843_v0, %v6928_v10  ;;  %v6929_v59 = vmax.f32 %v4635_v22, 0.0  ;;  %v4805_v62 = vrot.slane %v1924_v63, 1  ;;  %v998_v58 = vadd.f32 %v991_v57, %v982_v41  ;;  %v6939_v57 = vld [vmem:[#allocation20_spill] sm:$0xff]  ;;  %6940 = vst [vmem:[#allocation38_spill] sm:$0xff] %v4845_v8  ;;  %v6941_v41 = vld [vmem:[#allocation22_spill] sm:$0xff] }
 0x123   : > { %v1503_v24 = vmul.f32 %v4552_v46, %v4307_v9  ;;  %v1519_v61 = vmul.f32 %v4559_v25, %v4324_v13  ;;  %v4815_v16 = vrot.slane %v6374_v38, 1  ;;  %v1859_v0 = vadd.f32 %v1852_v32, %v1843_v34  ;;  %v4850_v10 = vld [vmem:[%s2891_s12 + $0x60] sm:$0xff] }
 0x124   : > { %v4803_v53 = vmax.f32 %v6929_v59, %v4664_v43  ;;  %v1535_v12 = vmul.f32 %v4564_v47, %v4327_v50  ;;  %v1551_v30 = vmul.f32 %v4571_v44, %v4356_v48  ;;  %v1014_v22 = vadd.f32 %v1007_v20, %v998_v58  ;;  %v6932_v43 = vld [vmem:[#allocation105_spill] sm:$0xff]  ;;  %6942 = vst [vmem:[#allocation13_spill] sm:$0xff] %v4850_v10  ;;  %v4855_v59 = vld [vmem:[%s2891_s12 + $0x98] sm:$0xff]  ;;  %v6945_v58 = vld [vmem:[#allocation52_spill] sm:$0xff] }
 0x125   : > { %6931 = vst [vmem:[#allocation37_spill] sm:$0xff] %v4815_v16  ;;  %v1526_v37 = vadd.f32 %v1519_v61, %v1503_v24  ;;  %v1567_v55 = vmul.f32 %v6932_v43, %v4371_v5  ;;  %v1583_v54 = vmul.f32 %v6934_v36, %v6933_v42  ;;  %v1941_v32 = vsel %vm299_vm0, %v4805_v62, %v4815_v16  ;;  %v4882_v36 = vld [vmem:[%s2891_s12 + $0x62] sm:$0xff] }
 0x126   : > { %6930 = vst [vmem:[#allocation67_spill] sm:$0xff] %v4803_v53  ;;  %v1875_v28 = vadd.f32 %v1868_v11, %v1859_v0  ;;  %v1599_v3 = vmul.f32 %v6936_v31, %v6935_v7  ;;  %v1615_v39 = vmul.f32 %v4593_v29, %v6937_v4  ;;  %v4836_v2 = vmax.f32 %v1924_v63, %v1941_v32  ;;  %v6943_v63 = vld [vmem:[#allocation23_spill] sm:$0xff]  ;;  %v4862_v0 = vld [vmem:[%s2891_s12 + $0x29] sm:$0xff] }
 0x127   : > { %v1030_v15 = vadd.f32 %v1023_v18, %v1014_v22  ;;  %v1542_v27 = vadd.f32 %v1535_v12, %v1526_v37  ;;  %v4840_v20 = vmul.f32 %v4601_v52, %v6939_v57  ;;  %v1231_v34 = vmul.f32 %v4845_v8, %v6941_v41  ;;  %6944 = vst [vmem:[#allocation100_spill] sm:$0xff] %v4855_v59  ;;  %v6947_v12 = vld [vmem:[#allocation15_spill] sm:$0xff]  ;;  %v6949_v32 = vld [vmem:[#allocation65_spill] sm:$0xff]  ;;  %v6955_v43 = vld [vmem:[#allocation108_spill] sm:$0xff] }
 0x128   : > { %6938 = vst [vmem:[#allocation28_spill] sm:$0xff] %v4836_v2  ;;  %v1891_v11 = vadd.f32 %v1884_v40, %v1875_v28  ;;  %v1247_v18 = vmul.f32 %v4850_v10, %v6943_v63  ;;  %v1263_v24 = vmul.f32 %v4855_v59, %v6945_v58  ;;  %1973 = vrot.lane.b32.xlu1 %v4836_v2, %s2841_s28  ;;  %6946 = vst [vmem:[#allocation39_spill] sm:$0xff] %v4862_v0  ;;  %v4867_v37 = vld [vmem:[%s2891_s12 + $0x61] sm:$0xff]  ;;  %v4872_v52 = vld [vmem:[%s2891_s12 + $0x99] sm:$0xff] }
 0x129   : > { %v1046_v40 = vadd.f32 %v1039_v51, %v1030_v15  ;;  %v1558_v61 = vadd.f32 %v1551_v30, %v1542_v27  ;;  %v1279_v22 = vmul.f32 %v4862_v0, %v6947_v12  ;;  %6948 = vst [vmem:[#allocation17_spill] sm:$0xff] %v4867_v37  ;;  %v1295_v28 = vmul.f32 %v4867_v37, %v6949_v32  ;;  %v6951_v2 = vld [vmem:[#allocation101_spill] sm:$0xff]  ;;  %v6953_v15 = vld [vmem:[#allocation107_spill] sm:$0xff] }
 0x12a   : > { %v1907_v38 = vadd.f32 %v1900_v14, %v1891_v11  ;;  %v1254_v60 = vadd.f32 %v1247_v18, %v1231_v34  ;;  %6950 = vst [vmem:[#allocation104_spill] sm:$0xff] %v4872_v52  ;;  %v1311_v51 = vmul.f32 %v4872_v52, %v6951_v2  ;;  %v4877_v30 = vld [vmem:[%s2891_s12 + $0x2a] sm:$0xff]  ;;  %6954 = vst [vmem:[#allocation110_spill] sm:$0xff] %v4882_v36  ;;  %v4887_v11 = vld [vmem:[%s2891_s12 + $0x9a] sm:$0xff] }
 0x12b   : > { %6952 = vst [vmem:[#allocation40_spill] sm:$0xff] %v4877_v30  ;;  %v1327_v27 = vmul.f32 %v4877_v30, %v6953_v15  ;;  %v1062_v29 = vadd.f32 %v1055_v19, %v1046_v40  ;;  %v1574_v31 = vadd.f32 %v1567_v55, %v1558_v61  ;;  %v1343_v14 = vmul.f32 %v4882_v36, %v6955_v43  ;;  %v2723_v44 = vld [vmem:[%s2891_s12] sm:$0xff]  ;;  %v2724_v16 = vld [vmem:[%s2891_s12 + $0x8] sm:$0xff] }
 0x12c   : > { %6956 = vst [vmem:[#allocation42_spill] sm:$0xff] %v4887_v11  ;;  %v4891_v34 = vmul.f32 %v4887_v11, %v6872_v56  ;;  %v1916_v18 = vadd.f32 %v4740_v6, %v1907_v38  ;;  %v1270_v19 = vadd.f32 %v1263_v24, %v1254_v60  ;;  %v4897_v40 = vstv %s4811_s29  ;;  %v2725_v60 = vld [vmem:[%s2891_s12 + $0x38] sm:$0xff]  ;;  %v2726_v24 = vld [vmem:[%s2891_s12 + $0x40] sm:$0xff] }
 0x12d   : > { %v4900_v55 = vstv %s4821_s30  ;;  %v1078_v61 = vadd.f32 %v1071_v26, %v1062_v29  ;;  %v1590_v17 = vadd.f32 %v1583_v54, %v1574_v31  ;;  %v2045_v47 = vmul.f32 %v2723_v44, %v4897_v40 }
 0x12e   : > { %v2046_v25 = vmul.f32 %v2724_v16, %v4897_v40  ;;  %v1923_v46 = vmax.f32 %v1916_v18, 0.0  ;;  %v1286_v56 = vadd.f32 %v1279_v22, %v1270_v19  ;;  %v2061_v38 = vmul.f32 %v2725_v60, %v4900_v55  ;;  %v6957_v18 = vld [vmem:[#allocation95_spill] sm:$0xff] }
 0x12f   : > { %v2062_v43 = vmul.f32 %v2726_v24, %v4900_v55  ;;  %v1094_v6 = vadd.f32 %v4798_v1, %v1078_v61  ;;  %v1606_v29 = vadd.f32 %v1599_v3, %v1590_v17  ;;  %v4914_v26 = vstv %s4834_s4  ;;  %v2727_v24 = vld [vmem:[%s2891_s12 + $0x70] sm:$0xff]  ;;  %v2728_v17 = vld [vmem:[%s2891_s12 + $0x78] sm:$0xff] }
 0x130   : > { %v4917_v44 = vstv %s4842_s7  ;;  %v1937_v54 = vrot.slane %v1923_v46, 1  ;;  %v1302_v16 = vadd.f32 %v1295_v28, %v1286_v56  ;;  %v2068_v31 = vadd.f32 %v2061_v38, %v2045_v47  ;;  %v2729_v56 = vld [vmem:[%s2891_s12 + $0x1] sm:$0xff] }
 0x131   : > { %v2069_v22 = vadd.f32 %v2062_v43, %v2046_v25  ;;  %v4922_v19 = vadd.f32 %v6957_v18, %v1094_v6  ;;  %v1622_v60 = vadd.f32 %v1615_v39, %v1606_v29  ;;  %v2077_v1 = vmul.f32 %v2727_v24, %v4914_v26  ;;  %v2730_v6 = vld [vmem:[%s2891_s12 + $0x9] sm:$0xff] }
 0x132   : > { %v2078_v3 = vmul.f32 %v2728_v17, %v4914_v26  ;;  %v1939_v47 = vsel %vm299_vm0, %v1937_v54, %v4805_v62  ;;  %v1318_v25 = vadd.f32 %v1311_v51, %v1302_v16  ;;  %v2093_v43 = vmul.f32 %v2729_v56, %v4917_v44  ;;  %v6960_v18 = vld [vmem:[#allocation89_spill] sm:$0xff] }
 0x133   : > { %v2094_v39 = vmul.f32 %v2730_v6, %v4917_v44  ;;  %v4938_v28 = vmax.f32 %v1923_v46, %v1939_v47  ;;  %v6395_v61 = vmax.f32 %v4922_v19, 0.0  ;;  %v1638_v38 = vadd.f32 %v4840_v20, %v1622_v60 }
 0x134   : > { %v2084_v29 = vadd.f32 %v2077_v1, %v2068_v31  ;;  %v1334_v62 = vadd.f32 %v1327_v27, %v1318_v25  ;;  %v2085_v51 = vadd.f32 %v2078_v3, %v2069_v22  ;;  %v4943_v54 = vstv %s4893_s8  ;;  %v2731_v31 = vld [vmem:[%s2891_s12 + $0x39] sm:$0xff]  ;;  %v2732_v1 = vld [vmem:[%s2891_s12 + $0x41] sm:$0xff]  ;;  %v2733_v3 = vld [vmem:[%s2891_s12 + $0x71] sm:$0xff] }
 0x135   : > { %6958 = vst [vmem:[#allocation112_spill] sm:$0xff] %v4938_v28  ;;  %v4946_v16 = vstv %s4902_s9  ;;  %1971 = vrot.lane.b32.xlu0 %v4938_v28, %s2841_s28  ;;  %v4952_v46 = vrot.slane %v6395_v61, 1  ;;  %v4955_v24 = vadd.f32 %v6960_v18, %v1638_v38  ;;  %v2109_v27 = vmul.f32 %v2731_v31, %v4943_v54  ;;  %v6962_v25 = vld [vmem:[#allocation56_spill] sm:$0xff]  ;;  %v2734_v38 = vld [vmem:[%s2891_s12 + $0x79] sm:$0xff] }
 0x136   : > { %6959 = vst [vmem:[#allocation43_spill] sm:$0xff] %v4946_v16  ;;  %v2100_v20 = vadd.f32 %v2093_v43, %v2084_v29  ;;  %v1350_v22 = vadd.f32 %v1343_v14, %v1334_v62  ;;  %v2101_v60 = vadd.f32 %v2094_v39, %v2085_v51  ;;  %v2110_v17 = vmul.f32 %v2732_v1, %v4943_v54  ;;  %v6963_v39 = vld [vmem:[#allocation109_spill] sm:$0xff]  ;;  %v2740_v18 = vld [vmem:[%s2891_s12 + $0x7a] sm:$0xff] }
 0x137   : > { %6961 = vst [vmem:[#allocation117_spill] sm:$0xff] %v4955_v24  ;;  %v2125_v47 = vmul.f32 %v2733_v3, %v4946_v16  ;;  %v1130_v56 = vsel %vm299_vm0, %v6962_v25, %v4952_v46  ;;  %v6394_v43 = vmax.f32 %v4955_v24, 0.0  ;;  %v2126_v14 = vmul.f32 %v2734_v38, %v4946_v16  ;;  %v2735_v3 = vld [vmem:[%s2891_s12 + $0x2] sm:$0xff] }
 0x138   : > { %v2116_v6 = vadd.f32 %v2109_v27, %v2100_v20  ;;  %v6964_v29 = vmax.f32 %v6963_v39, 0.0  ;;  %v1366_v51 = vadd.f32 %v4891_v34, %v1350_v22  ;;  %v2117_v31 = vadd.f32 %v2110_v17, %v2101_v60  ;;  %v6968_v22 = vld [vmem:[#allocation118_spill] sm:$0xff] }
 0x139   : > { %v4977_v1 = vstv %s4919_s10  ;;  %891 = vrot.lane.b32.xlu0 %v4803_v53, %s2841_s28  ;;  %v4983_v20 = vrot.slane %v6394_v43, 1  ;;  %v4995_v38 = vstv %s4928_s11  ;;  %v4998_v39 = vstv %s4936_s13 }
 0x13a   : > { %v4973_v62 = vmax.f32 %v6964_v29, %v1130_v56  ;;  %6966 = vst [vmem:[#allocation45_spill] sm:$0xff] %v4977_v1  ;;  %v2132_v27 = vadd.f32 %v2125_v47, %v2116_v6  ;;  %v2141_v25 = vmul.f32 %v2735_v3, %v4977_v1  ;;  %v2736_v56 = vld [vmem:[%s2891_s12 + $0xa] sm:$0xff]  ;;  %v4992_v60 = vadd.f32 %v6968_v22, %v1366_v51  ;;  %v6970_v47 = vld [vmem:[#allocation60_spill] sm:$0xff]  ;;  %v2737_v3 = vld [vmem:[%s2891_s12 + $0x3a] sm:$0xff] }
 0x13b   : > { %6967 = vst [vmem:[#allocation49_spill] sm:$0xff] %v4983_v20  ;;  %v2142_v34 = vmul.f32 %v2736_v56, %v4977_v1  ;;  %v2133_v17 = vadd.f32 %v2126_v14, %v2117_v31  ;;  %v1672_v6 = vsel %vm299_vm0, %v6970_v47, %v4983_v20  ;;  %v2157_v56 = vmul.f32 %v2737_v3, %v4995_v38  ;;  %v2738_v43 = vld [vmem:[%s2891_s12 + $0x42] sm:$0xff]  ;;  %v6971_v51 = vld [vmem:[#allocation74_spill] sm:$0xff] }
 0x13c   : > { %6965 = vst [vmem:[#allocation44_spill] sm:$0xff] %v4973_v62  ;;  %1162 = vrot.lane.b32.xlu1 %v4973_v62, %s2841_s28  ;;  %6969 = vst [vmem:[#allocation18_spill] sm:$0xff] %v4992_v60  ;;  %v2148_v29 = vadd.f32 %v2141_v25, %v2132_v27  ;;  %v2158_v61 = vmul.f32 %v2738_v43, %v4995_v38  ;;  %v6972_v53 = vmax.f32 %v6971_v51, 0.0  ;;  %v6402_v14 = vmax.f32 %v4992_v60, 0.0  ;;  %v2739_v62 = vld [vmem:[%s2891_s12 + $0x72] sm:$0xff]  ;;  %v6974_v47 = vld [vmem:[#allocation64_spill] sm:$0xff] }
 0x13d   : > { %v2149_v31 = vadd.f32 %v2142_v34, %v2133_v17  ;;  %v2173_v24 = vmul.f32 %v2739_v62, %v4998_v39  ;;  %v2174_v27 = vmul.f32 %v2740_v18, %v4998_v39  ;;  %v5017_v25 = vstv %s4959_s14  ;;  %v6975_v3 = vld [vmem:[#allocation46_spill] sm:$0xff]  ;;  %v6977_v34 = vld [vmem:[#allocation55_spill] sm:$0xff]  ;;  %v6981_v51 = vld [vmem:[#allocation21_spill] sm:$0xff] }
 0x13e   : > { %v5009_v28 = vmax.f32 %v6972_v53, %v1672_v6  ;;  %v2164_v22 = vadd.f32 %v2157_v56, %v2148_v29  ;;  %v1775_v20 = vmul.f32 %v6975_v3, %v6974_v47  ;;  %v5025_v53 = vrot.slane %v6402_v14, 1  ;;  %v6978_v17 = vld [vmem:[#allocation71_spill] sm:$0xff]  ;;  %v6979_v6 = vld [vmem:[#allocation96_spill] sm:$0xff]  ;;  %v6980_v56 = vld [vmem:[#allocation57_spill] sm:$0xff] }
 0x13f   : > { %v2165_v43 = vadd.f32 %v2158_v61, %v2149_v31  ;;  %v1791_v62 = vmul.f32 %v6977_v34, %v4611_v21  ;;  %v1807_v18 = vmul.f32 %v6979_v6, %v6978_v17  ;;  %v1823_v15 = vmul.f32 %v6981_v51, %v6980_v56  ;;  %v6982_v60 = vld [vmem:[#allocation75_spill] sm:$0xff]  ;;  %v6984_v47 = vld [vmem:[#allocation48_spill] sm:$0xff]  ;;  %v6988_v51 = vld [vmem:[#allocation33_spill] sm:$0xff] }
 0x140   : > { %6973 = vst [vmem:[#allocation70_spill] sm:$0xff] %v5009_v28  ;;  %1704 = vrot.lane.b32.xlu1 %v5009_v28, %s2841_s28  ;;  %6976 = vst [vmem:[#allocation99_spill] sm:$0xff] %v5025_v53  ;;  %v2180_v29 = vadd.f32 %v2173_v24, %v2164_v22  ;;  %v1401_v3 = vsel %vm299_vm0, %v4746_v45, %v5025_v53  ;;  %v6983_v61 = vld [vmem:[#allocation27_spill] sm:$0xff]  ;;  %v6985_v34 = vmax.f32 %v6984_v47, 0.0  ;;  %v6987_v22 = vld [vmem:[#allocation32_spill] sm:$0xff] }
 0x141   : > { %v2181_v28 = vadd.f32 %v2174_v27, %v2165_v43  ;;  %v1798_v14 = vadd.f32 %v1791_v62, %v1775_v20  ;;  %v1839_v31 = vmul.f32 %v6983_v61, %v6982_v60  ;;  %v1855_v6 = vmul.f32 %v6987_v22, %v4695_v35  ;;  %v6989_v27 = vld [vmem:[#allocation35_spill] sm:$0xff]  ;;  %v2741_v62 = vld [vmem:[%s2891_s12 + $0x10] sm:$0xff] }
 0x142   : > { %v5040_v21 = vmax.f32 %v6985_v34, %v1401_v3  ;;  %v2189_v24 = vadd.f32 %v5017_v25, %v2180_v29  ;;  %v1871_v56 = vmul.f32 %v6988_v51, %v4698_v49  ;;  %v1887_v43 = vmul.f32 %v6989_v27, %v4701_v23  ;;  %v6990_v3 = vld [vmem:[#allocation47_spill] sm:$0xff]  ;;  %v2742_v34 = vld [vmem:[%s2891_s12 + $0x48] sm:$0xff] }
 0x143   : > { %v5048_v45 = vadd.f32 %v5017_v25, %v2181_v28  ;;  %v1814_v20 = vadd.f32 %v1807_v18, %v1798_v14  ;;  %v2047_v47 = vmul.f32 %v2741_v62, %v4897_v40  ;;  %v1903_v61 = vmul.f32 %v6990_v3, %v4733_v33  ;;  %v2743_v14 = vld [vmem:[%s2891_s12 + $0x80] sm:$0xff]  ;;  %v2745_v33 = vld [vmem:[%s2891_s12 + $0x49] sm:$0xff] }
 0x144   : > { %6986 = vst [vmem:[#allocation14_spill] sm:$0xff] %v5040_v21  ;;  %1433 = vrot.lane.b32.xlu0 %v5040_v21, %s2841_s28  ;;  %v2196_v29 = vmax.f32 %v2189_v24, 0.0  ;;  %v2063_v28 = vmul.f32 %v2742_v34, %v4900_v55  ;;  %v2079_v18 = vmul.f32 %v2743_v14, %v4914_v26  ;;  %v6991_v27 = vmax.f32 %v4922_v19, 0.0  ;;  %v2744_v24 = vld [vmem:[%s2891_s12 + $0x11] sm:$0xff]  ;;  %v2746_v23 = vld [vmem:[%s2891_s12 + $0x81] sm:$0xff] }
 0x145   : > { %v6412_v22 = vmax.f32 %v5048_v45, 0.0  ;;  %v1830_v51 = vadd.f32 %v1823_v15, %v1814_v20  ;;  %v2095_v21 = vmul.f32 %v2744_v24, %v4917_v44  ;;  %v2111_v34 = vmul.f32 %v2745_v33, %v4943_v54  ;;  %v5082_v24 = vpop.permute.xlu1 %606 }
 0x146   : > { %v5066_v62 = vmax.f32 %v6991_v27, %v4952_v46  ;;  %v2210_v3 = vrot.slane %v2196_v29, 1  ;;  %v2070_v53 = vadd.f32 %v2063_v28, %v2047_v47  ;;  %v2127_v14 = vmul.f32 %v2746_v23, %v4946_v16  ;;  %v2747_v46 = vld [vmem:[%s2891_s12 + $0x12] sm:$0xff]  ;;  %6993 = vst [vmem:[#allocation76_spill] sm:$0xff] %v5082_v24  ;;  %v2748_v28 = vld [vmem:[%s2891_s12 + $0x4a] sm:$0xff] }
 0x147   : > { %v5076_v15 = vrot.slane %v6412_v22, 1  ;;  %v1846_v19 = vadd.f32 %v1839_v31, %v1830_v51  ;;  %v2143_v20 = vmul.f32 %v2747_v46, %v4977_v1  ;;  %v1504_v27 = vmul.f32 %v4845_v8, %v4307_v9  ;;  %v2749_v46 = vld [vmem:[%s2891_s12 + $0x82] sm:$0xff] }
 0x148   : > { %6992 = vst [vmem:[#allocation102_spill] sm:$0xff] %v5066_v62  ;;  %v2086_v47 = vadd.f32 %v2079_v18, %v2070_v53  ;;  %v2159_v33 = vmul.f32 %v2748_v28, %v4995_v38  ;;  %v1520_v23 = vmul.f32 %v4850_v10, %v4324_v13  ;;  %v1536_v22 = vmul.f32 %v4855_v59, %v4327_v50 }
 0x149   : > { %v2212_v31 = vsel %vm299_vm0, %v2210_v3, %v5076_v15  ;;  %v1862_v51 = vadd.f32 %v1855_v6, %v1846_v19  ;;  %v5094_v8 = vmul.f32 %v2749_v46, %v4998_v39  ;;  %v1552_v53 = vmul.f32 %v4862_v0, %v4356_v48  ;;  %v5107_v19 = vld [vmem:[%s2891_s12 + $0x30] sm:$0x3] }
 0x14a   : > { %v5098_v18 = vmax.f32 %v2196_v29, %v2212_v31  ;;  %v2102_v28 = vadd.f32 %v2095_v21, %v2086_v47  ;;  %v1527_v24 = vadd.f32 %v1520_v23, %v1504_v27  ;;  %v1568_v59 = vmul.f32 %v4867_v37, %v4371_v5  ;;  %v5114_v27 = vld [vmem:[%s2891_s12 + $0x68] sm:$0x3]  ;;  %v5119_v47 = vld [vmem:[%s2891_s12 + $0xa0] sm:$0x3]  ;;  %v7003_v37 = vld [vmem:[#allocation114_spill] sm:$0xff] }
 0x14b   : > { %v1878_v10 = vadd.f32 %v1871_v56, %v1862_v51  ;;  %v1584_v6 = vmul.f32 %v4872_v52, %v6933_v42  ;;  %v1600_v3 = vmul.f32 %v4877_v30, %v6935_v7  ;;  %v1232_v46 = vmul.f32 %v5107_v19, %v6941_v41  ;;  %v5134_v51 = vpop.permute.xlu1 %608  ;;  %v5161_v30 = vld [vmem:[%s2891_s12 + $0x6a] sm:$0x3] }
 0x14c   : > { %6994 = vst [vmem:[#allocation111_spill] sm:$0xff] %v5098_v18  ;;  %2244 = vrot.lane.b32.xlu1 %v5098_v18, %s2841_s28  ;;  %v2118_v21 = vadd.f32 %v2111_v34, %v2102_v28  ;;  %v1543_v29 = vadd.f32 %v1536_v22, %v1527_v24  ;;  %v1248_v56 = vmul.f32 %v5114_v27, %v6943_v63  ;;  %v5128_v34 = vld [vmem:[%s2891_s12 + $0x31] sm:$0x3]  ;;  %v5132_v24 = vpop.permute.xlu0 %334  ;;  %6996 = vst [vmem:[#allocation94_spill] sm:$0xff] %v5134_v51  ;;  %v2760_v52 = vld [vmem:[%s2891_s12 + $0x88] sm:$0xff] }
 0x14d   : > { %v1264_v23 = vmul.f32 %v5119_v47, %v6945_v58  ;;  %v1894_v31 = vadd.f32 %v1887_v43, %v1878_v10  ;;  %v1616_v41 = vmul.f32 %v4882_v36, %v6937_v4  ;;  %v1632_v22 = vmul.f32 %v4887_v11, %v6939_v57  ;;  %6995 = vst [vmem:[#allocation116_spill] sm:$0xff] %v5132_v24  ;;  %v5137_v43 = vld [vmem:[%s2891_s12 + $0x69] sm:$0x3]  ;;  %v5142_v36 = vld [vmem:[%s2891_s12 + $0xa1] sm:$0x3] }
 0x14e   : > { %v1280_v63 = vmul.f32 %v5128_v34, %v6947_v12  ;;  %v2134_v28 = vadd.f32 %v2127_v14, %v2118_v21  ;;  %v1559_v58 = vadd.f32 %v1552_v53, %v1543_v29  ;;  %v1255_v10 = vadd.f32 %v1248_v56, %v1232_v46  ;;  %v5147_v24 = vld [vmem:[%s2891_s12 + $0x32] sm:$0x3]  ;;  %v6997_v14 = vld [vmem:[#allocation107_spill] sm:$0xff]  ;;  %7000 = vst [vmem:[#allocation16_spill] sm:$0xff] %v5161_v30  ;;  %v2764_v57 = vld [vmem:[%s2891_s12 + $0x89] sm:$0xff] }
 0x14f   : > { %v1296_v18 = vmul.f32 %v5137_v43, %v6949_v32  ;;  %v1910_v11 = vadd.f32 %v1903_v61, %v1894_v31  ;;  %v1312_v12 = vmul.f32 %v5142_v36, %v6951_v2  ;;  %v1328_v53 = vmul.f32 %v5147_v24, %v6997_v14  ;;  %v2757_v46 = vld [vmem:[%s2891_s12 + $0x18] sm:$0xff]  ;;  %v2758_v56 = vld [vmem:[%s2891_s12 + $0x50] sm:$0xff]  ;;  %v7001_v14 = vld [vmem:[#allocation108_spill] sm:$0xff] }
 0x150   : > { %v2048_v21 = vmul.f32 %v2757_v46, %v4897_v40  ;;  %1164 = vrot.lane.b32.xlu1 %v5066_v62, %s2841_s28  ;;  %v2150_v32 = vadd.f32 %v2143_v20, %v2134_v28  ;;  %v1575_v61 = vadd.f32 %v1568_v59, %v1559_v58  ;;  %v1271_v29 = vadd.f32 %v1264_v23, %v1255_v10  ;;  %v6998_v31 = vld [vmem:[#allocation77_spill] sm:$0xff]  ;;  %v2761_v20 = vld [vmem:[%s2891_s12 + $0x19] sm:$0xff] }
 0x151   : > { %v2064_v2 = vmul.f32 %v2758_v56, %v4900_v55  ;;  %v5158_v51 = vadd.f32 %v6998_v31, %v1910_v11  ;;  %v1344_v46 = vmul.f32 %v5161_v30, %v7001_v14  ;;  %v2080_v62 = vmul.f32 %v2760_v52, %v4914_v26  ;;  %v5171_v56 = vld [vmem:[%s2891_s12 + $0xa2] sm:$0x3]  ;;  %v2763_v31 = vld [vmem:[%s2891_s12 + $0x51] sm:$0xff]  ;;  %v5179_v30 = vpop.permute.xlu0 %336 }
 0x152   : > { %v2096_v59 = vmul.f32 %v2761_v20, %v4917_v44  ;;  %v2166_v23 = vadd.f32 %v2159_v33, %v2150_v32  ;;  %v1591_v28 = vadd.f32 %v1584_v6, %v1575_v61  ;;  %v1287_v58 = vadd.f32 %v1280_v63, %v1271_v29  ;;  %7002 = vst [vmem:[#allocation19_spill] sm:$0xff] %v5171_v56  ;;  %v5181_v33 = vpop.permute.xlu1 %610  ;;  %v7009_v20 = vld [vmem:[#allocation68_spill] sm:$0xff] }
 0x153   : > { %6999 = vst [vmem:[#allocation86_spill] sm:$0xff] %v5158_v51  ;;  %v2071_v10 = vadd.f32 %v2064_v2, %v2048_v21  ;;  %v6438_v11 = vmax.f32 %v5158_v51, 0.0  ;;  %v1360_v0 = vmul.f32 %v5171_v56, %v7003_v37  ;;  %v2112_v14 = vmul.f32 %v2763_v31, %v4943_v54  ;;  %7004 = vst [vmem:[#allocation22_spill] sm:$0xff] %v5179_v30  ;;  %v2765_v37 = vld [vmem:[%s2891_s12 + $0x1a] sm:$0xff]  ;;  %v7007_v2 = vld [vmem:[#allocation64_spill] sm:$0xff] }
 0x154   : > { %v2128_v52 = vmul.f32 %v2764_v57, %v4946_v16  ;;  %7005 = vst [vmem:[#allocation23_spill] sm:$0xff] %v5181_v33  ;;  %v2182_v6 = vadd.f32 %v5094_v8, %v2166_v23  ;;  %v1607_v63 = vadd.f32 %v1600_v3, %v1591_v28  ;;  %v1303_v21 = vadd.f32 %v1296_v18, %v1287_v58  ;;  %v7008_v31 = vld [vmem:[#allocation91_spill] sm:$0xff]  ;;  %v7010_v30 = vld [vmem:[#allocation80_spill] sm:$0xff]  ;;  %v7011_v3 = vld [vmem:[#allocation37_spill] sm:$0xff] }
 0x155   : > { %v2087_v32 = vadd.f32 %v2080_v62, %v2071_v10  ;;  %v5186_v61 = vrot.slane %v6438_v11, 1  ;;  %v2144_v29 = vmul.f32 %v2765_v37, %v4977_v1  ;;  %v1776_v57 = vmul.f32 %v7008_v31, %v7007_v2  ;;  %v7012_v58 = vld [vmem:[#allocation81_spill] sm:$0xff]  ;;  %v7014_v11 = vld [vmem:[#allocation36_spill] sm:$0xff] }
 0x156   : > { %v1792_v16 = vmul.f32 %v7010_v30, %v7009_v20  ;;  %v5195_v33 = vadd.f32 %v5017_v25, %v2182_v6  ;;  %v1623_v8 = vadd.f32 %v1616_v41, %v1607_v63  ;;  %v1319_v18 = vadd.f32 %v1312_v12, %v1303_v21  ;;  %v7013_v37 = vld [vmem:[#allocation57_spill] sm:$0xff]  ;;  %v7015_v1 = vld [vmem:[#allocation88_spill] sm:$0xff]  ;;  %v2766_v63 = vld [vmem:[%s2891_s12 + $0x52] sm:$0xff] }
 0x157   : > { %7006 = vst [vmem:[#allocation52_spill] sm:$0xff] %v5186_v61  ;;  %v2103_v62 = vadd.f32 %v2096_v59, %v2087_v32  ;;  %v1943_v23 = vsel %vm299_vm0, %v7011_v3, %v5186_v61  ;;  %v1808_v10 = vmul.f32 %v7012_v58, %v6978_v17  ;;  %v1824_v51 = vmul.f32 %v7014_v11, %v7013_v37  ;;  %v7018_v32 = vld [vmem:[#allocation105_spill] sm:$0xff]  ;;  %v5213_v3 = vpop.permute.xlu0 %338  ;;  %v5215_v61 = vpop.permute.xlu1 %881 }
 0x158   : > { %v1799_v28 = vadd.f32 %v1792_v16, %v1776_v57  ;;  %v7016_v2 = vmax.f32 %v7015_v1, 0.0  ;;  %v6443_v41 = vmax.f32 %v5195_v33, 0.0  ;;  %v1639_v12 = vadd.f32 %v1632_v22, %v1623_v8  ;;  %7019 = vst [vmem:[#allocation65_spill] sm:$0xff] %v5213_v3  ;;  %7020 = vst [vmem:[#allocation101_spill] sm:$0xff] %v5215_v61  ;;  %v7021_v22 = vld [vmem:[#allocation89_spill] sm:$0xff] }
 0x159   : > { %v1335_v59 = vadd.f32 %v1328_v53, %v1319_v18  ;;  %v2119_v6 = vadd.f32 %v2112_v14, %v2103_v62  ;;  %v2160_v21 = vmul.f32 %v2766_v63, %v4995_v38  ;;  %v1840_v57 = vmul.f32 %v7018_v32, %v6982_v60  ;;  %v7027_v61 = vld [vmem:[#allocation25_spill] sm:$0xff] }
 0x15a   : > { %v5206_v20 = vmax.f32 %v7016_v2, %v1943_v23  ;;  %v1815_v16 = vadd.f32 %v1808_v10, %v1799_v28  ;;  %v5221_v1 = vrot.slane %v6443_v41, 1  ;;  %v5224_v53 = vadd.f32 %v7021_v22, %v1639_v12  ;;  %v2767_v2 = vld [vmem:[%s2891_s12 + $0x8a] sm:$0xff]  ;;  %v7022_v23 = vld [vmem:[#allocation98_spill] sm:$0xff]  ;;  %v7023_v10 = vld [vmem:[#allocation115_spill] sm:$0xff] }
 0x15b   : > { %v1351_v14 = vadd.f32 %v1344_v46, %v1335_v59  ;;  %v2176_v8 = vmul.f32 %v2767_v2, %v4998_v39  ;;  %v2135_v18 = vadd.f32 %v2128_v52, %v2119_v6  ;;  %v1856_v28 = vmul.f32 %v7022_v23, %v4695_v35 }
 0x15c   : > { %7017 = vst [vmem:[#allocation15_spill] sm:$0xff] %v5206_v20  ;;  %1975 = vrot.lane.b32.xlu0 %v5206_v20, %s2841_s28  ;;  %v1831_v62 = vadd.f32 %v1824_v51, %v1815_v16  ;;  %v1872_v63 = vmul.f32 %v7023_v10, %v4698_v49  ;;  %v2214_v41 = vsel %vm299_vm0, %v5076_v15, %v5221_v1  ;;  %v6445_v20 = vmax.f32 %v5224_v53, 0.0  ;;  %v7026_v15 = vld [vmem:[#allocation118_spill] sm:$0xff] }
 0x15d   : > { %v1367_v12 = vadd.f32 %v1360_v0, %v1351_v14  ;;  %v1505_v46 = vmul.f32 %v5107_v19, %v4307_v9  ;;  %v7024_v59 = vmax.f32 %v5048_v45, 0.0  ;;  %v2151_v51 = vadd.f32 %v2144_v29, %v2135_v18  ;;  %v7028_v0 = vld [vmem:[#allocation106_spill] sm:$0xff]  ;;  %v5259_v18 = vpop.permute.xlu1 %612 }
 0x15e   : > { %v1847_v6 = vadd.f32 %v1840_v57, %v1831_v62  ;;  %v1521_v16 = vmul.f32 %v5114_v27, %v4324_v13  ;;  %v5246_v2 = vrot.slane %v6445_v20, 1  ;;  %v1888_v14 = vmul.f32 %v7028_v0, %v7027_v61  ;;  %v5257_v57 = vpop.permute.xlu0 %879  ;;  %7030 = vst [vmem:[#allocation109_spill] sm:$0xff] %v5259_v18  ;;  %v7031_v62 = vld [vmem:[#allocation49_spill] sm:$0xff] }
 0x15f   : > { %v5240_v52 = vmax.f32 %v7024_v59, %v2214_v41  ;;  %v1376_v3 = vadd.f32 %v7026_v15, %v1367_v12  ;;  %v1537_v9 = vmul.f32 %v5119_v47, %v4327_v50  ;;  %v2167_v45 = vadd.f32 %v2160_v21, %v2151_v51  ;;  %7029 = vst [vmem:[#allocation56_spill] sm:$0xff] %v5257_v57  ;;  %v7032_v15 = vld [vmem:[#allocation50_spill] sm:$0xff]  ;;  %v7033_v50 = vld [vmem:[#allocation31_spill] sm:$0xff] }
 0x160   : > { %v1863_v29 = vadd.f32 %v1856_v28, %v1847_v6  ;;  %v1528_v41 = vadd.f32 %v1521_v16, %v1505_v46  ;;  %v1553_v13 = vmul.f32 %v5128_v34, %v4356_v48  ;;  %v1674_v12 = vsel %vm299_vm0, %v7031_v62, %v5246_v2  ;;  %v7034_v28 = vld [vmem:[#allocation117_spill] sm:$0xff] }
 0x161   : > { %7025 = vst [vmem:[#allocation95_spill] sm:$0xff] %v5240_v52  ;;  %2246 = vrot.lane.b32.xlu0 %v5240_v52, %s2841_s28  ;;  %v1383_v59 = vmax.f32 %v1376_v3, 0.0  ;;  %v1904_v20 = vmul.f32 %v7033_v50, %v7032_v15  ;;  %v1569_v21 = vmul.f32 %v5137_v43, %v4371_v5  ;;  %v7035_v46 = vmax.f32 %v7034_v28, 0.0 }
 0x162   : > { %v2183_v48 = vadd.f32 %v2176_v8, %v2167_v45  ;;  %v1879_v6 = vadd.f32 %v1872_v63, %v1863_v29  ;;  %v1544_v16 = vadd.f32 %v1537_v9, %v1528_v41  ;;  %v1585_v18 = vmul.f32 %v5142_v36, %v6933_v42  ;;  %v7038_v63 = vld [vmem:[#allocation99_spill] sm:$0xff]  ;;  %v7039_v45 = vld [vmem:[#allocation18_spill] sm:$0xff] }
 0x163   : > { %v5270_v51 = vmax.f32 %v7035_v46, %v1674_v12  ;;  %v1402_v52 = vrot.slane %v1383_v59, 1  ;;  %v2049_v3 = vmul.f32 %v7008_v31, %v4897_v40  ;;  %v2065_v8 = vmul.f32 %v7010_v30, %v4900_v55  ;;  %v5294_v46 = vpop.permute.xlu0 %340  ;;  %v5296_v30 = vpop.permute.xlu1 %1152 }
 0x164   : > { %v5279_v62 = vadd.f32 %v5017_v25, %v2183_v48  ;;  %v1895_v5 = vadd.f32 %v1888_v14, %v1879_v6  ;;  %v1560_v28 = vadd.f32 %v1553_v13, %v1544_v16  ;;  %v1601_v42 = vmul.f32 %v5147_v24, %v6935_v7  ;;  %7042 = vst [vmem:[#allocation55_spill] sm:$0xff] %v5294_v46  ;;  %v7044_v48 = vld [vmem:[#allocation16_spill] sm:$0xff] }
 0x165   : > { %7036 = vst [vmem:[#allocation60_spill] sm:$0xff] %v5270_v51  ;;  %1706 = vrot.lane.b32.xlu1 %v5270_v51, %s2841_s28  ;;  %v1403_v9 = vsel %vm299_vm0, %v7038_v63, %v1402_v52  ;;  %v2081_v31 = vmul.f32 %v7012_v58, %v4914_v26  ;;  %v7040_v29 = vmax.f32 %v7039_v45, 0.0  ;;  %7043 = vst [vmem:[#allocation71_spill] sm:$0xff] %v5296_v30  ;;  %v7045_v16 = vld [vmem:[#allocation20_spill] sm:$0xff]  ;;  %v7048_v45 = vld [vmem:[#allocation43_spill] sm:$0xff] }
 0x166   : > { %7037 = vst [vmem:[#allocation74_spill] sm:$0xff] %v5279_v62  ;;  %v6449_v12 = vmax.f32 %v5279_v62, 0.0  ;;  %v1911_v14 = vadd.f32 %v1904_v20, %v1895_v5  ;;  %v1576_v13 = vadd.f32 %v1569_v21, %v1560_v28  ;;  %v1617_v6 = vmul.f32 %v7044_v48, %v6937_v4  ;;  %v7047_v21 = vld [vmem:[#allocation77_spill] sm:$0xff]  ;;  %v7056_v30 = vld [vmem:[#allocation39_spill] sm:$0xff] }
 0x167   : > { %v5291_v41 = vmax.f32 %v7040_v29, %v1403_v9  ;;  %v1633_v7 = vmul.f32 %v5171_v56, %v7045_v16  ;;  %v2072_v63 = vadd.f32 %v2065_v8, %v2049_v3  ;;  %v2097_v58 = vmul.f32 %v7014_v11, %v4917_v44  ;;  %v7049_v8 = vld [vmem:[#allocation64_spill] sm:$0xff]  ;;  %v7050_v11 = vld [vmem:[#allocation38_spill] sm:$0xff]  ;;  %v5341_v56 = vpop.permute.xlu0 %883 }
 0x168   : > { %v5308_v20 = vrot.slane %v6449_v12, 1  ;;  %v5311_v5 = vadd.f32 %v7047_v21, %v1911_v14  ;;  %v1592_v28 = vadd.f32 %v1585_v18, %v1576_v13  ;;  %v2113_v4 = vmul.f32 %v7018_v32, %v4943_v54  ;;  %v7051_v16 = vld [vmem:[#allocation68_spill] sm:$0xff] }
 0x169   : > { %7041 = vst [vmem:[#allocation46_spill] sm:$0xff] %v5291_v41  ;;  %1435 = vrot.lane.b32.xlu0 %v5291_v41, %s2841_s28  ;;  %v2088_v9 = vadd.f32 %v2081_v31, %v2072_v63  ;;  %v2129_v3 = vmul.f32 %v7022_v23, %v7048_v45  ;;  %v1777_v29 = vmul.f32 %v7050_v11, %v7049_v8  ;;  %v7052_v41 = vld [vmem:[#allocation13_spill] sm:$0xff]  ;;  %v7053_v13 = vld [vmem:[#allocation100_spill] sm:$0xff]  ;;  %v7054_v31 = vmax.f32 %v5195_v33, 0.0  ;;  %v5343_v33 = vpop.permute.xlu1 %342 }
 0x16a   : > { %7046 = vst [vmem:[#allocation96_spill] sm:$0xff] %v5308_v20  ;;  %v1793_v51 = vmul.f32 %v7052_v41, %v7051_v16  ;;  %v2216_v12 = vsel %vm299_vm0, %v5221_v1, %v5308_v20  ;;  %v6454_v14 = vmax.f32 %v5311_v5, 0.0  ;;  %v1608_v18 = vadd.f32 %v1601_v42, %v1592_v28  ;;  %v7057_v42 = vld [vmem:[#allocation45_spill] sm:$0xff] }
 0x16b   : > { %v1809_v32 = vmul.f32 %v7053_v13, %v6978_v17  ;;  %v5329_v63 = vmax.f32 %v7054_v31, %v2216_v12  ;;  %v2104_v23 = vadd.f32 %v2097_v58, %v2088_v9  ;;  %v1825_v57 = vmul.f32 %v7056_v30, %v7013_v37  ;;  %v7058_v9 = vld [vmem:[#allocation17_spill] sm:$0xff] }
 0x16c   : > { %v1800_v46 = vadd.f32 %v1793_v51, %v1777_v29  ;;  %v5335_v62 = vrot.slane %v6454_v14, 1  ;;  %v1624_v1 = vadd.f32 %v1617_v6, %v1608_v18  ;;  %v5337_v20 = vmax.f32 %v1383_v59, %v1402_v52  ;;  %v7059_v52 = vld [vmem:[#allocation52_spill] sm:$0xff]  ;;  %v7061_v14 = vld [vmem:[#allocation86_spill] sm:$0xff] }
 0x16d   : > { %7055 = vst [vmem:[#allocation21_spill] sm:$0xff] %v5329_v63  ;;  %v2145_v28 = vmul.f32 %v7023_v10, %v7057_v42  ;;  %2248 = vrot.lane.b32.xlu1 %v5329_v63, %s2841_s28  ;;  %v2120_v51 = vadd.f32 %v2113_v4, %v2104_v23  ;;  %v2161_v12 = vmul.f32 %v7028_v0, %v4995_v38  ;;  %v7060_v29 = vld [vmem:[#allocation104_spill] sm:$0xff]  ;;  %v7062_v4 = vmax.f32 %v7061_v14, 0.0 }
 0x16e   : > { %v1816_v58 = vadd.f32 %v1809_v32, %v1800_v46  ;;  %v1841_v6 = vmul.f32 %v7058_v9, %v6982_v60  ;;  %v1945_v59 = vsel %vm299_vm0, %v7059_v52, %v5335_v62  ;;  %v1640_v10 = vadd.f32 %v1633_v7, %v1624_v1  ;;  %v7063_v1 = vld [vmem:[#allocation40_spill] sm:$0xff] }
 0x16f   : > { %v1857_v18 = vmul.f32 %v7060_v29, %v4695_v35  ;;  %v1778_v31 = vmul.f32 %v5107_v19, %v7049_v8  ;;  %v5360_v23 = vmax.f32 %v7062_v4, %v1945_v59  ;;  %v2136_v0 = vadd.f32 %v2129_v3, %v2120_v51  ;;  %v7064_v51 = vld [vmem:[#allocation110_spill] sm:$0xff]  ;;  %v5382_v59 = vpop.permute.xlu0 %1154 }
 0x170   : > { %v1832_v46 = vadd.f32 %v1825_v57, %v1816_v58  ;;  %v1794_v32 = vmul.f32 %v5114_v27, %v7051_v16  ;;  %v5365_v63 = vadd.f32 %v7021_v22, %v1640_v10  ;;  %v2177_v7 = vmul.f32 %v7033_v50, %v4998_v39 }
 0x171   : > { %v1873_v52 = vmul.f32 %v7063_v1, %v4698_v49  ;;  %v1810_v8 = vmul.f32 %v5119_v47, %v6978_v17  ;;  %1977 = vrot.lane.b32.xlu0 %v5360_v23, %s2841_s28  ;;  %v2152_v3 = vadd.f32 %v2145_v28, %v2136_v0  ;;  %v1826_v16 = vmul.f32 %v5128_v34, %v7013_v37  ;;  %v5384_v17 = vpop.permute.xlu1 %885 }
 0x172   : > { %v1848_v57 = vadd.f32 %v1841_v6, %v1832_v46  ;;  %v1801_v14 = vadd.f32 %v1794_v32, %v1778_v31  ;;  %v1656_v22 = vmax.f32 %v5365_v63, 0.0  ;;  %v1889_v50 = vmul.f32 %v7064_v51, %v7027_v61  ;;  %v7065_v31 = vld [vmem:[#allocation42_spill] sm:$0xff] }
 0x173   : > { %v1842_v58 = vmul.f32 %v5137_v43, %v6982_v60  ;;  %v2168_v10 = vadd.f32 %v2161_v12, %v2152_v3  ;;  %v2050_v6 = vmul.f32 %v7050_v11, %v4897_v40  ;;  %v1905_v0 = vmul.f32 %v7065_v31, %v7032_v15 }
 0x174   : > { %v1864_v4 = vadd.f32 %v1857_v18, %v1848_v57  ;;  %v1817_v28 = vadd.f32 %v1810_v8, %v1801_v14  ;;  %v5390_v37 = vrot.slane %v1656_v22, 1  ;;  %v2066_v60 = vmul.f32 %v7052_v41, %v4900_v55 }
 0x175   : > { %v2082_v46 = vmul.f32 %v7053_v13, %v4914_v26  ;;  %1437 = vrot.lane.b32.xlu0 %v5337_v20, %s2841_s28  ;;  %v2184_v12 = vadd.f32 %v2177_v7, %v2168_v10  ;;  %v1858_v11 = vmul.f32 %v5142_v36, %v4695_v35  ;;  %v1874_v3 = vmul.f32 %v5147_v24, %v4698_v49  ;;  %v5420_v10 = vpop.permute.xlu0 %614 }
 0x176   : > { %v1880_v18 = vadd.f32 %v1873_v52, %v1864_v4  ;;  %v1833_v32 = vadd.f32 %v1826_v16, %v1817_v28  ;;  %v1676_v8 = vsel %vm299_vm0, %v5246_v2, %v5390_v37  ;;  %v2073_v41 = vadd.f32 %v2066_v60, %v2050_v6  ;;  %v5422_v4 = vpop.permute.xlu1 %1425 }
 0x177   : > { %v2098_v13 = vmul.f32 %v7056_v30, %v4917_v44  ;;  %v7066_v57 = vmax.f32 %v5224_v53, 0.0  ;;  %v5414_v7 = vadd.f32 %v5017_v25, %v2184_v12  ;;  %v1890_v16 = vmul.f32 %v7044_v48, %v7027_v61  ;;  %v7067_v12 = vld [vmem:[#allocation19_spill] sm:$0xff] }
 0x178   : > { %v1896_v52 = vadd.f32 %v1889_v50, %v1880_v18  ;;  %v1849_v35 = vadd.f32 %v1842_v58, %v1833_v32  ;;  %v2089_v2 = vadd.f32 %v2082_v46, %v2073_v41  ;;  %v2114_v49 = vmul.f32 %v7058_v9, %v4943_v54 }
 0x179   : > { %v5411_v14 = vmax.f32 %v7066_v57, %v1676_v8  ;;  %v2200_v53 = vmax.f32 %v5414_v7, 0.0  ;;  %v2051_v50 = vmul.f32 %v5107_v19, %v4897_v40  ;;  %v2130_v61 = vmul.f32 %v7060_v29, %v7048_v45  ;;  %v7069_v8 = vld [vmem:[#allocation74_spill] sm:$0xff]  ;;  %v5454_v57 = vpop.permute.xlu0 %1156 }
 0x17a   : > { %v1912_v30 = vadd.f32 %v1905_v0, %v1896_v52  ;;  %v1865_v28 = vadd.f32 %v1858_v11, %v1849_v35  ;;  %v2105_v58 = vadd.f32 %v2098_v13, %v2089_v2  ;;  %v2067_v9 = vmul.f32 %v5114_v27, %v4900_v55  ;;  %v7068_v27 = vld [vmem:[#allocation96_spill] sm:$0xff] }
 0x17b   : > { %1708 = vrot.lane.b32.xlu1 %v5411_v14, %s2841_s28  ;;  %v2083_v6 = vmul.f32 %v5119_v47, %v4914_v26  ;;  %v2217_v60 = vrot.slane %v2200_v53, 1  ;;  %v1906_v18 = vmul.f32 %v7067_v12, %v7032_v15  ;;  %v2146_v19 = vmul.f32 %v7063_v1, %v7057_v42 }
 0x17c   : > { %v1921_v46 = vadd.f32 %v7047_v21, %v1912_v30  ;;  %v1881_v0 = vadd.f32 %v1874_v3, %v1865_v28  ;;  %v2121_v40 = vadd.f32 %v2114_v49, %v2105_v58  ;;  %v2074_v29 = vadd.f32 %v2067_v9, %v2051_v50 }
 0x17d   : > { %v2099_v55 = vmul.f32 %v5128_v34, %v4917_v44  ;;  %v2218_v26 = vsel %vm299_vm0, %v7068_v27, %v2217_v60  ;;  %v2162_v11 = vmul.f32 %v7064_v51, %v4995_v38  ;;  %v7070_v3 = vmax.f32 %v7069_v8, 0.0  ;;  %v345_v44 = vpop.permute.xlu1 %344  ;;  %v367_v8 = vld [vmem:[%s6006_s3 + $0x28] sm:$0xff] }
 0x17e   : > { %v1928_v47 = vmax.f32 %v1921_v46, 0.0  ;;  %v1897_v32 = vadd.f32 %v1890_v16, %v1881_v0  ;;  %v2137_v15 = vadd.f32 %v2130_v61, %v2121_v40  ;;  %v2090_v13 = vadd.f32 %v2083_v6, %v2074_v29 }
 0x17f   : > { %v5450_v41 = vmax.f32 %v7070_v3, %v2218_v26  ;;  %v2115_v1 = vmul.f32 %v5137_v43, %v4943_v54  ;;  %v2178_v51 = vmul.f32 %v7065_v31, %v4998_v39  ;;  %v2131_v2 = vmul.f32 %v5142_v36, %v7048_v45  ;;  %v5480_v45 = vpop.permute.xlu0 %1427  ;;  %v2485_v3 = vld [vmem:[%s6006_s3 + $0x1e8] sm:$0xff] }
 0x180   : > { %v1946_v34 = vrot.slane %v1928_v47, 1  ;;  %v1913_v52 = vadd.f32 %v1906_v18, %v1897_v32  ;;  %v2153_v35 = vadd.f32 %v2146_v19, %v2137_v15  ;;  %v2106_v16 = vadd.f32 %v2099_v55, %v2090_v13  ;;  %v7072_v32 = vld [vmem:[#allocation97_spill] sm:$0xff]  ;;  %v7073_v15 = vld [vmem:[#allocation82_spill] sm:$0xff] }
 0x181   : > { %2250 = vrot.lane.b32.xlu1 %v5450_v41, %s2841_s28  ;;  %v7071_v43 = vmax.f32 %v5311_v5, 0.0  ;;  %v2147_v58 = vmul.f32 %v5147_v24, %v7057_v42  ;;  %v5476_v36 = vmax.f32 %v1656_v22, %v5390_v37  ;;  %v2163_v5 = vmul.f32 %v7044_v48, %v4995_v38  ;;  %v888_v31 = vpop.permute.xlu1 %887 }
 0x182   : > { %v1947_v49 = vsel %vm299_vm0, %v5335_v62, %v1946_v34  ;;  %v1922_v54 = vadd.f32 %v7047_v21, %v1913_v52  ;;  %v2169_v28 = vadd.f32 %v2162_v11, %v2153_v35  ;;  %v2122_v50 = vadd.f32 %v2115_v1, %v2106_v16  ;;  %v2502_v1 = vld [vmem:[%s6006_s3 + $0x60] sm:$0xff] }
 0x183   : > { %v5467_v30 = vmax.f32 %v7071_v43, %v1947_v49  ;;  %v2179_v6 = vmul.f32 %v7067_v12, %v4998_v39  ;;  %v617_v18 = vpop.permute.xlu0 %616  ;;  %v360_v11 = vmax.f32 %v7072_v32, %v345_v44  ;;  %v359_v13 = vmax.f32 %v7073_v15, %v5343_v33  ;;  %v7074_v44 = vld [vmem:[#allocation85_spill] sm:$0xff]  ;;  %v366_v35 = vld [vmem:[%s6006_s3 + $0x20] sm:$0xff]  ;;  %v7075_v33 = vld [vmem:[#allocation54_spill] sm:$0xff] }
 0x184   : > { %v1929_v61 = vmax.f32 %v1922_v54, 0.0  ;;  %v2185_v62 = vadd.f32 %v2178_v51, %v2169_v28  ;;  %v2138_v21 = vadd.f32 %v2131_v2, %v2122_v50  ;;  %v632_v52 = vmax.f32 %v7074_v44, %v617_v18  ;;  %v2484_v51 = vld [vmem:[%s6006_s3 + $0x1e0] sm:$0xff]  ;;  %v2501_v28 = vld [vmem:[%s6006_s3 + $0x58] sm:$0xff] }
 0x185   : > { %1979 = vrot.lane.b32.xlu0 %v5467_v30, %s2841_s28  ;;  %v5494_v40 = vpop.permute.xlu1 %1429  ;;  %v631_v16 = vmax.f32 %v7075_v33, %v5420_v10  ;;  %v374_v2 = vmul.f32 %v367_v8, %v360_v11  ;;  %v396_v49 = vmul.f32 %v2485_v3, %v360_v11  ;;  %v2508_v50 = vld [vmem:[%s6006_s3 + $0x218] sm:$0xff]  ;;  %v2525_v10 = vld [vmem:[%s6006_s3 + $0x90] sm:$0xff]  ;;  %v7077_v18 = vld [vmem:[#allocation24_spill] sm:$0xff] }
 0x186   : > { %v1948_v9 = vrot.slane %v1929_v61, 1  ;;  %v2194_v24 = vadd.f32 %v5017_v25, %v2185_v62  ;;  %v2154_v42 = vadd.f32 %v2147_v58, %v2138_v21  ;;  %v7076_v58 = vld [vmem:[#allocation84_spill] sm:$0xff]  ;;  %v647_v62 = vmul.f32 %v2502_v1, %v632_v52  ;;  %v2533_v33 = vld [vmem:[%s6006_s3 + $0x258] sm:$0xff] }
 0x187   : > { %v5506_v27 = vpop.permute.xlu0 %1158  ;;  %v2556_v1 = vld [vmem:[%s6006_s3 + $0x288] sm:$0xff] }
 0x188   : > { %v1949_v46 = vsel %vm299_vm0, %v1946_v34, %v1948_v9  ;;  %v2201_v22 = vmax.f32 %v2194_v24, 0.0  ;;  %v2170_v37 = vadd.f32 %v2163_v5, %v2154_v42  ;;  %v5492_v38 = vmax.f32 %v1929_v61, %v1948_v9  ;;  %v2509_v34 = vld [vmem:[%s6006_s3 + $0x220] sm:$0xff]  ;;  %v2532_v24 = vld [vmem:[%s6006_s3 + $0x250] sm:$0xff] }
 0x189   : > { %v5486_v63 = vmax.f32 %v1928_v47, %v1949_v46  ;;  %1710 = vrot.lane.b32.xlu0 %v5476_v36, %s2841_s28  ;;  %v5508_v26 = vpop.permute.xlu1 %1700  ;;  %v904_v61 = vmax.f32 %v7076_v58, %v888_v31  ;;  %v669_v21 = vmul.f32 %v2509_v34, %v632_v52  ;;  %v373_v5 = vmul.f32 %v366_v35, %v359_v13  ;;  %v2503_v31 = vld [vmem:[%s6006_s3 + $0x68] sm:$0x1] }
 0x18a   : > { %v2219_v48 = vrot.slane %v2201_v22, 1  ;;  %v2186_v0 = vadd.f32 %v2179_v6, %v2170_v37  ;;  %v395_v9 = vmul.f32 %v2484_v51, %v359_v13  ;;  %v646_v42 = vmul.f32 %v2501_v28, %v631_v16  ;;  %v2510_v37 = vld [vmem:[%s6006_s3 + $0x228] sm:$0x1]  ;;  %v2526_v51 = vld [vmem:[%s6006_s3 + $0x98] sm:$0xff] }
 0x18b   : > { %1981 = vrot.lane.b32.xlu1 %v5486_v63, %s2841_s28  ;;  %v5519_v7 = vpop.permute.xlu0 %1698  ;;  %v668_v6 = vmul.f32 %v2508_v50, %v631_v16  ;;  %v654_v46 = vadd.f32 %v647_v62, %v374_v2  ;;  %v7079_v52 = vld [vmem:[#allocation92_spill] sm:$0xff]  ;;  %v7080_v16 = vld [vmem:[#allocation59_spill] sm:$0xff] }
 0x18c   : > { %v2220_v39 = vsel %vm299_vm0, %v2217_v60, %v2219_v48  ;;  %v2195_v12 = vadd.f32 %v5017_v25, %v2186_v0  ;;  %v941_v0 = vmul.f32 %v2532_v24, %v904_v61  ;;  %v653_v8 = vadd.f32 %v646_v42, %v373_v5  ;;  %v2550_v42 = vld [vmem:[%s6006_s3 + $0xd0] sm:$0xff] }
 0x18d   : > { %v5500_v19 = vmax.f32 %v2200_v53, %v2220_v39  ;;  %v619_v53 = vpop.permute.xlu1 %618  ;;  %v675_v3 = vadd.f32 %v668_v6, %v395_v9  ;;  %v2557_v6 = vld [vmem:[%s6006_s3 + $0x290] sm:$0xff] }
 0x18e   : > { %v2202_v29 = vmax.f32 %v2195_v12, 0.0  ;;  %v633_v39 = vmax.f32 %v7077_v18, %v619_v53  ;;  %v368_v12 = vld [vmem:[%s6006_s3 + $0x30] sm:$0x1]  ;;  %v2549_v53 = vld [vmem:[%s6006_s3 + $0xc8] sm:$0xff] }
 0x18f   : > { %1983 = vrot.lane.b32.xlu1 %v5492_v38, %s2841_s28  ;;  %2252 = vrot.lane.b32.xlu0 %v5500_v19, %s2841_s28  ;;  %v347_v54 = vpop.permute.xlu0 %346  ;;  %v7083_v18 = vld [vmem:[#allocation53_spill] sm:$0xff] }
 0x190   : > { %v2221_v55 = vrot.slane %v2202_v29, 1  ;;  %v648_v15 = vmul.f32 %v2503_v31, %v633_v39  ;;  %v670_v13 = vmul.f32 %v2510_v37, %v633_v39  ;;  %v7081_v37 = vld [vmem:[#allocation44_spill] sm:$0xff] }
 0x191   : > { %v1161_v43 = vpop.permute.xlu1 %1160 }
 0x192   : > { %v5510_v47 = vmax.f32 %v2202_v29, %v2221_v55  ;;  %v2222_v25 = vsel %vm299_vm0, %v2219_v48, %v2221_v55  ;;  %v919_v48 = vmul.f32 %v2525_v10, %v904_v61  ;;  %v2486_v29 = vld [vmem:[%s6006_s3 + $0x1f0] sm:$0x1]  ;;  %v7078_v55 = vld [vmem:[#allocation90_spill] sm:$0xff]  ;;  %v1177_v35 = vmax.f32 %v7079_v52, %v1161_v43 }
 0x193   : > { %v5513_v60 = vmax.f32 %v2201_v22, %v2222_v25  ;;  %v676_v22 = vadd.f32 %v669_v21, %v396_v49  ;;  %v361_v25 = vmax.f32 %v7078_v55, %v347_v54  ;;  %v890_v32 = vpop.permute.xlu0 %889  ;;  %v948_v54 = vadd.f32 %v941_v0, %v675_v3  ;;  %v7082_v0 = vld [vmem:[#allocation76_spill] sm:$0xff]  ;;  %v2504_v3 = vld [vmem:[%s6006_s3 + $0x1f8] sm:$0xff] }
 0x194   : > { %2256 = vrot.lane.b32.xlu1 %v5510_v47, %s2841_s28  ;;  %v905_v2 = vmax.f32 %v7080_v16, %v890_v32  ;;  %v926_v49 = vadd.f32 %v919_v48, %v653_v8  ;;  %v1192_v58 = vmul.f32 %v2549_v53, %v1177_v35  ;;  %v1214_v61 = vmul.f32 %v2556_v1, %v1177_v35  ;;  %v7087_v53 = vld [vmem:[#allocation93_spill] sm:$0xff]  ;;  %v7089_v16 = vld [vmem:[#allocation12_spill] sm:$0xff] }
 0x195   : > { %2254 = vrot.lane.b32.xlu0 %v5513_v60, %s2841_s28  ;;  %v5572_v11 = vpop.permute.xlu1 %1702  ;;  %v375_v34 = vmul.f32 %v368_v12, %v361_v25  ;;  %v397_v44 = vmul.f32 %v2486_v29, %v361_v25  ;;  %v627_v39 = vmax.f32 %v7083_v18, %v7082_v0  ;;  %v7084_v12 = vld [vmem:[#allocation116_spill] sm:$0xff]  ;;  %v7085_v29 = vld [vmem:[#allocation63_spill] sm:$0xff]  ;;  %v7091_v0 = vld [vmem:[#allocation69_spill] sm:$0xff] }
 0x196   : > { %v920_v62 = vmul.f32 %v2526_v51, %v905_v2  ;;  %v942_v43 = vmul.f32 %v2533_v33, %v905_v2  ;;  %v5594_v5 = vadd.f32 %v1192_v58, %v926_v49  ;;  %v5596_v9 = vadd.f32 %v1214_v61, %v948_v54  ;;  %v7088_v33 = vld [vmem:[#allocation71_spill] sm:$0xff]  ;;  %v2528_v58 = vld [vmem:[%s6006_s3 + $0x230] sm:$0xff]  ;;  %v2545_v61 = vld [vmem:[%s6006_s3 + $0xa8] sm:$0xff] }
 0x197   : > { %v5588_v28 = vadd.f32 %v648_v15, %v375_v34  ;;  %v5590_v50 = vadd.f32 %v670_v13, %v397_v44  ;;  %v355_v55 = vmax.f32 %v7085_v29, %v7084_v12  ;;  %v5615_v25 = vpop.permute.xlu0 %1431  ;;  %v2480_v15 = vld [vmem:[%s6006_s3 + $0x1c0] sm:$0xff]  ;;  %v2521_v34 = vld [vmem:[%s6006_s3 + $0x70] sm:$0xff]  ;;  %v1173_v2 = vmax.f32 %v7089_v16, %v7088_v33  ;;  %v2593_v12 = vld [vmem:[%s6006_s3 + $0x118] sm:$0xff] }
 0x198   : > { %v927_v10 = vadd.f32 %v920_v62, %v654_v46  ;;  %v949_v24 = vadd.f32 %v942_v43, %v676_v22  ;;  %v2497_v46 = vld [vmem:[%s6006_s3 + $0x38] sm:$0xff]  ;;  %v362_v22 = vld [vmem:[%s6006_s3] sm:$0xff]  ;;  %v664_v49 = vmul.f32 %v2504_v3, %v627_v39  ;;  %v7090_v43 = vld [vmem:[#allocation41_spill] sm:$0xff]  ;;  %v1719_v18 = vmax.f32 %v7091_v0, %v5519_v7 }
 0x199   : > { %v7086_v13 = vld [vmem:[#allocation56_spill] sm:$0xff]  ;;  %v642_v35 = vmul.f32 %v2497_v46, %v627_v39  ;;  %v369_v51 = vmul.f32 %v362_v22, %v355_v55  ;;  %v391_v54 = vmul.f32 %v2480_v15, %v355_v55  ;;  %v2600_v7 = vld [vmem:[%s6006_s3 + $0x2d8] sm:$0xff]  ;;  %v2617_v3 = vld [vmem:[%s6006_s3 + $0x150] sm:$0xff] }
 0x19a   : > { %v5592_v21 = vpop.permute.xlu1 %1973  ;;  %v900_v1 = vmax.f32 %v7087_v53, %v7086_v13  ;;  %v1756_v33 = vmul.f32 %v2600_v7, %v1719_v18  ;;  %v7099_v7 = vld [vmem:[#allocation83_spill] sm:$0xff] }
 0x19b   : > { %v671_v39 = vadd.f32 %v664_v49, %v391_v54  ;;  %v2648_v49 = vld [vmem:[%s6006_s3 + $0x348] sm:$0xff] }
 0x19c   : > { %v915_v62 = vmul.f32 %v2521_v34, %v900_v1  ;;  %v2624_v34 = vld [vmem:[%s6006_s3 + $0x310] sm:$0xff] }
 0x1ae   : > { %v1163_v31 = vpop.permute.xlu1 %1162 }
 0x1af   : > { %v1178_v48 = vmax.f32 %v7081_v37, %v1163_v31  ;;  %v649_v31 = vadd.f32 %v642_v35, %v369_v51  ;;  %v937_v37 = vmul.f32 %v2528_v58, %v900_v1  ;;  %v1734_v1 = vmul.f32 %v2593_v12, %v1719_v18 }
 0x1b1   : > { %v1193_v32 = vmul.f32 %v2550_v42, %v1178_v48  ;;  %v1215_v8 = vmul.f32 %v2557_v6, %v1178_v48  ;;  %v2569_v42 = vld [vmem:[%s6006_s3 + $0xe0] sm:$0xff]  ;;  %v1972_v6 = vpop.permute.xlu0 %1971  ;;  %v1188_v48 = vmul.f32 %v2545_v61, %v1173_v2  ;;  %v922_v55 = vadd.f32 %v915_v62, %v649_v31  ;;  %v7096_v31 = vld [vmem:[#allocation22_spill] sm:$0xff] }
 0x1b2   : > { %v5656_v29 = vpop.permute.xlu1 %1704  ;;  %v944_v15 = vadd.f32 %v937_v37, %v671_v39  ;;  %v7097_v37 = vld [vmem:[#allocation72_spill] sm:$0xff] }
 0x1b3   : > { %v5628_v44 = vadd.f32 %v1193_v32, %v927_v10  ;;  %v5630_v52 = vadd.f32 %v1215_v8, %v949_v24  ;;  %v1446_v10 = vmax.f32 %v7090_v43, %v5422_v4  ;;  %v2552_v24 = vld [vmem:[%s6006_s3 + $0x268] sm:$0xff]  ;;  %v2576_v4 = vld [vmem:[%s6006_s3 + $0x2a0] sm:$0xff]  ;;  %v1195_v13 = vadd.f32 %v1188_v48, %v922_v55 }
 0x1b4   : > { %v1210_v46 = vmul.f32 %v2552_v24, %v1173_v2  ;;  %v7092_v32 = vld [vmem:[#allocation112_spill] sm:$0xff]  ;;  %v7093_v43 = vld [vmem:[#allocation111_spill] sm:$0xff]  ;;  %v7094_v24 = vld [vmem:[#allocation94_spill] sm:$0xff]  ;;  %v356_v48 = vmax.f32 %v7097_v37, %v7096_v31 }
 0x1b5   : > { %v1461_v22 = vmul.f32 %v2569_v42, %v1446_v10  ;;  %v1992_v8 = vmax.f32 %v7092_v32, %v1972_v6  ;;  %v1483_v53 = vmul.f32 %v2576_v4, %v1446_v10  ;;  %v2641_v2 = vld [vmem:[%s6006_s3 + $0x188] sm:$0xff]  ;;  %v7095_v42 = vld [vmem:[#allocation66_spill] sm:$0xff]  ;;  %v5679_v0 = vpop.permute.xlu0 %891  ;;  %v2498_v55 = vld [vmem:[%s6006_s3 + $0x40] sm:$0xff] }
 0x1b6   : > { %v1217_v35 = vadd.f32 %v1210_v46, %v944_v15  ;;  %v628_v6 = vmax.f32 %v7095_v42, %v7094_v24  ;;  %v363_v46 = vld [vmem:[%s6006_s3 + $0x8] sm:$0xff]  ;;  %v7101_v24 = vld [vmem:[#allocation51_spill] sm:$0xff] }
 0x1b7   : > { %v1468_v51 = vadd.f32 %v1461_v22, %v1195_v13  ;;  %v2007_v16 = vmul.f32 %v2617_v3, %v1992_v8  ;;  %v2029_v62 = vmul.f32 %v2624_v34, %v1992_v8  ;;  %v2505_v22 = vld [vmem:[%s6006_s3 + $0x200] sm:$0xff]  ;;  %v2481_v32 = vld [vmem:[%s6006_s3 + $0x1c8] sm:$0xff]  ;;  %v370_v34 = vmul.f32 %v363_v46, %v356_v48 }
 0x1b8   : > { %v1490_v58 = vadd.f32 %v1483_v53, %v1217_v35  ;;  %v7098_v8 = vld [vmem:[#allocation101_spill] sm:$0xff]  ;;  %v2522_v53 = vld [vmem:[%s6006_s3 + $0x78] sm:$0xff]  ;;  %v1447_v42 = vmax.f32 %v7101_v24, %v5480_v45  ;;  %v2594_v45 = vld [vmem:[%s6006_s3 + $0x120] sm:$0xff] }
 0x1b9   : > { %v1741_v61 = vadd.f32 %v1734_v1, %v1468_v51  ;;  %v901_v3 = vmax.f32 %v7099_v7, %v7098_v8  ;;  %v643_v1 = vmul.f32 %v2498_v55, %v628_v6  ;;  %v2529_v35 = vld [vmem:[%s6006_s3 + $0x238] sm:$0xff]  ;;  %v2577_v31 = vld [vmem:[%s6006_s3 + $0x2a8] sm:$0xff]  ;;  %v2601_v46 = vld [vmem:[%s6006_s3 + $0x2e0] sm:$0xff] }
 0x1ba   : > { %v1763_v18 = vadd.f32 %v1756_v33, %v1490_v58  ;;  %v5704_v58 = vpop.permute.xlu0 %1433  ;;  %v1484_v8 = vmul.f32 %v2577_v31, %v1447_v42  ;;  %v7103_v7 = vld [vmem:[#allocation28_spill] sm:$0xff] }
 0x1bb   : > { %v2014_v12 = vadd.f32 %v2007_v16, %v1741_v61  ;;  %v665_v16 = vmul.f32 %v2505_v22, %v628_v6  ;;  %v916_v61 = vmul.f32 %v2522_v53, %v901_v3  ;;  %v650_v6 = vadd.f32 %v643_v1, %v370_v34  ;;  %v7105_v53 = vld [vmem:[#allocation29_spill] sm:$0xff]  ;;  %v7107_v34 = vld [vmem:[#allocation78_spill] sm:$0xff] }
 0x1bc   : > { %v2036_v13 = vadd.f32 %v2029_v62, %v1763_v18  ;;  %v2546_v62 = vld [vmem:[%s6006_s3 + $0xb0] sm:$0xff] }
 0x1bd   : > { %v923_v55 = vadd.f32 %v916_v61, %v650_v6  ;;  %v7106_v1 = vld [vmem:[#allocation65_spill] sm:$0xff]  ;;  %v2530_v6 = vld [vmem:[%s6006_s3 + $0x240] sm:$0xff] }
 0x1be   : > { %v2245_v54 = vpop.permute.xlu1 %2244 }
 0x1bf   : > { %v2265_v10 = vmax.f32 %v7093_v43, %v2245_v54  ;;  %v2553_v43 = vld [vmem:[%s6006_s3 + $0x270] sm:$0xff] }
 0x1c1   : > { %v2280_v39 = vmul.f32 %v2641_v2, %v2265_v10  ;;  %v2302_v4 = vmul.f32 %v2648_v49, %v2265_v10  ;;  %v392_v2 = vmul.f32 %v2481_v32, %v356_v48  ;;  %v7100_v49 = vld [vmem:[#allocation103_spill] sm:$0xff]  ;;  %v938_v10 = vmul.f32 %v2529_v35, %v901_v3 }
 0x1c2   : > { %v1174_v54 = vmax.f32 %v7100_v49, %v5382_v59  ;;  %v2570_v59 = vld [vmem:[%s6006_s3 + $0xe8] sm:$0xff]  ;;  %v1993_v3 = vmax.f32 %v7103_v7, %v5592_v21  ;;  %v357_v35 = vmax.f32 %v7107_v34, %v7106_v1  ;;  %v5767_v7 = vpop.permute.xlu1 %1164  ;;  %v2547_v1 = vld [vmem:[%s6006_s3 + $0xb8] sm:$0xff] }
 0x1c3   : > { %v2287_v15 = vadd.f32 %v2280_v39, %v2014_v12  ;;  %v2309_v33 = vadd.f32 %v2302_v4, %v2036_v13  ;;  %v672_v48 = vadd.f32 %v665_v16, %v392_v2  ;;  %v7102_v4 = vld [vmem:[#allocation58_spill] sm:$0xff]  ;;  %v1462_v32 = vmul.f32 %v2570_v59, %v1447_v42  ;;  %v7104_v13 = vld [vmem:[#allocation23_spill] sm:$0xff]  ;;  %v2499_v16 = vld [vmem:[%s6006_s3 + $0x48] sm:$0xff] }
 0x1c4   : > { %v1189_v18 = vmul.f32 %v2546_v62, %v1174_v54  ;;  %v1211_v39 = vmul.f32 %v2553_v43, %v1174_v54  ;;  %v1720_v12 = vmax.f32 %v7102_v4, %v5508_v26  ;;  %v629_v26 = vmax.f32 %v7105_v53, %v7104_v13  ;;  %v2506_v21 = vld [vmem:[%s6006_s3 + $0x208] sm:$0xff]  ;;  %v364_v2 = vld [vmem:[%s6006_s3 + $0x10] sm:$0xff]  ;;  %v2523_v42 = vld [vmem:[%s6006_s3 + $0x80] sm:$0xff] }
 0x1c5   : > { %v2317_v51 = vsel %vm2316_vm1, %v2287_v15, 0.0  ;;  %v2353_v37 = vsel %vm2316_vm1, %v2309_v33, 0.0  ;;  %v945_v22 = vadd.f32 %v938_v10, %v672_v48  ;;  %v2625_v33 = vld [vmem:[%s6006_s3 + $0x318] sm:$0xff]  ;;  %v2482_v43 = vld [vmem:[%s6006_s3 + $0x1d0] sm:$0xff]  ;;  %v371_v4 = vmul.f32 %v364_v2, %v357_v35 }
 0x1c6   : > { %2318 = vadd.xlane.f32.xlu0 %v2317_v51  ;;  %v2618_v51 = vld [vmem:[%s6006_s3 + $0x158] sm:$0xff]  ;;  %v1196_v49 = vadd.f32 %v1189_v18, %v923_v55  ;;  %v1735_v61 = vmul.f32 %v2594_v45, %v1720_v12  ;;  %v1757_v62 = vmul.f32 %v2601_v46, %v1720_v12  ;;  %v2030_v48 = vmul.f32 %v2625_v33, %v1993_v3  ;;  %v2642_v12 = vld [vmem:[%s6006_s3 + $0x190] sm:$0xff] }
 0x1c7   : > { %v1218_v54 = vadd.f32 %v1211_v39, %v945_v22  ;;  %v7108_v10 = vld [vmem:[#allocation34_spill] sm:$0xff]  ;;  %v644_v18 = vmul.f32 %v2499_v16, %v629_v26  ;;  %v666_v39 = vmul.f32 %v2506_v21, %v629_v26  ;;  %v393_v45 = vmul.f32 %v2482_v43, %v357_v35  ;;  %v7111_v21 = vld [vmem:[#allocation87_spill] sm:$0xff] }
 0x1c8   : > { %v902_v24 = vmax.f32 %v7108_v10, %v5341_v56  ;;  %v1469_v59 = vadd.f32 %v1462_v32, %v1196_v49  ;;  %v2649_v56 = vld [vmem:[%s6006_s3 + $0x350] sm:$0xff]  ;;  %v7109_v32 = vld [vmem:[#allocation95_spill] sm:$0xff]  ;;  %v1448_v2 = vmax.f32 %v7111_v21, %v5494_v40  ;;  %v2595_v40 = vld [vmem:[%s6006_s3 + $0x128] sm:$0xff] }
 0x1c9   : > { %v1491_v31 = vadd.f32 %v1484_v8, %v1218_v54  ;;  %v7110_v53 = vld [vmem:[#allocation26_spill] sm:$0xff]  ;;  %v651_v49 = vadd.f32 %v644_v18, %v371_v4  ;;  %v673_v54 = vadd.f32 %v666_v39, %v393_v45  ;;  %v2626_v45 = vld [vmem:[%s6006_s3 + $0x320] sm:$0xff]  ;;  %v7115_v21 = vld [vmem:[#allocation109_spill] sm:$0xff] }
 0x1ca   : > { %2354 = vadd.xlane.f32.xlu0 %v2353_v37  ;;  %v2008_v37 = vmul.f32 %v2618_v51, %v1993_v3  ;;  %v1742_v46 = vadd.f32 %v1735_v61, %v1469_v59  ;;  %v917_v3 = vmul.f32 %v2523_v42, %v902_v24  ;;  %v939_v13 = vmul.f32 %v2530_v6, %v902_v24  ;;  %v2554_v34 = vld [vmem:[%s6006_s3 + $0x278] sm:$0xff]  ;;  %v2578_v61 = vld [vmem:[%s6006_s3 + $0x2b0] sm:$0xff] }
 0x1cb   : > { %v1764_v22 = vadd.f32 %v1757_v62, %v1491_v31  ;;  %v1175_v26 = vmax.f32 %v7110_v53, %v5454_v57  ;;  %v2571_v57 = vld [vmem:[%s6006_s3 + $0xf0] sm:$0xff] }
 0x1cc   : > { %v2015_v33 = vadd.f32 %v2008_v37, %v1742_v46  ;;  %v7112_v42 = vld [vmem:[#allocation61_spill] sm:$0xff]  ;;  %v924_v59 = vadd.f32 %v917_v3, %v651_v49  ;;  %v946_v31 = vadd.f32 %v939_v13, %v673_v54  ;;  %v1463_v4 = vmul.f32 %v2571_v57, %v1448_v2  ;;  %v7117_v54 = vld [vmem:[#allocation55_spill] sm:$0xff] }
 0x1cd   : > { %v2037_v16 = vadd.f32 %v2030_v48, %v1764_v22  ;;  %v1190_v10 = vmul.f32 %v2547_v1, %v1175_v26  ;;  %v1212_v24 = vmul.f32 %v2554_v34, %v1175_v26  ;;  %v1721_v6 = vmax.f32 %v7112_v42, %v5572_v11  ;;  %v2602_v37 = vld [vmem:[%s6006_s3 + $0x2e8] sm:$0xff]  ;;  %v2650_v1 = vld [vmem:[%s6006_s3 + $0x358] sm:$0xff]  ;;  %v2500_v42 = vld [vmem:[%s6006_s3 + $0x50] sm:$0xff] }
 0x1ce   : > { %v1976_v15 = vpop.permute.xlu0 %1975  ;;  %v7118_v57 = vld [vmem:[#allocation73_spill] sm:$0xff] }
 0x1cf   : > { %v1197_v46 = vadd.f32 %v1190_v10, %v924_v59  ;;  %v1219_v22 = vadd.f32 %v1212_v24, %v946_v31  ;;  %v2507_v59 = vld [vmem:[%s6006_s3 + $0x210] sm:$0xff]  ;;  %v2483_v31 = vld [vmem:[%s6006_s3 + $0x1d8] sm:$0xff] }
 0x1d1   : > { %v1470_v3 = vadd.f32 %v1463_v4, %v1197_v46 }
 0x1d3   : > { %v2247_v55 = vpop.permute.xlu0 %2246 }
 0x1d4   : > { %v2266_v8 = vmax.f32 %v7109_v32, %v2247_v55  ;;  %v2619_v55 = vld [vmem:[%s6006_s3 + $0x160] sm:$0xff]  ;;  %v1736_v32 = vmul.f32 %v2595_v40, %v1721_v6  ;;  %v7119_v40 = vld [vmem:[#allocation113_spill] sm:$0xff] }
 0x1d6   : > { %v2281_v35 = vmul.f32 %v2642_v12, %v2266_v8  ;;  %v2303_v51 = vmul.f32 %v2649_v56, %v2266_v8  ;;  %v1485_v12 = vmul.f32 %v2578_v61, %v1448_v2  ;;  %v7113_v56 = vld [vmem:[#allocation15_spill] sm:$0xff]  ;;  %v1758_v8 = vmul.f32 %v2602_v37, %v1721_v6  ;;  %v7116_v2 = vld [vmem:[#allocation30_spill] sm:$0xff] }
 0x1d7   : > { %v5794_v48 = vpop.permute.xlu1 %1706  ;;  %v1994_v11 = vmax.f32 %v7113_v56, %v1976_v15  ;;  %v2643_v15 = vld [vmem:[%s6006_s3 + $0x198] sm:$0xff]  ;;  %v630_v49 = vmax.f32 %v7116_v2, %v7115_v21  ;;  %v358_v61 = vmax.f32 %v7118_v57, %v7117_v54  ;;  %v903_v37 = vmax.f32 %v7119_v40, %v5384_v17  ;;  %v2603_v57 = vld [vmem:[%s6006_s3 + $0x2f0] sm:$0xff] }
 0x1d8   : > { %v2288_v62 = vadd.f32 %v2281_v35, %v2015_v33  ;;  %v2310_v43 = vadd.f32 %v2303_v51, %v2037_v16  ;;  %v1492_v13 = vadd.f32 %v1485_v12, %v1219_v22  ;;  %v1743_v35 = vadd.f32 %v1736_v32, %v1470_v3  ;;  %v7114_v33 = vld [vmem:[#allocation21_spill] sm:$0xff]  ;;  %v365_v6 = vld [vmem:[%s6006_s3 + $0x18] sm:$0xff] }
 0x1d9   : > { %v2009_v53 = vmul.f32 %v2619_v55, %v1994_v11  ;;  %v2031_v26 = vmul.f32 %v2626_v45, %v1994_v11  ;;  %v2524_v12 = vld [vmem:[%s6006_s3 + $0x88] sm:$0xff]  ;;  %v645_v56 = vmul.f32 %v2500_v42, %v630_v49  ;;  %v372_v11 = vmul.f32 %v365_v6, %v358_v61  ;;  %v7120_v32 = vld [vmem:[#allocation79_spill] sm:$0xff]  ;;  %v7122_v2 = vld [vmem:[#allocation70_spill] sm:$0xff] }
 0x1da   : > { %v2320_v18 = vsel %vm2316_vm1, %v2288_v62, 0.0  ;;  %v2356_v39 = vsel %vm2316_vm1, %v2310_v43, 0.0  ;;  %v1765_v51 = vadd.f32 %v1758_v8, %v1492_v13  ;;  %v2531_v55 = vld [vmem:[%s6006_s3 + $0x248] sm:$0xff]  ;;  %v667_v22 = vmul.f32 %v2507_v59, %v630_v49  ;;  %v2548_v13 = vld [vmem:[%s6006_s3 + $0xc0] sm:$0xff] }
 0x1db   : > { %2321 = vadd.xlane.f32.xlu1 %v2320_v18  ;;  %2357 = vadd.xlane.f32.xlu0 %v2356_v39  ;;  %v2016_v24 = vadd.f32 %v2009_v53, %v1743_v35  ;;  %v5830_v18 = vpop.permute.xlu0 %1435  ;;  %v394_v17 = vmul.f32 %v2483_v31, %v358_v61  ;;  %v1176_v8 = vmax.f32 %v7120_v32, %v5506_v27  ;;  %v2555_v53 = vld [vmem:[%s6006_s3 + $0x280] sm:$0xff]  ;;  %v2572_v27 = vld [vmem:[%s6006_s3 + $0xf8] sm:$0xff]  ;;  %v2627_v42 = vld [vmem:[%s6006_s3 + $0x328] sm:$0xff] }
 0x1dc   : > { %v2038_v10 = vadd.f32 %v2031_v26, %v1765_v51  ;;  %v918_v3 = vmul.f32 %v2524_v12, %v903_v37  ;;  %v940_v26 = vmul.f32 %v2531_v55, %v903_v37  ;;  %v2579_v35 = vld [vmem:[%s6006_s3 + $0x2b8] sm:$0xff]  ;;  %v1722_v49 = vmax.f32 %v7122_v2, %v5656_v29  ;;  %v2620_v29 = vld [vmem:[%s6006_s3 + $0x168] sm:$0xff] }
 0x1dd   : > { %v1213_v21 = vmul.f32 %v2555_v53, %v1176_v8  ;;  %v7126_v2 = vld [vmem:[#allocation60_spill] sm:$0xff] }
 0x1de   : > { %v1759_v40 = vmul.f32 %v2603_v57, %v1722_v49 }
 0x1df   : > { %v2249_v34 = vpop.permute.xlu1 %2248 }
 0x1e0   : > { %v2267_v16 = vmax.f32 %v7114_v33, %v2249_v34  ;;  %v652_v34 = vadd.f32 %v645_v56, %v372_v11  ;;  %v674_v33 = vadd.f32 %v667_v22, %v394_v17  ;;  %v2651_v11 = vld [vmem:[%s6006_s3 + $0x360] sm:$0xff] }
 0x1e2   : > { %v2282_v62 = vmul.f32 %v2643_v15, %v2267_v16  ;;  %v2304_v43 = vmul.f32 %v2650_v1, %v2267_v16  ;;  %v7121_v15 = vld [vmem:[#allocation62_spill] sm:$0xff]  ;;  %v1191_v16 = vmul.f32 %v2548_v13, %v1176_v8  ;;  %v925_v54 = vadd.f32 %v918_v3, %v652_v34  ;;  %v7123_v13 = vld [vmem:[#allocation67_spill] sm:$0xff] }
 0x1e3   : > { %v1449_v1 = vmax.f32 %v7121_v15, %v5615_v25  ;;  %v1978_v51 = vpop.permute.xlu0 %1977  ;;  %v2596_v25 = vld [vmem:[%s6006_s3 + $0x130] sm:$0xff]  ;;  %v906_v53 = vmax.f32 %v7123_v13, %v5679_v0  ;;  %v2527_v15 = vld [vmem:[%s6006_s3 + $0xa0] sm:$0x1] }
 0x1e4   : > { %v2311_v39 = vadd.f32 %v2304_v43, %v2038_v10  ;;  %v2289_v4 = vadd.f32 %v2282_v62, %v2016_v24  ;;  %v947_v62 = vadd.f32 %v940_v26, %v674_v33  ;;  %v1995_v24 = vmax.f32 %v5360_v23, %v1978_v51  ;;  %v2644_v23 = vld [vmem:[%s6006_s3 + $0x1a0] sm:$0xff]  ;;  %v7124_v34 = vld [vmem:[#allocation14_spill] sm:$0xff] }
 0x1e5   : > { %v1464_v43 = vmul.f32 %v2572_v27, %v1449_v1  ;;  %v1486_v10 = vmul.f32 %v2579_v35, %v1449_v1  ;;  %v1198_v6 = vadd.f32 %v1191_v16, %v925_v54  ;;  %v1737_v31 = vmul.f32 %v2596_v25, %v1722_v49  ;;  %v2534_v1 = vld [vmem:[%s6006_s3 + $0x260] sm:$0x1]  ;;  %v7125_v33 = vld [vmem:[#allocation102_spill] sm:$0xff] }
 0x1e6   : > { %v2359_v45 = vsel %vm2316_vm1, %v2311_v39, 0.0  ;;  %v2323_v46 = vsel %vm2316_vm1, %v2289_v4, 0.0  ;;  %v1220_v59 = vadd.f32 %v1213_v21, %v947_v62  ;;  %v2010_v12 = vmul.f32 %v2620_v29, %v1995_v24  ;;  %v2573_v51 = vld [vmem:[%s6006_s3 + $0x100] sm:$0xff]  ;;  %v2551_v21 = vld [vmem:[%s6006_s3 + $0xd8] sm:$0x1] }
 0x1e7   : > { %2360 = vadd.xlane.f32.xlu0 %v2359_v45  ;;  %2324 = vadd.xlane.f32.xlu1 %v2323_v46  ;;  %v1438_v37 = vpop.permute.xlu0 %1437  ;;  %v1471_v39 = vadd.f32 %v1464_v43, %v1198_v6  ;;  %v2032_v56 = vmul.f32 %v2627_v42, %v1995_v24  ;;  %v1450_v27 = vmax.f32 %v7124_v34, %v5704_v58  ;;  %v2580_v0 = vld [vmem:[%s6006_s3 + $0x2c0] sm:$0xff]  ;;  %v2558_v58 = vld [vmem:[%s6006_s3 + $0x298] sm:$0x1]  ;;  %v2574_v42 = vld [vmem:[%s6006_s3 + $0x108] sm:$0xff] }
 0x1e8   : > { %v1493_v4 = vadd.f32 %v1486_v10, %v1220_v59  ;;  %v1179_v16 = vmax.f32 %v7125_v33, %v5767_v7  ;;  %v1723_v49 = vmax.f32 %v7126_v2, %v5794_v48  ;;  %v921_v57 = vmul.f32 %v2527_v15, %v906_v53  ;;  %v2597_v7 = vld [vmem:[%s6006_s3 + $0x138] sm:$0xff]  ;;  %v2652_v34 = vld [vmem:[%s6006_s3 + $0x368] sm:$0xff] }
 0x1e9   : > { %v1744_v45 = vadd.f32 %v1737_v31, %v1471_v39  ;;  %v943_v62 = vmul.f32 %v2534_v1, %v906_v53  ;;  %v2604_v43 = vld [vmem:[%s6006_s3 + $0x2f8] sm:$0xff]  ;;  %v1465_v48 = vmul.f32 %v2573_v51, %v1450_v27  ;;  %v1487_v29 = vmul.f32 %v2580_v0, %v1450_v27  ;;  %v2606_v33 = vld [vmem:[%s6006_s3 + $0x308] sm:$0x1] }
 0x1ea   : > { %v1766_v46 = vadd.f32 %v1759_v40, %v1493_v4  ;;  %v7127_v10 = vld [vmem:[#allocation46_spill] sm:$0xff]  ;;  %v1194_v59 = vmul.f32 %v2551_v21, %v1179_v16  ;;  %v1216_v31 = vmul.f32 %v2558_v58, %v1179_v16  ;;  %v2581_v40 = vld [vmem:[%s6006_s3 + $0x2c8] sm:$0xff] }
 0x1eb   : > { %v2017_v3 = vadd.f32 %v2010_v12, %v1744_v45  ;;  %v1451_v24 = vmax.f32 %v7127_v10, %v5830_v18  ;;  %v1738_v12 = vmul.f32 %v2597_v7, %v1723_v49  ;;  %v1760_v18 = vmul.f32 %v2604_v43, %v1723_v49  ;;  %v2622_v0 = vld [vmem:[%s6006_s3 + $0x178] sm:$0xff]  ;;  %v2623_v49 = vld [vmem:[%s6006_s3 + $0x180] sm:$0x1] }
 0x1ec   : > { %v2039_v8 = vadd.f32 %v2032_v56, %v1766_v46  ;;  %v1452_v56 = vmax.f32 %v5337_v20, %v1438_v37  ;;  %v950_v45 = vadd.f32 %v943_v62, %v5590_v50  ;;  %v2575_v20 = vld [vmem:[%s6006_s3 + $0x110] sm:$0x1]  ;;  %v1472_v37 = vadd.f32 %v1465_v48, %v5594_v5 }
 0x1ed   : > { %v5864_v61 = vpop.permute.xlu1 %1708  ;;  %v1466_v46 = vmul.f32 %v2574_v42, %v1451_v24 }
 0x1ee   : > { %v1745_v53 = vadd.f32 %v1738_v12, %v1472_v37  ;;  %v1467_v15 = vmul.f32 %v2575_v20, %v1452_v56  ;;  %v2646_v12 = vld [vmem:[%s6006_s3 + $0x1b0] sm:$0xff] }
 0x1f3   : > { %v2251_v55 = vpop.permute.xlu1 %2250 }
 0x1f4   : > { %v2268_v22 = vmax.f32 %v5450_v41, %v2251_v55  ;;  %v928_v55 = vadd.f32 %v921_v57, %v5588_v28  ;;  %v2582_v28 = vld [vmem:[%s6006_s3 + $0x2d0] sm:$0x1] }
 0x1f5   : > { %v1489_v51 = vmul.f32 %v2582_v28, %v1452_v56 }
 0x1f6   : > { %v2283_v17 = vmul.f32 %v2644_v23, %v2268_v22  ;;  %v2305_v32 = vmul.f32 %v2651_v11, %v2268_v22  ;;  %v2621_v23 = vld [vmem:[%s6006_s3 + $0x170] sm:$0xff]  ;;  %v1494_v22 = vadd.f32 %v1487_v29, %v5596_v9  ;;  %v2599_v9 = vld [vmem:[%s6006_s3 + $0x148] sm:$0x1] }
 0x1f7   : > { %v1980_v26 = vpop.permute.xlu0 %1979  ;;  %v2628_v11 = vld [vmem:[%s6006_s3 + $0x330] sm:$0xff] }
 0x1f8   : > { %v2312_v41 = vadd.f32 %v2305_v32, %v2039_v8  ;;  %v2290_v35 = vadd.f32 %v2283_v17, %v2017_v3  ;;  %v1996_v39 = vmax.f32 %v5467_v30, %v1980_v26  ;;  %v1724_v30 = vmax.f32 %v5411_v14, %v5864_v61  ;;  %v2598_v32 = vld [vmem:[%s6006_s3 + $0x140] sm:$0xff] }
 0x1f9   : > { %v1488_v17 = vmul.f32 %v2581_v40, %v1451_v24  ;;  %v1201_v14 = vadd.f32 %v1194_v59, %v928_v55  ;;  %v1223_v61 = vadd.f32 %v1216_v31, %v950_v45  ;;  %v2605_v8 = vld [vmem:[%s6006_s3 + $0x300] sm:$0xff]  ;;  %v1767_v26 = vadd.f32 %v1760_v18, %v1494_v22  ;;  %v2653_v18 = vld [vmem:[%s6006_s3 + $0x370] sm:$0xff] }
 0x1fa   : > { %v2362_v54 = vsel %vm2316_vm1, %v2312_v41, 0.0  ;;  %v2326_v25 = vsel %vm2316_vm1, %v2290_v35, 0.0  ;;  %v2011_v5 = vmul.f32 %v2621_v23, %v1996_v39  ;;  %v2033_v3 = vmul.f32 %v2628_v11, %v1996_v39  ;;  %v2654_v39 = vld [vmem:[%s6006_s3 + $0x378] sm:$0x1] }
 0x1fb   : > { %2363 = vadd.xlane.f32.xlu0 %v2362_v54  ;;  %2327 = vadd.xlane.f32.xlu1 %v2326_v25  ;;  %v1711_v6 = vpop.permute.xlu0 %1710  ;;  %v1473_v41 = vadd.f32 %v1466_v46, %v5628_v44  ;;  %v1739_v35 = vmul.f32 %v2598_v32, %v1724_v30  ;;  %v1495_v21 = vadd.f32 %v1488_v17, %v5630_v52 }
 0x1fc   : > { %v1725_v50 = vmax.f32 %v5476_v36, %v1711_v6  ;;  %v2645_v36 = vld [vmem:[%s6006_s3 + $0x1a8] sm:$0xff]  ;;  %v1761_v58 = vmul.f32 %v2605_v8, %v1724_v30  ;;  %v2040_v57 = vadd.f32 %v2033_v3, %v1767_v26  ;;  %v2018_v62 = vadd.f32 %v2011_v5, %v1745_v53 }
 0x1fd   : > { %v1982_v4 = vpop.permute.xlu1 %1981  ;;  %v1474_v7 = vadd.f32 %v1467_v15, %v1201_v14  ;;  %v1746_v52 = vadd.f32 %v1739_v35, %v1473_v41  ;;  %v1496_v48 = vadd.f32 %v1489_v51, %v1223_v61 }
 0x1fe   : > { %v1997_v1 = vmax.f32 %v5486_v63, %v1982_v4  ;;  %v2629_v63 = vld [vmem:[%s6006_s3 + $0x338] sm:$0xff]  ;;  %v1740_v44 = vmul.f32 %v2599_v9, %v1725_v50  ;;  %v1762_v24 = vmul.f32 %v2606_v33, %v1725_v50  ;;  %v1768_v59 = vadd.f32 %v1761_v58, %v1495_v21 }
 0x200   : > { %v2012_v43 = vmul.f32 %v2622_v0, %v1997_v1  ;;  %v2034_v10 = vmul.f32 %v2629_v63, %v1997_v1  ;;  %v1747_v31 = vadd.f32 %v1740_v44, %v1474_v7  ;;  %v1769_v46 = vadd.f32 %v1762_v24, %v1496_v48 }
 0x201   : > { %v1984_v13 = vpop.permute.xlu1 %1983  ;;  %v2253_v27 = vpop.permute.xlu0 %2252 }
 0x202   : > { %v2269_v16 = vmax.f32 %v5500_v19, %v2253_v27  ;;  %v1998_v2 = vmax.f32 %v5492_v38, %v1984_v13  ;;  %v2630_v19 = vld [vmem:[%s6006_s3 + $0x340] sm:$0x1]  ;;  %v2647_v38 = vld [vmem:[%s6006_s3 + $0x1b8] sm:$0x1]  ;;  %v2019_v30 = vadd.f32 %v2012_v43, %v1746_v52 }
 0x204   : > { %v2284_v54 = vmul.f32 %v2645_v36, %v2269_v16  ;;  %v2306_v25 = vmul.f32 %v2652_v34, %v2269_v16  ;;  %v2013_v40 = vmul.f32 %v2623_v49, %v1998_v2  ;;  %v2035_v23 = vmul.f32 %v2630_v19, %v1998_v2 }
 0x206   : > { %v2257_v29 = vpop.permute.xlu1 %2256  ;;  %v2313_v42 = vadd.f32 %v2306_v25, %v2040_v57  ;;  %v2291_v6 = vadd.f32 %v2284_v54, %v2018_v62  ;;  %v2042_v50 = vadd.f32 %v2035_v23, %v1769_v46  ;;  %v2020_v14 = vadd.f32 %v2013_v40, %v1747_v31 }
 0x207   : > { %v2271_v4 = vmax.f32 %v5510_v47, %v2257_v29  ;;  %v2255_v56 = vpop.permute.xlu0 %2254  ;;  %v2041_v47 = vadd.f32 %v2034_v10, %v1768_v59  ;;  %v2387_v29 = vlaneseq }
 0x208   : > { %v2270_v11 = vmax.f32 %v5513_v60, %v2255_v56  ;;  %v2365_v55 = vsel %vm2316_vm1, %v2313_v42, 0.0  ;;  %v2329_v45 = vsel %vm2316_vm1, %v2291_v6, 0.0 }
 0x209   : > { %2366 = vadd.xlane.f32.xlu0 %v2365_v55  ;;  %2330 = vadd.xlane.f32.xlu1 %v2329_v45  ;;  %v2286_v20 = vmul.f32 %v2647_v38, %v2271_v4  ;;  %v2308_v37 = vmul.f32 %v2654_v39, %v2271_v4  ;;  %v2388_v40 = vand.u32 127, %v2387_v29 }
 0x20a   : > { %v2285_v22 = vmul.f32 %v2646_v12, %v2270_v11  ;;  %v2307_v17 = vmul.f32 %v2653_v18, %v2270_v11  ;;  %v2391_v12 = vstv %s2390_s21  ;;  %v2394_v18 = vstv %s2655_s22 }
 0x20b   : > { %v2315_v8 = vadd.f32 %v2308_v37, %v2042_v50  ;;  %v2293_v5 = vadd.f32 %v2286_v20, %v2020_v14  ;;  %vm2389_vm4 = vcmp.eq.s32.totalorder %v2388_v40, 0 }
 0x20c   : > { %v2314_v32 = vadd.f32 %v2307_v17, %v2041_v47  ;;  %v2292_v28 = vadd.f32 %v2285_v22, %v2019_v30 }
 0x20d   : > { %v2371_v3 = vsel %vm2335_vm2, %v2315_v8, 0.0  ;;  %v2336_v9 = vsel %vm2335_vm2, %v2293_v5, 0.0 }
 0x20e   : > { %v2368_v61 = vsel %vm2316_vm1, %v2314_v32, 0.0  ;;  %v2332_v60 = vsel %vm2316_vm1, %v2292_v28, 0.0 }
 0x20f   : > { %2369 = vadd.xlane.f32.xlu0 %v2368_v61  ;;  %2333 = vadd.xlane.f32.xlu1 %v2332_v60 }
 0x213   : > { %2372 = vadd.xlane.f32.xlu0 %v2371_v3  ;;  %2337 = vadd.xlane.f32.xlu1 %v2336_v9 }
 0x24f   : > { %v2319_v13 = vpop.xlane.xlu0 %2318 }
 0x253   : > { %v2355_v53 = vpop.xlane.xlu0 %2354 }
 0x264   : > { %v2358_v26 = vpop.xlane.xlu0 %2357  ;;  %v2322_v15 = vpop.xlane.xlu1 %2321 }
 0x265   : > { %v2339_v51 = vadd.f32 %v2322_v15, %v2319_v13  ;;  %v2374_v0 = vadd.f32 %v2358_v26, %v2355_v53 }
 0x270   : > { %v2325_v1 = vpop.xlane.xlu1 %2324  ;;  %v2361_v36 = vpop.xlane.xlu0 %2360 }
 0x271   : > { %v2340_v63 = vadd.f32 %v2339_v51, %v2325_v1  ;;  %v2375_v33 = vadd.f32 %v2374_v0, %v2361_v36 }
 0x284   : > { %v2328_v34 = vpop.xlane.xlu1 %2327  ;;  %v2364_v27 = vpop.xlane.xlu0 %2363 }
 0x285   : > { %v2341_v16 = vadd.f32 %v2340_v63, %v2328_v34  ;;  %v2376_v21 = vadd.f32 %v2375_v33, %v2364_v27 }
 0x292   : > { %v2331_v41 = vpop.xlane.xlu1 %2330  ;;  %v2367_v35 = vpop.xlane.xlu0 %2366 }
 0x293   : > { %v2342_v2 = vadd.f32 %v2341_v16, %v2331_v41  ;;  %v2377_v49 = vadd.f32 %v2376_v21, %v2367_v35 }
 0x298   : > { %v2334_v58 = vpop.xlane.xlu1 %2333  ;;  %v2370_v44 = vpop.xlane.xlu0 %2369 }
 0x299   : > { %v2343_v54 = vadd.f32 %v2342_v2, %v2334_v58  ;;  %v2378_v25 = vadd.f32 %v2377_v49, %v2370_v44 }
 0x29c   : > { %v2338_v57 = vpop.xlane.xlu1 %2337  ;;  %v2373_v62 = vpop.xlane.xlu0 %2372 }
 0x29d   : > { %v2345_v7 = vsel %vm2344_vm3, %v2338_v57, 0.0  ;;  %v2379_v43 = vsel %vm2344_vm3, %v2373_v62, 0.0 }
 0x29e   : > { %v2346_v10 = vadd.f32 %v2345_v7, %v2343_v54  ;;  %v2380_v24 = vadd.f32 %v2379_v43, %v2378_v25 }
 0x2a0   : > { %v2347_v19 = vrot.slane %v2346_v10, 4  ;;  %v2381_v52 = vrot.slane %v2380_v24, 4 }
 0x2a2   : > { %v2348_v48 = vadd.f32 %v2347_v19, %v2346_v10  ;;  %v2382_v38 = vadd.f32 %v2381_v52, %v2380_v24 }
 0x2a4   : > { %v2349_v42 = vrot.slane %v2348_v48, 2  ;;  %v2383_v6 = vrot.slane %v2382_v38, 2 }
 0x2a6   : > { %v2350_v59 = vadd.f32 %v2349_v42, %v2348_v48  ;;  %v2384_v31 = vadd.f32 %v2383_v6, %v2382_v38 }
 0x2a8   : > { %v2351_v39 = vrot.slane %v2350_v59, 1  ;;  %v2385_v4 = vrot.slane %v2384_v31, 1 }
 0x2aa   : > { %v2352_v56 = vadd.f32 %v2351_v39, %v2350_v59  ;;  %v2386_v23 = vadd.f32 %v2385_v4, %v2384_v31 }
 0x2ab   :  { %61 = sbr.rel (!%p59_p1) target bundleno = 39 (0x27), region = 78 }
 0x2ac   : > { %v2392_v11 = vadd.f32 %v2391_v12, %v2352_v56  ;;  %v2395_v55 = vadd.f32 %v2394_v18, %v2386_v23 }
 0x2ae   : > { %v2396_v45 = vsel %vm2389_vm4, %v2392_v11, %v2395_v55 }
 0x2af   : > { %2399 = vst.msk [vmem:[%s2397_s23] sm:$0x1] %vm2398_vm5, %v2396_v45 }
 0x2b0   :  { %2815 = shalt.err (!%p2812_p6)
}
 0x2b1   :  { %2409 = dma.vmem_to_hbm [thread:$0]  %s2407_s25, 32, %s6008_s5, [#allocation3]  }
 0x2b2   :  { %2832 = dma.done.wait [#allocation3], 32  }
 0x2b3   :  { %2833 = vsyncadd [#allocation3], 4294967264 }
 0x2b4   :  { %2413 = vsyncpa [#allocation3], 1 }
 0x2b5   :  { %2414 = vsyncpa [#allocation4], 1 }
 0x2b6   :  { %2415 = vsyncpa [#allocation6], 1 }

</bundles_post_ra>
